<compile_context>
chip_gen: v6e
topology: v6e:2x2x1
jax: 0.10.0
libtpu: 0.0.40
codegen_flags: <defaults>
</compile_context>

<pallas_src>
import math
import functools

import jax
import jax.numpy as jnp
from jax.experimental import pallas as pl
from jax.experimental.pallas import tpu as pltpu


# ----------------------------------------------------------------------------
# small helpers
# ----------------------------------------------------------------------------
def _round_up(n, m):
    return ((n + m - 1) // m) * m


def _choose_chunk(T, max_chunk=16):
    """Largest divisor of T that is <= max_chunk (timesteps per grid step)."""
    tc = 1
    for cand in range(1, min(T, max_chunk) + 1):
        if T % cand == 0:
            tc = cand
    return tc


def _pad_gates(w_t, n_rows_p, H, Hp):
    """(d_in, 4H) f32 -> (n_rows_p, 4*Hp) with each gate block lane-aligned."""
    d_in = w_t.shape[0]
    out = jnp.zeros((n_rows_p, 4 * Hp), jnp.float32)
    for k in range(4):
        out = out.at[:d_in, k * Hp:k * Hp + H].set(w_t[:, k * H:(k + 1) * H])
    return out


def _pad_gate_bias(b, H, Hp):
    out = jnp.zeros((1, 4 * Hp), jnp.float32)
    for k in range(4):
        out = out.at[0, k * Hp:k * Hp + H].set(b[k * H:(k + 1) * H])
    return out


# ----------------------------------------------------------------------------
# fused kernel: LSTM stack (all layers) + final Linear, h/c carried in VMEM
# ----------------------------------------------------------------------------
def _make_fused_kernel(num_layers, TC, Bp, Hp):
    G = 4 * Hp

    def kernel(*refs):
        # inputs : x, (w_ih, w_hh, b) per layer, fc_w, fc_b
        # outputs: out (Bp, Op)
        # scratch: gi (staged layer-0 projection), (h, c) per layer
        idx = 0
        x_ref = refs[idx]; idx += 1
        w_ih, w_hh, bias = [], [], []
        for _ in range(num_layers):
            w_ih.append(refs[idx]); w_hh.append(refs[idx + 1]); bias.append(refs[idx + 2])
            idx += 3
        fc_w_ref = refs[idx]; fc_b_ref = refs[idx + 1]; idx += 2
        out_ref = refs[idx]; idx += 1
        gi_ref = refs[idx]; idx += 1
        h_ref, c_ref = [], []
        for _ in range(num_layers):
            h_ref.append(refs[idx]); c_ref.append(refs[idx + 1]); idx += 2

        step = pl.program_id(0)

        @pl.when(step == 0)
        def _():
            for l in range(num_layers):
                h_ref[l][...] = jnp.zeros_like(h_ref[l])
                c_ref[l][...] = jnp.zeros_like(c_ref[l])

        # ---- hoisted layer-0 input projection for the whole time chunk -------
        # one MXU-fillable (TC*Bp, Dp) x (Dp, 4Hp) matmul instead of TC tiny ones.
        d_in = x_ref.shape[-1]
        x_chunk = x_ref[...].astype(jnp.bfloat16).reshape(TC * Bp, d_in)
        gi0 = jnp.dot(x_chunk, w_ih[0][...], preferred_element_type=jnp.float32)
        gi_ref[...] = (gi0 + bias[0][...]).reshape(TC, Bp, G)

        def lstm_cell(gates, l):
            # gate blocks are 128-lane aligned (Hp multiple of 128): unmasked slices
            i = jax.nn.sigmoid(gates[:, 0 * Hp:1 * Hp])
            f = jax.nn.sigmoid(gates[:, 1 * Hp:2 * Hp])
            g = jnp.tanh(gates[:, 2 * Hp:3 * Hp])
            o = jax.nn.sigmoid(gates[:, 3 * Hp:4 * Hp])
            c_new = f * c_ref[l][...] + i * g          # f32 state / elementwise
            h_new = o * jnp.tanh(c_new)
            c_ref[l][...] = c_new
            h_ref[l][...] = h_new
            return h_new

        # ---- serial recurrence over the chunk ---------------------------------
        # Fully unrolled (TC is a small static int): the static-index equivalent
        # of lax.fori_loop(0, TC, body, 0, unroll=True); gi reads are static slices.
        for t in range(TC):
            gates = gi_ref[t] + jnp.dot(h_ref[0][...].astype(jnp.bfloat16),
                                        w_hh[0][...],
                                        preferred_element_type=jnp.float32)
            h_prev = lstm_cell(gates, 0)
            for l in range(1, num_layers):
                gates = (jnp.dot(h_prev.astype(jnp.bfloat16), w_ih[l][...],
                                 preferred_element_type=jnp.float32)
                         + jnp.dot(h_ref[l][...].astype(jnp.bfloat16), w_hh[l][...],
                                   preferred_element_type=jnp.float32)
                         + bias[l][...])
                h_prev = lstm_cell(gates, l)

        # ---- fused final Linear, only on the last grid step -------------------
        @pl.when(step == pl.num_programs(0) - 1)
        def _():
            y = jnp.dot(h_ref[num_layers - 1][...].astype(jnp.bfloat16), fc_w_ref[...],
                        preferred_element_type=jnp.float32) + fc_b_ref[...]
            out_ref[...] = y.astype(out_ref.dtype)

    return kernel


def _pallas_lstm_fc_head(x_bsd, params, *, num_layers, output_size):
    """x: (B, T, D) batch-first -> fc(lstm(x)[:, -1, :]) of shape (B, output_size)."""
    B, T, D = x_bsd.shape
    layers = params["layers"]
    Dp = layers[0]["w_ih"].shape[0]
    Hp = layers[0]["w_hh"].shape[0]
    Op = params["fc_w"].shape[1]
    G = 4 * Hp
    Bp = _round_up(B, 8)          # full sublanes (f32)
    TC = _choose_chunk(T)         # timesteps per grid step (amortize grid overhead)

    # time-major + pad batch to 8 sublanes and features to 128 lanes
    x_tbd = jnp.transpose(x_bsd, (1, 0, 2)).astype(jnp.float32)
    x_pad = jnp.zeros((T, Bp, Dp), jnp.float32).at[:, :B, :D].set(x_tbd)

    in_specs = [pl.BlockSpec((TC, Bp, Dp), lambda s: (s, 0, 0))]
    inputs = [x_pad]
    for lp in layers:
        din_p = lp["w_ih"].shape[0]
        # NOTE(v7x, large H): these constant-index weight blocks could use
        # pipeline_mode=pl.Buffered(1) to avoid double-buffering multi-MiB weights
        # inside the 64 MiB VMEM; irrelevant at these sizes.
        in_specs += [
            pl.BlockSpec((din_p, G), lambda s: (0, 0)),
            pl.BlockSpec((Hp, G), lambda s: (0, 0)),
            pl.BlockSpec((1, G), lambda s: (0, 0)),
        ]
        inputs += [lp["w_ih"], lp["w_hh"], lp["b"]]
    in_specs += [pl.BlockSpec((Hp, Op), lambda s: (0, 0)),
                 pl.BlockSpec((1, Op), lambda s: (0, 0))]
    inputs += [params["fc_w"], params["fc_b"]]

    out_pad = pl.pallas_call(
        _make_fused_kernel(num_layers, TC, Bp, Hp),
        out_shape=jax.ShapeDtypeStruct((Bp, Op), jnp.float32),
        grid_spec=pltpu.PrefetchScalarGridSpec(
            num_scalar_prefetch=0,
            grid=(T // TC,),
            in_specs=in_specs,
            # only the final (Bp, Op) prediction is ever written to HBM (lane-dense)
            out_specs=pl.BlockSpec((Bp, Op), lambda s: (0, 0)),
            scratch_shapes=(
                [pltpu.VMEM((TC, Bp, G), jnp.float32)]                     # staged gi
                + [pltpu.VMEM((Bp, Hp), jnp.float32)] * (2 * num_layers)   # h, c / layer
            ),
        ),
        compiler_params=pltpu.CompilerParams(
            dimension_semantics=("arbitrary",),   # time recurrence is serial
            vmem_limit_bytes=32 * 1024 * 1024,
        ),
        # NOTE(v7x): a leading batch-parallel grid axis would let the 2 TensorCores
        # each carry their own h/c state for half the batch; pointless at B=2.
    )(*inputs)
    return out_pad[:B, :output_size]


# ----------------------------------------------------------------------------
# pure-JAX mirror of the kernel math (in-script correctness check)
# ----------------------------------------------------------------------------
def _reference_lstm_fc_head(x_bsd, params, *, num_layers, output_size):
    bf16 = jnp.bfloat16
    B, T, D = x_bsd.shape
    layers = params["layers"]
    Dp = layers[0]["w_ih"].shape[0]
    Hp = layers[0]["w_hh"].shape[0]
    x = jnp.transpose(x_bsd, (1, 0, 2)).astype(jnp.float32)
    x = jnp.pad(x, ((0, 0), (0, 0), (0, Dp - D)))
    h = [jnp.zeros((B, Hp), jnp.float32) for _ in range(num_layers)]
    c = [jnp.zeros((B, Hp), jnp.float32) for _ in range(num_layers)]
    for t in range(T):
        inp = x[t]
        for l in range(num_layers):
            gates = (jnp.dot(inp.astype(bf16), layers[l]["w_ih"],
                             preferred_element_type=jnp.float32)
                     + jnp.dot(h[l].astype(bf16), layers[l]["w_hh"],
                               preferred_element_type=jnp.float32)
                     + layers[l]["b"])
            i = jax.nn.sigmoid(gates[:, 0 * Hp:1 * Hp])
            f = jax.nn.sigmoid(gates[:, 1 * Hp:2 * Hp])
            g = jnp.tanh(gates[:, 2 * Hp:3 * Hp])
            o = jax.nn.sigmoid(gates[:, 3 * Hp:4 * Hp])
            c[l] = f * c[l] + i * g
            h[l] = o * jnp.tanh(c[l])
            inp = h[l]
    y = jnp.dot(h[-1].astype(bf16), params["fc_w"],
                preferred_element_type=jnp.float32) + params["fc_b"]
    return y[:, :output_size]


# ----------------------------------------------------------------------------
# autoregressive rollout (mirrors RecursiveLSTM.forward literally)
# ----------------------------------------------------------------------------
def _recursive_rollout(x, params, head_fn, *, output_size):
    # TODO(synk): the cat/shift of the input window between rollout iterations
    # stays in plain jnp (XLA) -- it is O(B*T) data plumbing, not kernel work.
    preds = []
    for _ in range(output_size):
        out = head_fn(x, params)                      # (B, output_size)
        preds.append(jnp.squeeze(out, -1))            # like the reference: needs output_size == 1
        x = jnp.concatenate([x, out[:, :, None]], axis=1)[:, 1:, :]
    return jnp.stack(preds, axis=1)                   # (B, output_size)


# ----------------------------------------------------------------------------
# parameter init (mirrors nn.LSTM / nn.Linear: uniform(-1/sqrt(H), 1/sqrt(H)),
# gate order [i, f, g, o]), stored pre-transposed / gate-padded / bf16 weights.
# ----------------------------------------------------------------------------
def init_params(key, input_size, hidden_size, num_layers, output_size,
                weight_dtype=jnp.bfloat16):
    H = hidden_size
    Hp = _round_up(H, 128)
    Op = _round_up(output_size, 128)
    bound = 1.0 / math.sqrt(H)
    layers = []
    for layer in range(num_layers):
        d_in = input_size if layer == 0 else H
        d_in_p = _round_up(d_in, 128)
        key, k1, k2, k3, k4 = jax.random.split(key, 5)
        w_ih = jax.random.uniform(k1, (4 * H, d_in), jnp.float32, -bound, bound)
        w_hh = jax.random.uniform(k2, (4 * H, H), jnp.float32, -bound, bound)
        b_ih = jax.random.uniform(k3, (4 * H,), jnp.float32, -bound, bound)
        b_hh = jax.random.uniform(k4, (4 * H,), jnp.float32, -bound, bound)
        layers.append({
            "w_ih": _pad_gates(w_ih.T, d_in_p, H, Hp).astype(weight_dtype),
            "w_hh": _pad_gates(w_hh.T, Hp, H, Hp).astype(weight_dtype),
            # LSTM biases enter purely additively -> fold b_ih + b_hh, keep f32
            "b": _pad_gate_bias(b_ih + b_hh, H, Hp),
        })
    key, k1, k2 = jax.random.split(key, 3)
    w_fc = jax.random.uniform(k1, (output_size, H), jnp.float32, -bound, bound)
    b_fc = jax.random.uniform(k2, (output_size,), jnp.float32, -bound, bound)
    fc_w = jnp.zeros((Hp, Op), jnp.float32).at[:H, :output_size].set(w_fc.T).astype(weight_dtype)
    fc_b = jnp.zeros((1, Op), jnp.float32).at[0, :output_size].set(b_fc)
    return {"layers": layers, "fc_w": fc_w, "fc_b": fc_b}


if __name__ == "__main__":
    # Shapes implied by the reference forward: the `torch.cat([x, out], 1)` and
    # `pred[:, i] = squeeze(out, -1)` only type-check for input_size == output_size == 1.
    input_size, hidden_size, num_layers, output_size = 1, 32, 2, 1
    batch, seq = 2, 8

    key = jax.random.PRNGKey(0)
    key, xkey = jax.random.split(key)
    x = jax.random.normal(xkey, (batch, seq, input_size), jnp.float32)
    params = init_params(key, input_size, hidden_size, num_layers, output_size)

    forward = jax.jit(functools.partial(
        _recursive_rollout,
        head_fn=functools.partial(_pallas_lstm_fc_head,
                                  num_layers=num_layers, output_size=output_size),
        output_size=output_size))

    pred = forward(x, params)
    jax.block_until_ready(pred)
    assert pred.shape == (batch, output_size)

    # correctness check against a pure-JAX mirror of the same (bf16-weight) math
    ref = _recursive_rollout(
        x, params,
        functools.partial(_reference_lstm_fc_head,
                          num_layers=num_layers, output_size=output_size),
        output_size=output_size)
    assert jnp.allclose(pred, ref, atol=1e-3, rtol=1e-3), (pred, ref)

    print("KERNEL_OK")
</pallas_src>

<mosaic_0001>
module attributes {stable_mosaic.version = 11 : i64} {
  func.func @kernel(%arg0: i32, %arg1: memref<8x8x128xf32, #tpu.memory_space<vmem>>, %arg2: memref<128x512xbf16, #tpu.memory_space<vmem>>, %arg3: memref<128x512xbf16, #tpu.memory_space<vmem>>, %arg4: memref<1x512xf32, #tpu.memory_space<vmem>>, %arg5: memref<128x512xbf16, #tpu.memory_space<vmem>>, %arg6: memref<128x512xbf16, #tpu.memory_space<vmem>>, %arg7: memref<1x512xf32, #tpu.memory_space<vmem>>, %arg8: memref<128x128xbf16, #tpu.memory_space<vmem>>, %arg9: memref<1x128xf32, #tpu.memory_space<vmem>>, %arg10: memref<8x128xf32, #tpu.memory_space<vmem>>, %arg11: memref<8x8x512xf32, #tpu.memory_space<vmem>>, %arg12: memref<8x128xf32, #tpu.memory_space<vmem>>, %arg13: memref<8x128xf32, #tpu.memory_space<vmem>>, %arg14: memref<8x128xf32, #tpu.memory_space<vmem>>, %arg15: memref<8x128xf32, #tpu.memory_space<vmem>>) attributes {dimension_semantics = [#tpu.dimension_semantics<arbitrary>], iteration_bounds = array<i64: 1>, scalar_prefetch = 0 : i64, scratch_operands = 5 : i64, tpu.core_type = #tpu.core_type<tc>, window_params = [{transform_indices = @transform_0, window_bounds = array<i64: 8, 8, 128>}, {pipeline_mode = #tpu.pipeline_mode<synchronous>, transform_indices = @transform_1, window_bounds = array<i64: 128, 512>}, {pipeline_mode = #tpu.pipeline_mode<synchronous>, transform_indices = @transform_2, window_bounds = array<i64: 128, 512>}, {pipeline_mode = #tpu.pipeline_mode<synchronous>, transform_indices = @transform_3, window_bounds = array<i64: 1, 512>}, {pipeline_mode = #tpu.pipeline_mode<synchronous>, transform_indices = @transform_4, window_bounds = array<i64: 128, 512>}, {pipeline_mode = #tpu.pipeline_mode<synchronous>, transform_indices = @transform_5, window_bounds = array<i64: 128, 512>}, {pipeline_mode = #tpu.pipeline_mode<synchronous>, transform_indices = @transform_6, window_bounds = array<i64: 1, 512>}, {pipeline_mode = #tpu.pipeline_mode<synchronous>, transform_indices = @transform_7, window_bounds = array<i64: 128, 128>}, {pipeline_mode = #tpu.pipeline_mode<synchronous>, transform_indices = @transform_8, window_bounds = array<i64: 1, 128>}, {pipeline_mode = #tpu.pipeline_mode<synchronous>, transform_indices = @transform_9, window_bounds = array<i64: 8, 128>}]} {
    %c0_i32 = arith.constant 0 : i32
    %0 = arith.cmpi eq, %arg0, %c0_i32 : i32
    %1 = arith.extui %0 : i1 to i32
    %c0_i32_0 = arith.constant 0 : i32
    %2 = arith.cmpi ne, %1, %c0_i32_0 : i32
    scf.if %2 {
      %cst_293 = arith.constant 0.000000e+00 : f32
      %608 = vector.broadcast %cst_293 : f32 to vector<8x128xf32>
      %c0_294 = arith.constant 0 : index
      %c0_295 = arith.constant 0 : index
      %609 = vector.load %arg12[%c0_294, %c0_295] : memref<8x128xf32, #tpu.memory_space<vmem>>, vector<8x128xf32>
      tpu.vector_store %arg12[%c0_294, %c0_295], %608 {strides = array<i32>} : memref<8x128xf32, #tpu.memory_space<vmem>>, vector<8x128xf32>,
      %cst_296 = arith.constant 0.000000e+00 : f32
      %610 = vector.broadcast %cst_296 : f32 to vector<8x128xf32>
      %c0_297 = arith.constant 0 : index
      %c0_298 = arith.constant 0 : index
      %611 = vector.load %arg13[%c0_297, %c0_298] : memref<8x128xf32, #tpu.memory_space<vmem>>, vector<8x128xf32>
      tpu.vector_store %arg13[%c0_297, %c0_298], %610 {strides = array<i32>} : memref<8x128xf32, #tpu.memory_space<vmem>>, vector<8x128xf32>,
      %cst_299 = arith.constant 0.000000e+00 : f32
      %612 = vector.broadcast %cst_299 : f32 to vector<8x128xf32>
      %c0_300 = arith.constant 0 : index
      %c0_301 = arith.constant 0 : index
      %613 = vector.load %arg14[%c0_300, %c0_301] : memref<8x128xf32, #tpu.memory_space<vmem>>, vector<8x128xf32>
      tpu.vector_store %arg14[%c0_300, %c0_301], %612 {strides = array<i32>} : memref<8x128xf32, #tpu.memory_space<vmem>>, vector<8x128xf32>,
      %cst_302 = arith.constant 0.000000e+00 : f32
      %614 = vector.broadcast %cst_302 : f32 to vector<8x128xf32>
      %c0_303 = arith.constant 0 : index
      %c0_304 = arith.constant 0 : index
      %615 = vector.load %arg15[%c0_303, %c0_304] : memref<8x128xf32, #tpu.memory_space<vmem>>, vector<8x128xf32>
      tpu.vector_store %arg15[%c0_303, %c0_304], %614 {strides = array<i32>} : memref<8x128xf32, #tpu.memory_space<vmem>>, vector<8x128xf32>,
    } else {
    }
    %c0 = arith.constant 0 : index
    %c0_1 = arith.constant 0 : index
    %c0_2 = arith.constant 0 : index
    %3 = vector.load %arg1[%c0, %c0_1, %c0_2] : memref<8x8x128xf32, #tpu.memory_space<vmem>>, vector<8x8x128xf32>
    %4 = arith.truncf %3 : vector<8x8x128xf32> to vector<8x8x128xbf16>
    %5 = vector.shape_cast %4 : vector<8x8x128xbf16> to vector<64x128xbf16>
    %c0_3 = arith.constant 0 : index
    %c0_4 = arith.constant 0 : index
    %6 = vector.load %arg2[%c0_3, %c0_4] : memref<128x512xbf16, #tpu.memory_space<vmem>>, vector<128x512xbf16>
    %cst = arith.constant dense<0.000000e+00> : vector<64x512xf32>
    %7 = tpu.matmul %5, %6, %cst {dimension_numbers = #tpu.dot_dimension_numbers<[1], [0], [0], [1], [0, 0, 1, 1], [], []>} : vector<64x128xbf16>, vector<128x512xbf16>, vector<64x512xf32> -> vector<64x512xf32>
    %c0_5 = arith.constant 0 : index
    %c0_6 = arith.constant 0 : index
    %8 = vector.load %arg4[%c0_5, %c0_6] : memref<1x512xf32, #tpu.memory_space<vmem>>, vector<1x512xf32>
    %9 = vector.broadcast %8 : vector<1x512xf32> to vector<64x512xf32>
    %10 = arith.addf %7, %9 : vector<64x512xf32>
    %11 = vector.shape_cast %10 : vector<64x512xf32> to vector<8x8x512xf32>
    %c0_7 = arith.constant 0 : index
    %c0_8 = arith.constant 0 : index
    %c0_9 = arith.constant 0 : index
    %12 = vector.load %arg11[%c0_7, %c0_8, %c0_9] : memref<8x8x512xf32, #tpu.memory_space<vmem>>, vector<8x8x512xf32>
    tpu.vector_store %arg11[%c0_7, %c0_8, %c0_9], %11 {strides = array<i32>} : memref<8x8x512xf32, #tpu.memory_space<vmem>>, vector<8x8x512xf32>,
    %c0_10 = arith.constant 0 : index
    %c0_11 = arith.constant 0 : index
    %c0_12 = arith.constant 0 : index
    %13 = vector.load %arg11[%c0_10, %c0_11, %c0_12] : memref<8x8x512xf32, #tpu.memory_space<vmem>>, vector<1x8x512xf32>
    %14 = vector.shape_cast %13 : vector<1x8x512xf32> to vector<8x512xf32>
    %c0_13 = arith.constant 0 : index
    %c0_14 = arith.constant 0 : index
    %15 = vector.load %arg12[%c0_13, %c0_14] : memref<8x128xf32, #tpu.memory_space<vmem>>, vector<8x128xf32>
    %16 = arith.truncf %15 : vector<8x128xf32> to vector<8x128xbf16>
    %c0_15 = arith.constant 0 : index
    %c0_16 = arith.constant 0 : index
    %17 = vector.load %arg3[%c0_15, %c0_16] : memref<128x512xbf16, #tpu.memory_space<vmem>>, vector<128x512xbf16>
    %cst_17 = arith.constant dense<0.000000e+00> : vector<8x512xf32>
    %18 = tpu.matmul %16, %17, %cst_17 {dimension_numbers = #tpu.dot_dimension_numbers<[1], [0], [0], [1], [0, 0, 1, 1], [], []>} : vector<8x128xbf16>, vector<128x512xbf16>, vector<8x512xf32> -> vector<8x512xf32>
    %19 = arith.addf %14, %18 : vector<8x512xf32>
    %20 = vector.extract_strided_slice %19 {offsets = [0, 0], sizes = [8, 128], strides = [1, 1]} : vector<8x512xf32> to vector<8x128xf32>
    %21 = arith.negf %20 : vector<8x128xf32>
    %22 = math.exp %21 : vector<8x128xf32>
    %cst_18 = arith.constant 1.000000e+00 : f32
    %23 = vector.broadcast %cst_18 : f32 to vector<8x128xf32>
    %24 = arith.addf %23, %22 : vector<8x128xf32>
    %25 = arith.divf %23, %24 : vector<8x128xf32>
    %26 = vector.extract_strided_slice %19 {offsets = [0, 128], sizes = [8, 128], strides = [1, 1]} : vector<8x512xf32> to vector<8x128xf32>
    %27 = arith.negf %26 : vector<8x128xf32>
    %28 = math.exp %27 : vector<8x128xf32>
    %cst_19 = arith.constant 1.000000e+00 : f32
    %29 = vector.broadcast %cst_19 : f32 to vector<8x128xf32>
    %30 = arith.addf %29, %28 : vector<8x128xf32>
    %31 = arith.divf %29, %30 : vector<8x128xf32>
    %32 = vector.extract_strided_slice %19 {offsets = [0, 256], sizes = [8, 128], strides = [1, 1]} : vector<8x512xf32> to vector<8x128xf32>
    %33 = math.tanh %32 : vector<8x128xf32>
    %34 = vector.extract_strided_slice %19 {offsets = [0, 384], sizes = [8, 128], strides = [1, 1]} : vector<8x512xf32> to vector<8x128xf32>
    %35 = arith.negf %34 : vector<8x128xf32>
    %36 = math.exp %35 : vector<8x128xf32>
    %cst_20 = arith.constant 1.000000e+00 : f32
    %37 = vector.broadcast %cst_20 : f32 to vector<8x128xf32>
    %38 = arith.addf %37, %36 : vector<8x128xf32>
    %39 = arith.divf %37, %38 : vector<8x128xf32>
    %c0_21 = arith.constant 0 : index
    %c0_22 = arith.constant 0 : index
    %40 = vector.load %arg13[%c0_21, %c0_22] : memref<8x128xf32, #tpu.memory_space<vmem>>, vector<8x128xf32>
    %41 = arith.mulf %31, %40 : vector<8x128xf32>
    %42 = arith.mulf %25, %33 : vector<8x128xf32>
    %43 = arith.addf %41, %42 : vector<8x128xf32>
    %44 = math.tanh %43 : vector<8x128xf32>
    %45 = arith.mulf %39, %44 : vector<8x128xf32>
    %c0_23 = arith.constant 0 : index
    %c0_24 = arith.constant 0 : index
    %46 = vector.load %arg13[%c0_23, %c0_24] : memref<8x128xf32, #tpu.memory_space<vmem>>, vector<8x128xf32>
    tpu.vector_store %arg13[%c0_23, %c0_24], %43 {strides = array<i32>} : memref<8x128xf32, #tpu.memory_space<vmem>>, vector<8x128xf32>,
    %c0_25 = arith.constant 0 : index
    %c0_26 = arith.constant 0 : index
    %47 = vector.load %arg12[%c0_25, %c0_26] : memref<8x128xf32, #tpu.memory_space<vmem>>, vector<8x128xf32>
    tpu.vector_store %arg12[%c0_25, %c0_26], %45 {strides = array<i32>} : memref<8x128xf32, #tpu.memory_space<vmem>>, vector<8x128xf32>,
    %48 = arith.truncf %45 : vector<8x128xf32> to vector<8x128xbf16>
    %c0_27 = arith.constant 0 : index
    %c0_28 = arith.constant 0 : index
    %49 = vector.load %arg5[%c0_27, %c0_28] : memref<128x512xbf16, #tpu.memory_space<vmem>>, vector<128x512xbf16>
    %cst_29 = arith.constant dense<0.000000e+00> : vector<8x512xf32>
    %50 = tpu.matmul %48, %49, %cst_29 {dimension_numbers = #tpu.dot_dimension_numbers<[1], [0], [0], [1], [0, 0, 1, 1], [], []>} : vector<8x128xbf16>, vector<128x512xbf16>, vector<8x512xf32> -> vector<8x512xf32>
    %c0_30 = arith.constant 0 : index
    %c0_31 = arith.constant 0 : index
    %51 = vector.load %arg14[%c0_30, %c0_31] : memref<8x128xf32, #tpu.memory_space<vmem>>, vector<8x128xf32>
    %52 = arith.truncf %51 : vector<8x128xf32> to vector<8x128xbf16>
    %c0_32 = arith.constant 0 : index
    %c0_33 = arith.constant 0 : index
    %53 = vector.load %arg6[%c0_32, %c0_33] : memref<128x512xbf16, #tpu.memory_space<vmem>>, vector<128x512xbf16>
    %cst_34 = arith.constant dense<0.000000e+00> : vector<8x512xf32>
    %54 = tpu.matmul %52, %53, %cst_34 {dimension_numbers = #tpu.dot_dimension_numbers<[1], [0], [0], [1], [0, 0, 1, 1], [], []>} : vector<8x128xbf16>, vector<128x512xbf16>, vector<8x512xf32> -> vector<8x512xf32>
    %55 = arith.addf %50, %54 : vector<8x512xf32>
    %c0_35 = arith.constant 0 : index
    %c0_36 = arith.constant 0 : index
    %56 = vector.load %arg7[%c0_35, %c0_36] : memref<1x512xf32, #tpu.memory_space<vmem>>, vector<1x512xf32>
    %57 = vector.broadcast %56 : vector<1x512xf32> to vector<8x512xf32>
    %58 = arith.addf %55, %57 : vector<8x512xf32>
    %59 = vector.extract_strided_slice %58 {offsets = [0, 0], sizes = [8, 128], strides = [1, 1]} : vector<8x512xf32> to vector<8x128xf32>
    %60 = arith.negf %59 : vector<8x128xf32>
    %61 = math.exp %60 : vector<8x128xf32>
    %cst_37 = arith.constant 1.000000e+00 : f32
    %62 = vector.broadcast %cst_37 : f32 to vector<8x128xf32>
    %63 = arith.addf %62, %61 : vector<8x128xf32>
    %64 = arith.divf %62, %63 : vector<8x128xf32>
    %65 = vector.extract_strided_slice %58 {offsets = [0, 128], sizes = [8, 128], strides = [1, 1]} : vector<8x512xf32> to vector<8x128xf32>
    %66 = arith.negf %65 : vector<8x128xf32>
    %67 = math.exp %66 : vector<8x128xf32>
    %cst_38 = arith.constant 1.000000e+00 : f32
    %68 = vector.broadcast %cst_38 : f32 to vector<8x128xf32>
    %69 = arith.addf %68, %67 : vector<8x128xf32>
    %70 = arith.divf %68, %69 : vector<8x128xf32>
    %71 = vector.extract_strided_slice %58 {offsets = [0, 256], sizes = [8, 128], strides = [1, 1]} : vector<8x512xf32> to vector<8x128xf32>
    %72 = math.tanh %71 : vector<8x128xf32>
    %73 = vector.extract_strided_slice %58 {offsets = [0, 384], sizes = [8, 128], strides = [1, 1]} : vector<8x512xf32> to vector<8x128xf32>
    %74 = arith.negf %73 : vector<8x128xf32>
    %75 = math.exp %74 : vector<8x128xf32>
    %cst_39 = arith.constant 1.000000e+00 : f32
    %76 = vector.broadcast %cst_39 : f32 to vector<8x128xf32>
    %77 = arith.addf %76, %75 : vector<8x128xf32>
    %78 = arith.divf %76, %77 : vector<8x128xf32>
    %c0_40 = arith.constant 0 : index
    %c0_41 = arith.constant 0 : index
    %79 = vector.load %arg15[%c0_40, %c0_41] : memref<8x128xf32, #tpu.memory_space<vmem>>, vector<8x128xf32>
    %80 = arith.mulf %70, %79 : vector<8x128xf32>
    %81 = arith.mulf %64, %72 : vector<8x128xf32>
    %82 = arith.addf %80, %81 : vector<8x128xf32>
    %83 = math.tanh %82 : vector<8x128xf32>
    %84 = arith.mulf %78, %83 : vector<8x128xf32>
    %c0_42 = arith.constant 0 : index
    %c0_43 = arith.constant 0 : index
    %85 = vector.load %arg15[%c0_42, %c0_43] : memref<8x128xf32, #tpu.memory_space<vmem>>, vector<8x128xf32>
    tpu.vector_store %arg15[%c0_42, %c0_43], %82 {strides = array<i32>} : memref<8x128xf32, #tpu.memory_space<vmem>>, vector<8x128xf32>,
    %c0_44 = arith.constant 0 : index
    %c0_45 = arith.constant 0 : index
    %86 = vector.load %arg14[%c0_44, %c0_45] : memref<8x128xf32, #tpu.memory_space<vmem>>, vector<8x128xf32>
    tpu.vector_store %arg14[%c0_44, %c0_45], %84 {strides = array<i32>} : memref<8x128xf32, #tpu.memory_space<vmem>>, vector<8x128xf32>,
    %c1 = arith.constant 1 : index
    %c0_46 = arith.constant 0 : index
    %c0_47 = arith.constant 0 : index
    %87 = vector.load %arg11[%c1, %c0_46, %c0_47] : memref<8x8x512xf32, #tpu.memory_space<vmem>>, vector<1x8x512xf32>
    %88 = vector.shape_cast %87 : vector<1x8x512xf32> to vector<8x512xf32>
    %c0_48 = arith.constant 0 : index
    %c0_49 = arith.constant 0 : index
    %89 = vector.load %arg12[%c0_48, %c0_49] : memref<8x128xf32, #tpu.memory_space<vmem>>, vector<8x128xf32>
    %90 = arith.truncf %89 : vector<8x128xf32> to vector<8x128xbf16>
    %c0_50 = arith.constant 0 : index
    %c0_51 = arith.constant 0 : index
    %91 = vector.load %arg3[%c0_50, %c0_51] : memref<128x512xbf16, #tpu.memory_space<vmem>>, vector<128x512xbf16>
    %cst_52 = arith.constant dense<0.000000e+00> : vector<8x512xf32>
    %92 = tpu.matmul %90, %91, %cst_52 {dimension_numbers = #tpu.dot_dimension_numbers<[1], [0], [0], [1], [0, 0, 1, 1], [], []>} : vector<8x128xbf16>, vector<128x512xbf16>, vector<8x512xf32> -> vector<8x512xf32>
    %93 = arith.addf %88, %92 : vector<8x512xf32>
    %94 = vector.extract_strided_slice %93 {offsets = [0, 0], sizes = [8, 128], strides = [1, 1]} : vector<8x512xf32> to vector<8x128xf32>
    %95 = arith.negf %94 : vector<8x128xf32>
    %96 = math.exp %95 : vector<8x128xf32>
    %cst_53 = arith.constant 1.000000e+00 : f32
    %97 = vector.broadcast %cst_53 : f32 to vector<8x128xf32>
    %98 = arith.addf %97, %96 : vector<8x128xf32>
    %99 = arith.divf %97, %98 : vector<8x128xf32>
    %100 = vector.extract_strided_slice %93 {offsets = [0, 128], sizes = [8, 128], strides = [1, 1]} : vector<8x512xf32> to vector<8x128xf32>
    %101 = arith.negf %100 : vector<8x128xf32>
    %102 = math.exp %101 : vector<8x128xf32>
    %cst_54 = arith.constant 1.000000e+00 : f32
    %103 = vector.broadcast %cst_54 : f32 to vector<8x128xf32>
    %104 = arith.addf %103, %102 : vector<8x128xf32>
    %105 = arith.divf %103, %104 : vector<8x128xf32>
    %106 = vector.extract_strided_slice %93 {offsets = [0, 256], sizes = [8, 128], strides = [1, 1]} : vector<8x512xf32> to vector<8x128xf32>
    %107 = math.tanh %106 : vector<8x128xf32>
    %108 = vector.extract_strided_slice %93 {offsets = [0, 384], sizes = [8, 128], strides = [1, 1]} : vector<8x512xf32> to vector<8x128xf32>
    %109 = arith.negf %108 : vector<8x128xf32>
    %110 = math.exp %109 : vector<8x128xf32>
    %cst_55 = arith.constant 1.000000e+00 : f32
    %111 = vector.broadcast %cst_55 : f32 to vector<8x128xf32>
    %112 = arith.addf %111, %110 : vector<8x128xf32>
    %113 = arith.divf %111, %112 : vector<8x128xf32>
    %c0_56 = arith.constant 0 : index
    %c0_57 = arith.constant 0 : index
    %114 = vector.load %arg13[%c0_56, %c0_57] : memref<8x128xf32, #tpu.memory_space<vmem>>, vector<8x128xf32>
    %115 = arith.mulf %105, %114 : vector<8x128xf32>
    %116 = arith.mulf %99, %107 : vector<8x128xf32>
    %117 = arith.addf %115, %116 : vector<8x128xf32>
    %118 = math.tanh %117 : vector<8x128xf32>
    %119 = arith.mulf %113, %118 : vector<8x128xf32>
    %c0_58 = arith.constant 0 : index
    %c0_59 = arith.constant 0 : index
    %120 = vector.load %arg13[%c0_58, %c0_59] : memref<8x128xf32, #tpu.memory_space<vmem>>, vector<8x128xf32>
    tpu.vector_store %arg13[%c0_58, %c0_59], %117 {strides = array<i32>} : memref<8x128xf32, #tpu.memory_space<vmem>>, vector<8x128xf32>,
    %c0_60 = arith.constant 0 : index
    %c0_61 = arith.constant 0 : index
    %121 = vector.load %arg12[%c0_60, %c0_61] : memref<8x128xf32, #tpu.memory_space<vmem>>, vector<8x128xf32>
    tpu.vector_store %arg12[%c0_60, %c0_61], %119 {strides = array<i32>} : memref<8x128xf32, #tpu.memory_space<vmem>>, vector<8x128xf32>,
    %122 = arith.truncf %119 : vector<8x128xf32> to vector<8x128xbf16>
    %c0_62 = arith.constant 0 : index
    %c0_63 = arith.constant 0 : index
    %123 = vector.load %arg5[%c0_62, %c0_63] : memref<128x512xbf16, #tpu.memory_space<vmem>>, vector<128x512xbf16>
    %cst_64 = arith.constant dense<0.000000e+00> : vector<8x512xf32>
    %124 = tpu.matmul %122, %123, %cst_64 {dimension_numbers = #tpu.dot_dimension_numbers<[1], [0], [0], [1], [0, 0, 1, 1], [], []>} : vector<8x128xbf16>, vector<128x512xbf16>, vector<8x512xf32> -> vector<8x512xf32>
    %c0_65 = arith.constant 0 : index
    %c0_66 = arith.constant 0 : index
    %125 = vector.load %arg14[%c0_65, %c0_66] : memref<8x128xf32, #tpu.memory_space<vmem>>, vector<8x128xf32>
    %126 = arith.truncf %125 : vector<8x128xf32> to vector<8x128xbf16>
    %c0_67 = arith.constant 0 : index
    %c0_68 = arith.constant 0 : index
    %127 = vector.load %arg6[%c0_67, %c0_68] : memref<128x512xbf16, #tpu.memory_space<vmem>>, vector<128x512xbf16>
    %cst_69 = arith.constant dense<0.000000e+00> : vector<8x512xf32>
    %128 = tpu.matmul %126, %127, %cst_69 {dimension_numbers = #tpu.dot_dimension_numbers<[1], [0], [0], [1], [0, 0, 1, 1], [], []>} : vector<8x128xbf16>, vector<128x512xbf16>, vector<8x512xf32> -> vector<8x512xf32>
    %129 = arith.addf %124, %128 : vector<8x512xf32>
    %c0_70 = arith.constant 0 : index
    %c0_71 = arith.constant 0 : index
    %130 = vector.load %arg7[%c0_70, %c0_71] : memref<1x512xf32, #tpu.memory_space<vmem>>, vector<1x512xf32>
    %131 = vector.broadcast %130 : vector<1x512xf32> to vector<8x512xf32>
    %132 = arith.addf %129, %131 : vector<8x512xf32>
    %133 = vector.extract_strided_slice %132 {offsets = [0, 0], sizes = [8, 128], strides = [1, 1]} : vector<8x512xf32> to vector<8x128xf32>
    %134 = arith.negf %133 : vector<8x128xf32>
    %135 = math.exp %134 : vector<8x128xf32>
    %cst_72 = arith.constant 1.000000e+00 : f32
    %136 = vector.broadcast %cst_72 : f32 to vector<8x128xf32>
    %137 = arith.addf %136, %135 : vector<8x128xf32>
    %138 = arith.divf %136, %137 : vector<8x128xf32>
    %139 = vector.extract_strided_slice %132 {offsets = [0, 128], sizes = [8, 128], strides = [1, 1]} : vector<8x512xf32> to vector<8x128xf32>
    %140 = arith.negf %139 : vector<8x128xf32>
    %141 = math.exp %140 : vector<8x128xf32>
    %cst_73 = arith.constant 1.000000e+00 : f32
    %142 = vector.broadcast %cst_73 : f32 to vector<8x128xf32>
    %143 = arith.addf %142, %141 : vector<8x128xf32>
    %144 = arith.divf %142, %143 : vector<8x128xf32>
    %145 = vector.extract_strided_slice %132 {offsets = [0, 256], sizes = [8, 128], strides = [1, 1]} : vector<8x512xf32> to vector<8x128xf32>
    %146 = math.tanh %145 : vector<8x128xf32>
    %147 = vector.extract_strided_slice %132 {offsets = [0, 384], sizes = [8, 128], strides = [1, 1]} : vector<8x512xf32> to vector<8x128xf32>
    %148 = arith.negf %147 : vector<8x128xf32>
    %149 = math.exp %148 : vector<8x128xf32>
    %cst_74 = arith.constant 1.000000e+00 : f32
    %150 = vector.broadcast %cst_74 : f32 to vector<8x128xf32>
    %151 = arith.addf %150, %149 : vector<8x128xf32>
    %152 = arith.divf %150, %151 : vector<8x128xf32>
    %c0_75 = arith.constant 0 : index
    %c0_76 = arith.constant 0 : index
    %153 = vector.load %arg15[%c0_75, %c0_76] : memref<8x128xf32, #tpu.memory_space<vmem>>, vector<8x128xf32>
    %154 = arith.mulf %144, %153 : vector<8x128xf32>
    %155 = arith.mulf %138, %146 : vector<8x128xf32>
    %156 = arith.addf %154, %155 : vector<8x128xf32>
    %157 = math.tanh %156 : vector<8x128xf32>
    %158 = arith.mulf %152, %157 : vector<8x128xf32>
    %c0_77 = arith.constant 0 : index
    %c0_78 = arith.constant 0 : index
    %159 = vector.load %arg15[%c0_77, %c0_78] : memref<8x128xf32, #tpu.memory_space<vmem>>, vector<8x128xf32>
    tpu.vector_store %arg15[%c0_77, %c0_78], %156 {strides = array<i32>} : memref<8x128xf32, #tpu.memory_space<vmem>>, vector<8x128xf32>,
    %c0_79 = arith.constant 0 : index
    %c0_80 = arith.constant 0 : index
    %160 = vector.load %arg14[%c0_79, %c0_80] : memref<8x128xf32, #tpu.memory_space<vmem>>, vector<8x128xf32>
    tpu.vector_store %arg14[%c0_79, %c0_80], %158 {strides = array<i32>} : memref<8x128xf32, #tpu.memory_space<vmem>>, vector<8x128xf32>,
    %c2 = arith.constant 2 : index
    %c0_81 = arith.constant 0 : index
    %c0_82 = arith.constant 0 : index
    %161 = vector.load %arg11[%c2, %c0_81, %c0_82] : memref<8x8x512xf32, #tpu.memory_space<vmem>>, vector<1x8x512xf32>
    %162 = vector.shape_cast %161 : vector<1x8x512xf32> to vector<8x512xf32>
    %c0_83 = arith.constant 0 : index
    %c0_84 = arith.constant 0 : index
    %163 = vector.load %arg12[%c0_83, %c0_84] : memref<8x128xf32, #tpu.memory_space<vmem>>, vector<8x128xf32>
    %164 = arith.truncf %163 : vector<8x128xf32> to vector<8x128xbf16>
    %c0_85 = arith.constant 0 : index
    %c0_86 = arith.constant 0 : index
    %165 = vector.load %arg3[%c0_85, %c0_86] : memref<128x512xbf16, #tpu.memory_space<vmem>>, vector<128x512xbf16>
    %cst_87 = arith.constant dense<0.000000e+00> : vector<8x512xf32>
    %166 = tpu.matmul %164, %165, %cst_87 {dimension_numbers = #tpu.dot_dimension_numbers<[1], [0], [0], [1], [0, 0, 1, 1], [], []>} : vector<8x128xbf16>, vector<128x512xbf16>, vector<8x512xf32> -> vector<8x512xf32>
    %167 = arith.addf %162, %166 : vector<8x512xf32>
    %168 = vector.extract_strided_slice %167 {offsets = [0, 0], sizes = [8, 128], strides = [1, 1]} : vector<8x512xf32> to vector<8x128xf32>
    %169 = arith.negf %168 : vector<8x128xf32>
    %170 = math.exp %169 : vector<8x128xf32>
    %cst_88 = arith.constant 1.000000e+00 : f32
    %171 = vector.broadcast %cst_88 : f32 to vector<8x128xf32>
    %172 = arith.addf %171, %170 : vector<8x128xf32>
    %173 = arith.divf %171, %172 : vector<8x128xf32>
    %174 = vector.extract_strided_slice %167 {offsets = [0, 128], sizes = [8, 128], strides = [1, 1]} : vector<8x512xf32> to vector<8x128xf32>
    %175 = arith.negf %174 : vector<8x128xf32>
    %176 = math.exp %175 : vector<8x128xf32>
    %cst_89 = arith.constant 1.000000e+00 : f32
    %177 = vector.broadcast %cst_89 : f32 to vector<8x128xf32>
    %178 = arith.addf %177, %176 : vector<8x128xf32>
    %179 = arith.divf %177, %178 : vector<8x128xf32>
    %180 = vector.extract_strided_slice %167 {offsets = [0, 256], sizes = [8, 128], strides = [1, 1]} : vector<8x512xf32> to vector<8x128xf32>
    %181 = math.tanh %180 : vector<8x128xf32>
    %182 = vector.extract_strided_slice %167 {offsets = [0, 384], sizes = [8, 128], strides = [1, 1]} : vector<8x512xf32> to vector<8x128xf32>
    %183 = arith.negf %182 : vector<8x128xf32>
    %184 = math.exp %183 : vector<8x128xf32>
    %cst_90 = arith.constant 1.000000e+00 : f32
    %185 = vector.broadcast %cst_90 : f32 to vector<8x128xf32>
    %186 = arith.addf %185, %184 : vector<8x128xf32>
    %187 = arith.divf %185, %186 : vector<8x128xf32>
    %c0_91 = arith.constant 0 : index
    %c0_92 = arith.constant 0 : index
    %188 = vector.load %arg13[%c0_91, %c0_92] : memref<8x128xf32, #tpu.memory_space<vmem>>, vector<8x128xf32>
    %189 = arith.mulf %179, %188 : vector<8x128xf32>
    %190 = arith.mulf %173, %181 : vector<8x128xf32>
    %191 = arith.addf %189, %190 : vector<8x128xf32>
    %192 = math.tanh %191 : vector<8x128xf32>
    %193 = arith.mulf %187, %192 : vector<8x128xf32>
    %c0_93 = arith.constant 0 : index
    %c0_94 = arith.constant 0 : index
    %194 = vector.load %arg13[%c0_93, %c0_94] : memref<8x128xf32, #tpu.memory_space<vmem>>, vector<8x128xf32>
    tpu.vector_store %arg13[%c0_93, %c0_94], %191 {strides = array<i32>} : memref<8x128xf32, #tpu.memory_space<vmem>>, vector<8x128xf32>,
    %c0_95 = arith.constant 0 : index
    %c0_96 = arith.constant 0 : index
    %195 = vector.load %arg12[%c0_95, %c0_96] : memref<8x128xf32, #tpu.memory_space<vmem>>, vector<8x128xf32>
    tpu.vector_store %arg12[%c0_95, %c0_96], %193 {strides = array<i32>} : memref<8x128xf32, #tpu.memory_space<vmem>>, vector<8x128xf32>,
    %196 = arith.truncf %193 : vector<8x128xf32> to vector<8x128xbf16>
    %c0_97 = arith.constant 0 : index
    %c0_98 = arith.constant 0 : index
    %197 = vector.load %arg5[%c0_97, %c0_98] : memref<128x512xbf16, #tpu.memory_space<vmem>>, vector<128x512xbf16>
    %cst_99 = arith.constant dense<0.000000e+00> : vector<8x512xf32>
    %198 = tpu.matmul %196, %197, %cst_99 {dimension_numbers = #tpu.dot_dimension_numbers<[1], [0], [0], [1], [0, 0, 1, 1], [], []>} : vector<8x128xbf16>, vector<128x512xbf16>, vector<8x512xf32> -> vector<8x512xf32>
    %c0_100 = arith.constant 0 : index
    %c0_101 = arith.constant 0 : index
    %199 = vector.load %arg14[%c0_100, %c0_101] : memref<8x128xf32, #tpu.memory_space<vmem>>, vector<8x128xf32>
    %200 = arith.truncf %199 : vector<8x128xf32> to vector<8x128xbf16>
    %c0_102 = arith.constant 0 : index
    %c0_103 = arith.constant 0 : index
    %201 = vector.load %arg6[%c0_102, %c0_103] : memref<128x512xbf16, #tpu.memory_space<vmem>>, vector<128x512xbf16>
    %cst_104 = arith.constant dense<0.000000e+00> : vector<8x512xf32>
    %202 = tpu.matmul %200, %201, %cst_104 {dimension_numbers = #tpu.dot_dimension_numbers<[1], [0], [0], [1], [0, 0, 1, 1], [], []>} : vector<8x128xbf16>, vector<128x512xbf16>, vector<8x512xf32> -> vector<8x512xf32>
    %203 = arith.addf %198, %202 : vector<8x512xf32>
    %c0_105 = arith.constant 0 : index
    %c0_106 = arith.constant 0 : index
    %204 = vector.load %arg7[%c0_105, %c0_106] : memref<1x512xf32, #tpu.memory_space<vmem>>, vector<1x512xf32>
    %205 = vector.broadcast %204 : vector<1x512xf32> to vector<8x512xf32>
    %206 = arith.addf %203, %205 : vector<8x512xf32>
    %207 = vector.extract_strided_slice %206 {offsets = [0, 0], sizes = [8, 128], strides = [1, 1]} : vector<8x512xf32> to vector<8x128xf32>
    %208 = arith.negf %207 : vector<8x128xf32>
    %209 = math.exp %208 : vector<8x128xf32>
    %cst_107 = arith.constant 1.000000e+00 : f32
    %210 = vector.broadcast %cst_107 : f32 to vector<8x128xf32>
    %211 = arith.addf %210, %209 : vector<8x128xf32>
    %212 = arith.divf %210, %211 : vector<8x128xf32>
    %213 = vector.extract_strided_slice %206 {offsets = [0, 128], sizes = [8, 128], strides = [1, 1]} : vector<8x512xf32> to vector<8x128xf32>
    %214 = arith.negf %213 : vector<8x128xf32>
    %215 = math.exp %214 : vector<8x128xf32>
    %cst_108 = arith.constant 1.000000e+00 : f32
    %216 = vector.broadcast %cst_108 : f32 to vector<8x128xf32>
    %217 = arith.addf %216, %215 : vector<8x128xf32>
    %218 = arith.divf %216, %217 : vector<8x128xf32>
    %219 = vector.extract_strided_slice %206 {offsets = [0, 256], sizes = [8, 128], strides = [1, 1]} : vector<8x512xf32> to vector<8x128xf32>
    %220 = math.tanh %219 : vector<8x128xf32>
    %221 = vector.extract_strided_slice %206 {offsets = [0, 384], sizes = [8, 128], strides = [1, 1]} : vector<8x512xf32> to vector<8x128xf32>
    %222 = arith.negf %221 : vector<8x128xf32>
    %223 = math.exp %222 : vector<8x128xf32>
    %cst_109 = arith.constant 1.000000e+00 : f32
    %224 = vector.broadcast %cst_109 : f32 to vector<8x128xf32>
    %225 = arith.addf %224, %223 : vector<8x128xf32>
    %226 = arith.divf %224, %225 : vector<8x128xf32>
    %c0_110 = arith.constant 0 : index
    %c0_111 = arith.constant 0 : index
    %227 = vector.load %arg15[%c0_110, %c0_111] : memref<8x128xf32, #tpu.memory_space<vmem>>, vector<8x128xf32>
    %228 = arith.mulf %218, %227 : vector<8x128xf32>
    %229 = arith.mulf %212, %220 : vector<8x128xf32>
    %230 = arith.addf %228, %229 : vector<8x128xf32>
    %231 = math.tanh %230 : vector<8x128xf32>
    %232 = arith.mulf %226, %231 : vector<8x128xf32>
    %c0_112 = arith.constant 0 : index
    %c0_113 = arith.constant 0 : index
    %233 = vector.load %arg15[%c0_112, %c0_113] : memref<8x128xf32, #tpu.memory_space<vmem>>, vector<8x128xf32>
    tpu.vector_store %arg15[%c0_112, %c0_113], %230 {strides = array<i32>} : memref<8x128xf32, #tpu.memory_space<vmem>>, vector<8x128xf32>,
    %c0_114 = arith.constant 0 : index
    %c0_115 = arith.constant 0 : index
    %234 = vector.load %arg14[%c0_114, %c0_115] : memref<8x128xf32, #tpu.memory_space<vmem>>, vector<8x128xf32>
    tpu.vector_store %arg14[%c0_114, %c0_115], %232 {strides = array<i32>} : memref<8x128xf32, #tpu.memory_space<vmem>>, vector<8x128xf32>,
    %c3 = arith.constant 3 : index
    %c0_116 = arith.constant 0 : index
    %c0_117 = arith.constant 0 : index
    %235 = vector.load %arg11[%c3, %c0_116, %c0_117] : memref<8x8x512xf32, #tpu.memory_space<vmem>>, vector<1x8x512xf32>
    %236 = vector.shape_cast %235 : vector<1x8x512xf32> to vector<8x512xf32>
    %c0_118 = arith.constant 0 : index
    %c0_119 = arith.constant 0 : index
    %237 = vector.load %arg12[%c0_118, %c0_119] : memref<8x128xf32, #tpu.memory_space<vmem>>, vector<8x128xf32>
    %238 = arith.truncf %237 : vector<8x128xf32> to vector<8x128xbf16>
    %c0_120 = arith.constant 0 : index
    %c0_121 = arith.constant 0 : index
    %239 = vector.load %arg3[%c0_120, %c0_121] : memref<128x512xbf16, #tpu.memory_space<vmem>>, vector<128x512xbf16>
    %cst_122 = arith.constant dense<0.000000e+00> : vector<8x512xf32>
    %240 = tpu.matmul %238, %239, %cst_122 {dimension_numbers = #tpu.dot_dimension_numbers<[1], [0], [0], [1], [0, 0, 1, 1], [], []>} : vector<8x128xbf16>, vector<128x512xbf16>, vector<8x512xf32> -> vector<8x512xf32>
    %241 = arith.addf %236, %240 : vector<8x512xf32>
    %242 = vector.extract_strided_slice %241 {offsets = [0, 0], sizes = [8, 128], strides = [1, 1]} : vector<8x512xf32> to vector<8x128xf32>
    %243 = arith.negf %242 : vector<8x128xf32>
    %244 = math.exp %243 : vector<8x128xf32>
    %cst_123 = arith.constant 1.000000e+00 : f32
    %245 = vector.broadcast %cst_123 : f32 to vector<8x128xf32>
    %246 = arith.addf %245, %244 : vector<8x128xf32>
    %247 = arith.divf %245, %246 : vector<8x128xf32>
    %248 = vector.extract_strided_slice %241 {offsets = [0, 128], sizes = [8, 128], strides = [1, 1]} : vector<8x512xf32> to vector<8x128xf32>
    %249 = arith.negf %248 : vector<8x128xf32>
    %250 = math.exp %249 : vector<8x128xf32>
    %cst_124 = arith.constant 1.000000e+00 : f32
    %251 = vector.broadcast %cst_124 : f32 to vector<8x128xf32>
    %252 = arith.addf %251, %250 : vector<8x128xf32>
    %253 = arith.divf %251, %252 : vector<8x128xf32>
    %254 = vector.extract_strided_slice %241 {offsets = [0, 256], sizes = [8, 128], strides = [1, 1]} : vector<8x512xf32> to vector<8x128xf32>
    %255 = math.tanh %254 : vector<8x128xf32>
    %256 = vector.extract_strided_slice %241 {offsets = [0, 384], sizes = [8, 128], strides = [1, 1]} : vector<8x512xf32> to vector<8x128xf32>
    %257 = arith.negf %256 : vector<8x128xf32>
    %258 = math.exp %257 : vector<8x128xf32>
    %cst_125 = arith.constant 1.000000e+00 : f32
    %259 = vector.broadcast %cst_125 : f32 to vector<8x128xf32>
    %260 = arith.addf %259, %258 : vector<8x128xf32>
    %261 = arith.divf %259, %260 : vector<8x128xf32>
    %c0_126 = arith.constant 0 : index
    %c0_127 = arith.constant 0 : index
    %262 = vector.load %arg13[%c0_126, %c0_127] : memref<8x128xf32, #tpu.memory_space<vmem>>, vector<8x128xf32>
    %263 = arith.mulf %253, %262 : vector<8x128xf32>
    %264 = arith.mulf %247, %255 : vector<8x128xf32>
    %265 = arith.addf %263, %264 : vector<8x128xf32>
    %266 = math.tanh %265 : vector<8x128xf32>
    %267 = arith.mulf %261, %266 : vector<8x128xf32>
    %c0_128 = arith.constant 0 : index
    %c0_129 = arith.constant 0 : index
    %268 = vector.load %arg13[%c0_128, %c0_129] : memref<8x128xf32, #tpu.memory_space<vmem>>, vector<8x128xf32>
    tpu.vector_store %arg13[%c0_128, %c0_129], %265 {strides = array<i32>} : memref<8x128xf32, #tpu.memory_space<vmem>>, vector<8x128xf32>,
    %c0_130 = arith.constant 0 : index
    %c0_131 = arith.constant 0 : index
    %269 = vector.load %arg12[%c0_130, %c0_131] : memref<8x128xf32, #tpu.memory_space<vmem>>, vector<8x128xf32>
    tpu.vector_store %arg12[%c0_130, %c0_131], %267 {strides = array<i32>} : memref<8x128xf32, #tpu.memory_space<vmem>>, vector<8x128xf32>,
    %270 = arith.truncf %267 : vector<8x128xf32> to vector<8x128xbf16>
    %c0_132 = arith.constant 0 : index
    %c0_133 = arith.constant 0 : index
    %271 = vector.load %arg5[%c0_132, %c0_133] : memref<128x512xbf16, #tpu.memory_space<vmem>>, vector<128x512xbf16>
    %cst_134 = arith.constant dense<0.000000e+00> : vector<8x512xf32>
    %272 = tpu.matmul %270, %271, %cst_134 {dimension_numbers = #tpu.dot_dimension_numbers<[1], [0], [0], [1], [0, 0, 1, 1], [], []>} : vector<8x128xbf16>, vector<128x512xbf16>, vector<8x512xf32> -> vector<8x512xf32>
    %c0_135 = arith.constant 0 : index
    %c0_136 = arith.constant 0 : index
    %273 = vector.load %arg14[%c0_135, %c0_136] : memref<8x128xf32, #tpu.memory_space<vmem>>, vector<8x128xf32>
    %274 = arith.truncf %273 : vector<8x128xf32> to vector<8x128xbf16>
    %c0_137 = arith.constant 0 : index
    %c0_138 = arith.constant 0 : index
    %275 = vector.load %arg6[%c0_137, %c0_138] : memref<128x512xbf16, #tpu.memory_space<vmem>>, vector<128x512xbf16>
    %cst_139 = arith.constant dense<0.000000e+00> : vector<8x512xf32>
    %276 = tpu.matmul %274, %275, %cst_139 {dimension_numbers = #tpu.dot_dimension_numbers<[1], [0], [0], [1], [0, 0, 1, 1], [], []>} : vector<8x128xbf16>, vector<128x512xbf16>, vector<8x512xf32> -> vector<8x512xf32>
    %277 = arith.addf %272, %276 : vector<8x512xf32>
    %c0_140 = arith.constant 0 : index
    %c0_141 = arith.constant 0 : index
    %278 = vector.load %arg7[%c0_140, %c0_141] : memref<1x512xf32, #tpu.memory_space<vmem>>, vector<1x512xf32>
    %279 = vector.broadcast %278 : vector<1x512xf32> to vector<8x512xf32>
    %280 = arith.addf %277, %279 : vector<8x512xf32>
    %281 = vector.extract_strided_slice %280 {offsets = [0, 0], sizes = [8, 128], strides = [1, 1]} : vector<8x512xf32> to vector<8x128xf32>
    %282 = arith.negf %281 : vector<8x128xf32>
    %283 = math.exp %282 : vector<8x128xf32>
    %cst_142 = arith.constant 1.000000e+00 : f32
    %284 = vector.broadcast %cst_142 : f32 to vector<8x128xf32>
    %285 = arith.addf %284, %283 : vector<8x128xf32>
    %286 = arith.divf %284, %285 : vector<8x128xf32>
    %287 = vector.extract_strided_slice %280 {offsets = [0, 128], sizes = [8, 128], strides = [1, 1]} : vector<8x512xf32> to vector<8x128xf32>
    %288 = arith.negf %287 : vector<8x128xf32>
    %289 = math.exp %288 : vector<8x128xf32>
    %cst_143 = arith.constant 1.000000e+00 : f32
    %290 = vector.broadcast %cst_143 : f32 to vector<8x128xf32>
    %291 = arith.addf %290, %289 : vector<8x128xf32>
    %292 = arith.divf %290, %291 : vector<8x128xf32>
    %293 = vector.extract_strided_slice %280 {offsets = [0, 256], sizes = [8, 128], strides = [1, 1]} : vector<8x512xf32> to vector<8x128xf32>
    %294 = math.tanh %293 : vector<8x128xf32>
    %295 = vector.extract_strided_slice %280 {offsets = [0, 384], sizes = [8, 128], strides = [1, 1]} : vector<8x512xf32> to vector<8x128xf32>
    %296 = arith.negf %295 : vector<8x128xf32>
    %297 = math.exp %296 : vector<8x128xf32>
    %cst_144 = arith.constant 1.000000e+00 : f32
    %298 = vector.broadcast %cst_144 : f32 to vector<8x128xf32>
    %299 = arith.addf %298, %297 : vector<8x128xf32>
    %300 = arith.divf %298, %299 : vector<8x128xf32>
    %c0_145 = arith.constant 0 : index
    %c0_146 = arith.constant 0 : index
    %301 = vector.load %arg15[%c0_145, %c0_146] : memref<8x128xf32, #tpu.memory_space<vmem>>, vector<8x128xf32>
    %302 = arith.mulf %292, %301 : vector<8x128xf32>
    %303 = arith.mulf %286, %294 : vector<8x128xf32>
    %304 = arith.addf %302, %303 : vector<8x128xf32>
    %305 = math.tanh %304 : vector<8x128xf32>
    %306 = arith.mulf %300, %305 : vector<8x128xf32>
    %c0_147 = arith.constant 0 : index
    %c0_148 = arith.constant 0 : index
    %307 = vector.load %arg15[%c0_147, %c0_148] : memref<8x128xf32, #tpu.memory_space<vmem>>, vector<8x128xf32>
    tpu.vector_store %arg15[%c0_147, %c0_148], %304 {strides = array<i32>} : memref<8x128xf32, #tpu.memory_space<vmem>>, vector<8x128xf32>,
    %c0_149 = arith.constant 0 : index
    %c0_150 = arith.constant 0 : index
    %308 = vector.load %arg14[%c0_149, %c0_150] : memref<8x128xf32, #tpu.memory_space<vmem>>, vector<8x128xf32>
    tpu.vector_store %arg14[%c0_149, %c0_150], %306 {strides = array<i32>} : memref<8x128xf32, #tpu.memory_space<vmem>>, vector<8x128xf32>,
    %c4 = arith.constant 4 : index
    %c0_151 = arith.constant 0 : index
    %c0_152 = arith.constant 0 : index
    %309 = vector.load %arg11[%c4, %c0_151, %c0_152] : memref<8x8x512xf32, #tpu.memory_space<vmem>>, vector<1x8x512xf32>
    %310 = vector.shape_cast %309 : vector<1x8x512xf32> to vector<8x512xf32>
    %c0_153 = arith.constant 0 : index
    %c0_154 = arith.constant 0 : index
    %311 = vector.load %arg12[%c0_153, %c0_154] : memref<8x128xf32, #tpu.memory_space<vmem>>, vector<8x128xf32>
    %312 = arith.truncf %311 : vector<8x128xf32> to vector<8x128xbf16>
    %c0_155 = arith.constant 0 : index
    %c0_156 = arith.constant 0 : index
    %313 = vector.load %arg3[%c0_155, %c0_156] : memref<128x512xbf16, #tpu.memory_space<vmem>>, vector<128x512xbf16>
    %cst_157 = arith.constant dense<0.000000e+00> : vector<8x512xf32>
    %314 = tpu.matmul %312, %313, %cst_157 {dimension_numbers = #tpu.dot_dimension_numbers<[1], [0], [0], [1], [0, 0, 1, 1], [], []>} : vector<8x128xbf16>, vector<128x512xbf16>, vector<8x512xf32> -> vector<8x512xf32>
    %315 = arith.addf %310, %314 : vector<8x512xf32>
    %316 = vector.extract_strided_slice %315 {offsets = [0, 0], sizes = [8, 128], strides = [1, 1]} : vector<8x512xf32> to vector<8x128xf32>
    %317 = arith.negf %316 : vector<8x128xf32>
    %318 = math.exp %317 : vector<8x128xf32>
    %cst_158 = arith.constant 1.000000e+00 : f32
    %319 = vector.broadcast %cst_158 : f32 to vector<8x128xf32>
    %320 = arith.addf %319, %318 : vector<8x128xf32>
    %321 = arith.divf %319, %320 : vector<8x128xf32>
    %322 = vector.extract_strided_slice %315 {offsets = [0, 128], sizes = [8, 128], strides = [1, 1]} : vector<8x512xf32> to vector<8x128xf32>
    %323 = arith.negf %322 : vector<8x128xf32>
    %324 = math.exp %323 : vector<8x128xf32>
    %cst_159 = arith.constant 1.000000e+00 : f32
    %325 = vector.broadcast %cst_159 : f32 to vector<8x128xf32>
    %326 = arith.addf %325, %324 : vector<8x128xf32>
    %327 = arith.divf %325, %326 : vector<8x128xf32>
    %328 = vector.extract_strided_slice %315 {offsets = [0, 256], sizes = [8, 128], strides = [1, 1]} : vector<8x512xf32> to vector<8x128xf32>
    %329 = math.tanh %328 : vector<8x128xf32>
    %330 = vector.extract_strided_slice %315 {offsets = [0, 384], sizes = [8, 128], strides = [1, 1]} : vector<8x512xf32> to vector<8x128xf32>
    %331 = arith.negf %330 : vector<8x128xf32>
    %332 = math.exp %331 : vector<8x128xf32>
    %cst_160 = arith.constant 1.000000e+00 : f32
    %333 = vector.broadcast %cst_160 : f32 to vector<8x128xf32>
    %334 = arith.addf %333, %332 : vector<8x128xf32>
    %335 = arith.divf %333, %334 : vector<8x128xf32>
    %c0_161 = arith.constant 0 : index
    %c0_162 = arith.constant 0 : index
    %336 = vector.load %arg13[%c0_161, %c0_162] : memref<8x128xf32, #tpu.memory_space<vmem>>, vector<8x128xf32>
    %337 = arith.mulf %327, %336 : vector<8x128xf32>
    %338 = arith.mulf %321, %329 : vector<8x128xf32>
    %339 = arith.addf %337, %338 : vector<8x128xf32>
    %340 = math.tanh %339 : vector<8x128xf32>
    %341 = arith.mulf %335, %340 : vector<8x128xf32>
    %c0_163 = arith.constant 0 : index
    %c0_164 = arith.constant 0 : index
    %342 = vector.load %arg13[%c0_163, %c0_164] : memref<8x128xf32, #tpu.memory_space<vmem>>, vector<8x128xf32>
    tpu.vector_store %arg13[%c0_163, %c0_164], %339 {strides = array<i32>} : memref<8x128xf32, #tpu.memory_space<vmem>>, vector<8x128xf32>,
    %c0_165 = arith.constant 0 : index
    %c0_166 = arith.constant 0 : index
    %343 = vector.load %arg12[%c0_165, %c0_166] : memref<8x128xf32, #tpu.memory_space<vmem>>, vector<8x128xf32>
    tpu.vector_store %arg12[%c0_165, %c0_166], %341 {strides = array<i32>} : memref<8x128xf32, #tpu.memory_space<vmem>>, vector<8x128xf32>,
    %344 = arith.truncf %341 : vector<8x128xf32> to vector<8x128xbf16>
    %c0_167 = arith.constant 0 : index
    %c0_168 = arith.constant 0 : index
    %345 = vector.load %arg5[%c0_167, %c0_168] : memref<128x512xbf16, #tpu.memory_space<vmem>>, vector<128x512xbf16>
    %cst_169 = arith.constant dense<0.000000e+00> : vector<8x512xf32>
    %346 = tpu.matmul %344, %345, %cst_169 {dimension_numbers = #tpu.dot_dimension_numbers<[1], [0], [0], [1], [0, 0, 1, 1], [], []>} : vector<8x128xbf16>, vector<128x512xbf16>, vector<8x512xf32> -> vector<8x512xf32>
    %c0_170 = arith.constant 0 : index
    %c0_171 = arith.constant 0 : index
    %347 = vector.load %arg14[%c0_170, %c0_171] : memref<8x128xf32, #tpu.memory_space<vmem>>, vector<8x128xf32>
    %348 = arith.truncf %347 : vector<8x128xf32> to vector<8x128xbf16>
    %c0_172 = arith.constant 0 : index
    %c0_173 = arith.constant 0 : index
    %349 = vector.load %arg6[%c0_172, %c0_173] : memref<128x512xbf16, #tpu.memory_space<vmem>>, vector<128x512xbf16>
    %cst_174 = arith.constant dense<0.000000e+00> : vector<8x512xf32>
    %350 = tpu.matmul %348, %349, %cst_174 {dimension_numbers = #tpu.dot_dimension_numbers<[1], [0], [0], [1], [0, 0, 1, 1], [], []>} : vector<8x128xbf16>, vector<128x512xbf16>, vector<8x512xf32> -> vector<8x512xf32>
    %351 = arith.addf %346, %350 : vector<8x512xf32>
    %c0_175 = arith.constant 0 : index
    %c0_176 = arith.constant 0 : index
    %352 = vector.load %arg7[%c0_175, %c0_176] : memref<1x512xf32, #tpu.memory_space<vmem>>, vector<1x512xf32>
    %353 = vector.broadcast %352 : vector<1x512xf32> to vector<8x512xf32>
    %354 = arith.addf %351, %353 : vector<8x512xf32>
    %355 = vector.extract_strided_slice %354 {offsets = [0, 0], sizes = [8, 128], strides = [1, 1]} : vector<8x512xf32> to vector<8x128xf32>
    %356 = arith.negf %355 : vector<8x128xf32>
    %357 = math.exp %356 : vector<8x128xf32>
    %cst_177 = arith.constant 1.000000e+00 : f32
    %358 = vector.broadcast %cst_177 : f32 to vector<8x128xf32>
    %359 = arith.addf %358, %357 : vector<8x128xf32>
    %360 = arith.divf %358, %359 : vector<8x128xf32>
    %361 = vector.extract_strided_slice %354 {offsets = [0, 128], sizes = [8, 128], strides = [1, 1]} : vector<8x512xf32> to vector<8x128xf32>
    %362 = arith.negf %361 : vector<8x128xf32>
    %363 = math.exp %362 : vector<8x128xf32>
    %cst_178 = arith.constant 1.000000e+00 : f32
    %364 = vector.broadcast %cst_178 : f32 to vector<8x128xf32>
    %365 = arith.addf %364, %363 : vector<8x128xf32>
    %366 = arith.divf %364, %365 : vector<8x128xf32>
    %367 = vector.extract_strided_slice %354 {offsets = [0, 256], sizes = [8, 128], strides = [1, 1]} : vector<8x512xf32> to vector<8x128xf32>
    %368 = math.tanh %367 : vector<8x128xf32>
    %369 = vector.extract_strided_slice %354 {offsets = [0, 384], sizes = [8, 128], strides = [1, 1]} : vector<8x512xf32> to vector<8x128xf32>
    %370 = arith.negf %369 : vector<8x128xf32>
    %371 = math.exp %370 : vector<8x128xf32>
    %cst_179 = arith.constant 1.000000e+00 : f32
    %372 = vector.broadcast %cst_179 : f32 to vector<8x128xf32>
    %373 = arith.addf %372, %371 : vector<8x128xf32>
    %374 = arith.divf %372, %373 : vector<8x128xf32>
    %c0_180 = arith.constant 0 : index
    %c0_181 = arith.constant 0 : index
    %375 = vector.load %arg15[%c0_180, %c0_181] : memref<8x128xf32, #tpu.memory_space<vmem>>, vector<8x128xf32>
    %376 = arith.mulf %366, %375 : vector<8x128xf32>
    %377 = arith.mulf %360, %368 : vector<8x128xf32>
    %378 = arith.addf %376, %377 : vector<8x128xf32>
    %379 = math.tanh %378 : vector<8x128xf32>
    %380 = arith.mulf %374, %379 : vector<8x128xf32>
    %c0_182 = arith.constant 0 : index
    %c0_183 = arith.constant 0 : index
    %381 = vector.load %arg15[%c0_182, %c0_183] : memref<8x128xf32, #tpu.memory_space<vmem>>, vector<8x128xf32>
    tpu.vector_store %arg15[%c0_182, %c0_183], %378 {strides = array<i32>} : memref<8x128xf32, #tpu.memory_space<vmem>>, vector<8x128xf32>,
    %c0_184 = arith.constant 0 : index
    %c0_185 = arith.constant 0 : index
    %382 = vector.load %arg14[%c0_184, %c0_185] : memref<8x128xf32, #tpu.memory_space<vmem>>, vector<8x128xf32>
    tpu.vector_store %arg14[%c0_184, %c0_185], %380 {strides = array<i32>} : memref<8x128xf32, #tpu.memory_space<vmem>>, vector<8x128xf32>,
    %c5 = arith.constant 5 : index
    %c0_186 = arith.constant 0 : index
    %c0_187 = arith.constant 0 : index
    %383 = vector.load %arg11[%c5, %c0_186, %c0_187] : memref<8x8x512xf32, #tpu.memory_space<vmem>>, vector<1x8x512xf32>
    %384 = vector.shape_cast %383 : vector<1x8x512xf32> to vector<8x512xf32>
    %c0_188 = arith.constant 0 : index
    %c0_189 = arith.constant 0 : index
    %385 = vector.load %arg12[%c0_188, %c0_189] : memref<8x128xf32, #tpu.memory_space<vmem>>, vector<8x128xf32>
    %386 = arith.truncf %385 : vector<8x128xf32> to vector<8x128xbf16>
    %c0_190 = arith.constant 0 : index
    %c0_191 = arith.constant 0 : index
    %387 = vector.load %arg3[%c0_190, %c0_191] : memref<128x512xbf16, #tpu.memory_space<vmem>>, vector<128x512xbf16>
    %cst_192 = arith.constant dense<0.000000e+00> : vector<8x512xf32>
    %388 = tpu.matmul %386, %387, %cst_192 {dimension_numbers = #tpu.dot_dimension_numbers<[1], [0], [0], [1], [0, 0, 1, 1], [], []>} : vector<8x128xbf16>, vector<128x512xbf16>, vector<8x512xf32> -> vector<8x512xf32>
    %389 = arith.addf %384, %388 : vector<8x512xf32>
    %390 = vector.extract_strided_slice %389 {offsets = [0, 0], sizes = [8, 128], strides = [1, 1]} : vector<8x512xf32> to vector<8x128xf32>
    %391 = arith.negf %390 : vector<8x128xf32>
    %392 = math.exp %391 : vector<8x128xf32>
    %cst_193 = arith.constant 1.000000e+00 : f32
    %393 = vector.broadcast %cst_193 : f32 to vector<8x128xf32>
    %394 = arith.addf %393, %392 : vector<8x128xf32>
    %395 = arith.divf %393, %394 : vector<8x128xf32>
    %396 = vector.extract_strided_slice %389 {offsets = [0, 128], sizes = [8, 128], strides = [1, 1]} : vector<8x512xf32> to vector<8x128xf32>
    %397 = arith.negf %396 : vector<8x128xf32>
    %398 = math.exp %397 : vector<8x128xf32>
    %cst_194 = arith.constant 1.000000e+00 : f32
    %399 = vector.broadcast %cst_194 : f32 to vector<8x128xf32>
    %400 = arith.addf %399, %398 : vector<8x128xf32>
    %401 = arith.divf %399, %400 : vector<8x128xf32>
    %402 = vector.extract_strided_slice %389 {offsets = [0, 256], sizes = [8, 128], strides = [1, 1]} : vector<8x512xf32> to vector<8x128xf32>
    %403 = math.tanh %402 : vector<8x128xf32>
    %404 = vector.extract_strided_slice %389 {offsets = [0, 384], sizes = [8, 128], strides = [1, 1]} : vector<8x512xf32> to vector<8x128xf32>
    %405 = arith.negf %404 : vector<8x128xf32>
    %406 = math.exp %405 : vector<8x128xf32>
    %cst_195 = arith.constant 1.000000e+00 : f32
    %407 = vector.broadcast %cst_195 : f32 to vector<8x128xf32>
    %408 = arith.addf %407, %406 : vector<8x128xf32>
    %409 = arith.divf %407, %408 : vector<8x128xf32>
    %c0_196 = arith.constant 0 : index
    %c0_197 = arith.constant 0 : index
    %410 = vector.load %arg13[%c0_196, %c0_197] : memref<8x128xf32, #tpu.memory_space<vmem>>, vector<8x128xf32>
    %411 = arith.mulf %401, %410 : vector<8x128xf32>
    %412 = arith.mulf %395, %403 : vector<8x128xf32>
    %413 = arith.addf %411, %412 : vector<8x128xf32>
    %414 = math.tanh %413 : vector<8x128xf32>
    %415 = arith.mulf %409, %414 : vector<8x128xf32>
    %c0_198 = arith.constant 0 : index
    %c0_199 = arith.constant 0 : index
    %416 = vector.load %arg13[%c0_198, %c0_199] : memref<8x128xf32, #tpu.memory_space<vmem>>, vector<8x128xf32>
    tpu.vector_store %arg13[%c0_198, %c0_199], %413 {strides = array<i32>} : memref<8x128xf32, #tpu.memory_space<vmem>>, vector<8x128xf32>,
    %c0_200 = arith.constant 0 : index
    %c0_201 = arith.constant 0 : index
    %417 = vector.load %arg12[%c0_200, %c0_201] : memref<8x128xf32, #tpu.memory_space<vmem>>, vector<8x128xf32>
    tpu.vector_store %arg12[%c0_200, %c0_201], %415 {strides = array<i32>} : memref<8x128xf32, #tpu.memory_space<vmem>>, vector<8x128xf32>,
    %418 = arith.truncf %415 : vector<8x128xf32> to vector<8x128xbf16>
    %c0_202 = arith.constant 0 : index
    %c0_203 = arith.constant 0 : index
    %419 = vector.load %arg5[%c0_202, %c0_203] : memref<128x512xbf16, #tpu.memory_space<vmem>>, vector<128x512xbf16>
    %cst_204 = arith.constant dense<0.000000e+00> : vector<8x512xf32>
    %420 = tpu.matmul %418, %419, %cst_204 {dimension_numbers = #tpu.dot_dimension_numbers<[1], [0], [0], [1], [0, 0, 1, 1], [], []>} : vector<8x128xbf16>, vector<128x512xbf16>, vector<8x512xf32> -> vector<8x512xf32>
    %c0_205 = arith.constant 0 : index
    %c0_206 = arith.constant 0 : index
    %421 = vector.load %arg14[%c0_205, %c0_206] : memref<8x128xf32, #tpu.memory_space<vmem>>, vector<8x128xf32>
    %422 = arith.truncf %421 : vector<8x128xf32> to vector<8x128xbf16>
    %c0_207 = arith.constant 0 : index
    %c0_208 = arith.constant 0 : index
    %423 = vector.load %arg6[%c0_207, %c0_208] : memref<128x512xbf16, #tpu.memory_space<vmem>>, vector<128x512xbf16>
    %cst_209 = arith.constant dense<0.000000e+00> : vector<8x512xf32>
    %424 = tpu.matmul %422, %423, %cst_209 {dimension_numbers = #tpu.dot_dimension_numbers<[1], [0], [0], [1], [0, 0, 1, 1], [], []>} : vector<8x128xbf16>, vector<128x512xbf16>, vector<8x512xf32> -> vector<8x512xf32>
    %425 = arith.addf %420, %424 : vector<8x512xf32>
    %c0_210 = arith.constant 0 : index
    %c0_211 = arith.constant 0 : index
    %426 = vector.load %arg7[%c0_210, %c0_211] : memref<1x512xf32, #tpu.memory_space<vmem>>, vector<1x512xf32>
    %427 = vector.broadcast %426 : vector<1x512xf32> to vector<8x512xf32>
    %428 = arith.addf %425, %427 : vector<8x512xf32>
    %429 = vector.extract_strided_slice %428 {offsets = [0, 0], sizes = [8, 128], strides = [1, 1]} : vector<8x512xf32> to vector<8x128xf32>
    %430 = arith.negf %429 : vector<8x128xf32>
    %431 = math.exp %430 : vector<8x128xf32>
    %cst_212 = arith.constant 1.000000e+00 : f32
    %432 = vector.broadcast %cst_212 : f32 to vector<8x128xf32>
    %433 = arith.addf %432, %431 : vector<8x128xf32>
    %434 = arith.divf %432, %433 : vector<8x128xf32>
    %435 = vector.extract_strided_slice %428 {offsets = [0, 128], sizes = [8, 128], strides = [1, 1]} : vector<8x512xf32> to vector<8x128xf32>
    %436 = arith.negf %435 : vector<8x128xf32>
    %437 = math.exp %436 : vector<8x128xf32>
    %cst_213 = arith.constant 1.000000e+00 : f32
    %438 = vector.broadcast %cst_213 : f32 to vector<8x128xf32>
    %439 = arith.addf %438, %437 : vector<8x128xf32>
    %440 = arith.divf %438, %439 : vector<8x128xf32>
    %441 = vector.extract_strided_slice %428 {offsets = [0, 256], sizes = [8, 128], strides = [1, 1]} : vector<8x512xf32> to vector<8x128xf32>
    %442 = math.tanh %441 : vector<8x128xf32>
    %443 = vector.extract_strided_slice %428 {offsets = [0, 384], sizes = [8, 128], strides = [1, 1]} : vector<8x512xf32> to vector<8x128xf32>
    %444 = arith.negf %443 : vector<8x128xf32>
    %445 = math.exp %444 : vector<8x128xf32>
    %cst_214 = arith.constant 1.000000e+00 : f32
    %446 = vector.broadcast %cst_214 : f32 to vector<8x128xf32>
    %447 = arith.addf %446, %445 : vector<8x128xf32>
    %448 = arith.divf %446, %447 : vector<8x128xf32>
    %c0_215 = arith.constant 0 : index
    %c0_216 = arith.constant 0 : index
    %449 = vector.load %arg15[%c0_215, %c0_216] : memref<8x128xf32, #tpu.memory_space<vmem>>, vector<8x128xf32>
    %450 = arith.mulf %440, %449 : vector<8x128xf32>
    %451 = arith.mulf %434, %442 : vector<8x128xf32>
    %452 = arith.addf %450, %451 : vector<8x128xf32>
    %453 = math.tanh %452 : vector<8x128xf32>
    %454 = arith.mulf %448, %453 : vector<8x128xf32>
    %c0_217 = arith.constant 0 : index
    %c0_218 = arith.constant 0 : index
    %455 = vector.load %arg15[%c0_217, %c0_218] : memref<8x128xf32, #tpu.memory_space<vmem>>, vector<8x128xf32>
    tpu.vector_store %arg15[%c0_217, %c0_218], %452 {strides = array<i32>} : memref<8x128xf32, #tpu.memory_space<vmem>>, vector<8x128xf32>,
    %c0_219 = arith.constant 0 : index
    %c0_220 = arith.constant 0 : index
    %456 = vector.load %arg14[%c0_219, %c0_220] : memref<8x128xf32, #tpu.memory_space<vmem>>, vector<8x128xf32>
    tpu.vector_store %arg14[%c0_219, %c0_220], %454 {strides = array<i32>} : memref<8x128xf32, #tpu.memory_space<vmem>>, vector<8x128xf32>,
    %c6 = arith.constant 6 : index
    %c0_221 = arith.constant 0 : index
    %c0_222 = arith.constant 0 : index
    %457 = vector.load %arg11[%c6, %c0_221, %c0_222] : memref<8x8x512xf32, #tpu.memory_space<vmem>>, vector<1x8x512xf32>
    %458 = vector.shape_cast %457 : vector<1x8x512xf32> to vector<8x512xf32>
    %c0_223 = arith.constant 0 : index
    %c0_224 = arith.constant 0 : index
    %459 = vector.load %arg12[%c0_223, %c0_224] : memref<8x128xf32, #tpu.memory_space<vmem>>, vector<8x128xf32>
    %460 = arith.truncf %459 : vector<8x128xf32> to vector<8x128xbf16>
    %c0_225 = arith.constant 0 : index
    %c0_226 = arith.constant 0 : index
    %461 = vector.load %arg3[%c0_225, %c0_226] : memref<128x512xbf16, #tpu.memory_space<vmem>>, vector<128x512xbf16>
    %cst_227 = arith.constant dense<0.000000e+00> : vector<8x512xf32>
    %462 = tpu.matmul %460, %461, %cst_227 {dimension_numbers = #tpu.dot_dimension_numbers<[1], [0], [0], [1], [0, 0, 1, 1], [], []>} : vector<8x128xbf16>, vector<128x512xbf16>, vector<8x512xf32> -> vector<8x512xf32>
    %463 = arith.addf %458, %462 : vector<8x512xf32>
    %464 = vector.extract_strided_slice %463 {offsets = [0, 0], sizes = [8, 128], strides = [1, 1]} : vector<8x512xf32> to vector<8x128xf32>
    %465 = arith.negf %464 : vector<8x128xf32>
    %466 = math.exp %465 : vector<8x128xf32>
    %cst_228 = arith.constant 1.000000e+00 : f32
    %467 = vector.broadcast %cst_228 : f32 to vector<8x128xf32>
    %468 = arith.addf %467, %466 : vector<8x128xf32>
    %469 = arith.divf %467, %468 : vector<8x128xf32>
    %470 = vector.extract_strided_slice %463 {offsets = [0, 128], sizes = [8, 128], strides = [1, 1]} : vector<8x512xf32> to vector<8x128xf32>
    %471 = arith.negf %470 : vector<8x128xf32>
    %472 = math.exp %471 : vector<8x128xf32>
    %cst_229 = arith.constant 1.000000e+00 : f32
    %473 = vector.broadcast %cst_229 : f32 to vector<8x128xf32>
    %474 = arith.addf %473, %472 : vector<8x128xf32>
    %475 = arith.divf %473, %474 : vector<8x128xf32>
    %476 = vector.extract_strided_slice %463 {offsets = [0, 256], sizes = [8, 128], strides = [1, 1]} : vector<8x512xf32> to vector<8x128xf32>
    %477 = math.tanh %476 : vector<8x128xf32>
    %478 = vector.extract_strided_slice %463 {offsets = [0, 384], sizes = [8, 128], strides = [1, 1]} : vector<8x512xf32> to vector<8x128xf32>
    %479 = arith.negf %478 : vector<8x128xf32>
    %480 = math.exp %479 : vector<8x128xf32>
    %cst_230 = arith.constant 1.000000e+00 : f32
    %481 = vector.broadcast %cst_230 : f32 to vector<8x128xf32>
    %482 = arith.addf %481, %480 : vector<8x128xf32>
    %483 = arith.divf %481, %482 : vector<8x128xf32>
    %c0_231 = arith.constant 0 : index
    %c0_232 = arith.constant 0 : index
    %484 = vector.load %arg13[%c0_231, %c0_232] : memref<8x128xf32, #tpu.memory_space<vmem>>, vector<8x128xf32>
    %485 = arith.mulf %475, %484 : vector<8x128xf32>
    %486 = arith.mulf %469, %477 : vector<8x128xf32>
    %487 = arith.addf %485, %486 : vector<8x128xf32>
    %488 = math.tanh %487 : vector<8x128xf32>
    %489 = arith.mulf %483, %488 : vector<8x128xf32>
    %c0_233 = arith.constant 0 : index
    %c0_234 = arith.constant 0 : index
    %490 = vector.load %arg13[%c0_233, %c0_234] : memref<8x128xf32, #tpu.memory_space<vmem>>, vector<8x128xf32>
    tpu.vector_store %arg13[%c0_233, %c0_234], %487 {strides = array<i32>} : memref<8x128xf32, #tpu.memory_space<vmem>>, vector<8x128xf32>,
    %c0_235 = arith.constant 0 : index
    %c0_236 = arith.constant 0 : index
    %491 = vector.load %arg12[%c0_235, %c0_236] : memref<8x128xf32, #tpu.memory_space<vmem>>, vector<8x128xf32>
    tpu.vector_store %arg12[%c0_235, %c0_236], %489 {strides = array<i32>} : memref<8x128xf32, #tpu.memory_space<vmem>>, vector<8x128xf32>,
    %492 = arith.truncf %489 : vector<8x128xf32> to vector<8x128xbf16>
    %c0_237 = arith.constant 0 : index
    %c0_238 = arith.constant 0 : index
    %493 = vector.load %arg5[%c0_237, %c0_238] : memref<128x512xbf16, #tpu.memory_space<vmem>>, vector<128x512xbf16>
    %cst_239 = arith.constant dense<0.000000e+00> : vector<8x512xf32>
    %494 = tpu.matmul %492, %493, %cst_239 {dimension_numbers = #tpu.dot_dimension_numbers<[1], [0], [0], [1], [0, 0, 1, 1], [], []>} : vector<8x128xbf16>, vector<128x512xbf16>, vector<8x512xf32> -> vector<8x512xf32>
    %c0_240 = arith.constant 0 : index
    %c0_241 = arith.constant 0 : index
    %495 = vector.load %arg14[%c0_240, %c0_241] : memref<8x128xf32, #tpu.memory_space<vmem>>, vector<8x128xf32>
    %496 = arith.truncf %495 : vector<8x128xf32> to vector<8x128xbf16>
    %c0_242 = arith.constant 0 : index
    %c0_243 = arith.constant 0 : index
    %497 = vector.load %arg6[%c0_242, %c0_243] : memref<128x512xbf16, #tpu.memory_space<vmem>>, vector<128x512xbf16>
    %cst_244 = arith.constant dense<0.000000e+00> : vector<8x512xf32>
    %498 = tpu.matmul %496, %497, %cst_244 {dimension_numbers = #tpu.dot_dimension_numbers<[1], [0], [0], [1], [0, 0, 1, 1], [], []>} : vector<8x128xbf16>, vector<128x512xbf16>, vector<8x512xf32> -> vector<8x512xf32>
    %499 = arith.addf %494, %498 : vector<8x512xf32>
    %c0_245 = arith.constant 0 : index
    %c0_246 = arith.constant 0 : index
    %500 = vector.load %arg7[%c0_245, %c0_246] : memref<1x512xf32, #tpu.memory_space<vmem>>, vector<1x512xf32>
    %501 = vector.broadcast %500 : vector<1x512xf32> to vector<8x512xf32>
    %502 = arith.addf %499, %501 : vector<8x512xf32>
    %503 = vector.extract_strided_slice %502 {offsets = [0, 0], sizes = [8, 128], strides = [1, 1]} : vector<8x512xf32> to vector<8x128xf32>
    %504 = arith.negf %503 : vector<8x128xf32>
    %505 = math.exp %504 : vector<8x128xf32>
    %cst_247 = arith.constant 1.000000e+00 : f32
    %506 = vector.broadcast %cst_247 : f32 to vector<8x128xf32>
    %507 = arith.addf %506, %505 : vector<8x128xf32>
    %508 = arith.divf %506, %507 : vector<8x128xf32>
    %509 = vector.extract_strided_slice %502 {offsets = [0, 128], sizes = [8, 128], strides = [1, 1]} : vector<8x512xf32> to vector<8x128xf32>
    %510 = arith.negf %509 : vector<8x128xf32>
    %511 = math.exp %510 : vector<8x128xf32>
    %cst_248 = arith.constant 1.000000e+00 : f32
    %512 = vector.broadcast %cst_248 : f32 to vector<8x128xf32>
    %513 = arith.addf %512, %511 : vector<8x128xf32>
    %514 = arith.divf %512, %513 : vector<8x128xf32>
    %515 = vector.extract_strided_slice %502 {offsets = [0, 256], sizes = [8, 128], strides = [1, 1]} : vector<8x512xf32> to vector<8x128xf32>
    %516 = math.tanh %515 : vector<8x128xf32>
    %517 = vector.extract_strided_slice %502 {offsets = [0, 384], sizes = [8, 128], strides = [1, 1]} : vector<8x512xf32> to vector<8x128xf32>
    %518 = arith.negf %517 : vector<8x128xf32>
    %519 = math.exp %518 : vector<8x128xf32>
    %cst_249 = arith.constant 1.000000e+00 : f32
    %520 = vector.broadcast %cst_249 : f32 to vector<8x128xf32>
    %521 = arith.addf %520, %519 : vector<8x128xf32>
    %522 = arith.divf %520, %521 : vector<8x128xf32>
    %c0_250 = arith.constant 0 : index
    %c0_251 = arith.constant 0 : index
    %523 = vector.load %arg15[%c0_250, %c0_251] : memref<8x128xf32, #tpu.memory_space<vmem>>, vector<8x128xf32>
    %524 = arith.mulf %514, %523 : vector<8x128xf32>
    %525 = arith.mulf %508, %516 : vector<8x128xf32>
    %526 = arith.addf %524, %525 : vector<8x128xf32>
    %527 = math.tanh %526 : vector<8x128xf32>
    %528 = arith.mulf %522, %527 : vector<8x128xf32>
    %c0_252 = arith.constant 0 : index
    %c0_253 = arith.constant 0 : index
    %529 = vector.load %arg15[%c0_252, %c0_253] : memref<8x128xf32, #tpu.memory_space<vmem>>, vector<8x128xf32>
    tpu.vector_store %arg15[%c0_252, %c0_253], %526 {strides = array<i32>} : memref<8x128xf32, #tpu.memory_space<vmem>>, vector<8x128xf32>,
    %c0_254 = arith.constant 0 : index
    %c0_255 = arith.constant 0 : index
    %530 = vector.load %arg14[%c0_254, %c0_255] : memref<8x128xf32, #tpu.memory_space<vmem>>, vector<8x128xf32>
    tpu.vector_store %arg14[%c0_254, %c0_255], %528 {strides = array<i32>} : memref<8x128xf32, #tpu.memory_space<vmem>>, vector<8x128xf32>,
    %c7 = arith.constant 7 : index
    %c0_256 = arith.constant 0 : index
    %c0_257 = arith.constant 0 : index
    %531 = vector.load %arg11[%c7, %c0_256, %c0_257] : memref<8x8x512xf32, #tpu.memory_space<vmem>>, vector<1x8x512xf32>
    %532 = vector.shape_cast %531 : vector<1x8x512xf32> to vector<8x512xf32>
    %c0_258 = arith.constant 0 : index
    %c0_259 = arith.constant 0 : index
    %533 = vector.load %arg12[%c0_258, %c0_259] : memref<8x128xf32, #tpu.memory_space<vmem>>, vector<8x128xf32>
    %534 = arith.truncf %533 : vector<8x128xf32> to vector<8x128xbf16>
    %c0_260 = arith.constant 0 : index
    %c0_261 = arith.constant 0 : index
    %535 = vector.load %arg3[%c0_260, %c0_261] : memref<128x512xbf16, #tpu.memory_space<vmem>>, vector<128x512xbf16>
    %cst_262 = arith.constant dense<0.000000e+00> : vector<8x512xf32>
    %536 = tpu.matmul %534, %535, %cst_262 {dimension_numbers = #tpu.dot_dimension_numbers<[1], [0], [0], [1], [0, 0, 1, 1], [], []>} : vector<8x128xbf16>, vector<128x512xbf16>, vector<8x512xf32> -> vector<8x512xf32>
    %537 = arith.addf %532, %536 : vector<8x512xf32>
    %538 = vector.extract_strided_slice %537 {offsets = [0, 0], sizes = [8, 128], strides = [1, 1]} : vector<8x512xf32> to vector<8x128xf32>
    %539 = arith.negf %538 : vector<8x128xf32>
    %540 = math.exp %539 : vector<8x128xf32>
    %cst_263 = arith.constant 1.000000e+00 : f32
    %541 = vector.broadcast %cst_263 : f32 to vector<8x128xf32>
    %542 = arith.addf %541, %540 : vector<8x128xf32>
    %543 = arith.divf %541, %542 : vector<8x128xf32>
    %544 = vector.extract_strided_slice %537 {offsets = [0, 128], sizes = [8, 128], strides = [1, 1]} : vector<8x512xf32> to vector<8x128xf32>
    %545 = arith.negf %544 : vector<8x128xf32>
    %546 = math.exp %545 : vector<8x128xf32>
    %cst_264 = arith.constant 1.000000e+00 : f32
    %547 = vector.broadcast %cst_264 : f32 to vector<8x128xf32>
    %548 = arith.addf %547, %546 : vector<8x128xf32>
    %549 = arith.divf %547, %548 : vector<8x128xf32>
    %550 = vector.extract_strided_slice %537 {offsets = [0, 256], sizes = [8, 128], strides = [1, 1]} : vector<8x512xf32> to vector<8x128xf32>
    %551 = math.tanh %550 : vector<8x128xf32>
    %552 = vector.extract_strided_slice %537 {offsets = [0, 384], sizes = [8, 128], strides = [1, 1]} : vector<8x512xf32> to vector<8x128xf32>
    %553 = arith.negf %552 : vector<8x128xf32>
    %554 = math.exp %553 : vector<8x128xf32>
    %cst_265 = arith.constant 1.000000e+00 : f32
    %555 = vector.broadcast %cst_265 : f32 to vector<8x128xf32>
    %556 = arith.addf %555, %554 : vector<8x128xf32>
    %557 = arith.divf %555, %556 : vector<8x128xf32>
    %c0_266 = arith.constant 0 : index
    %c0_267 = arith.constant 0 : index
    %558 = vector.load %arg13[%c0_266, %c0_267] : memref<8x128xf32, #tpu.memory_space<vmem>>, vector<8x128xf32>
    %559 = arith.mulf %549, %558 : vector<8x128xf32>
    %560 = arith.mulf %543, %551 : vector<8x128xf32>
    %561 = arith.addf %559, %560 : vector<8x128xf32>
    %562 = math.tanh %561 : vector<8x128xf32>
    %563 = arith.mulf %557, %562 : vector<8x128xf32>
    %c0_268 = arith.constant 0 : index
    %c0_269 = arith.constant 0 : index
    %564 = vector.load %arg13[%c0_268, %c0_269] : memref<8x128xf32, #tpu.memory_space<vmem>>, vector<8x128xf32>
    tpu.vector_store %arg13[%c0_268, %c0_269], %561 {strides = array<i32>} : memref<8x128xf32, #tpu.memory_space<vmem>>, vector<8x128xf32>,
    %c0_270 = arith.constant 0 : index
    %c0_271 = arith.constant 0 : index
    %565 = vector.load %arg12[%c0_270, %c0_271] : memref<8x128xf32, #tpu.memory_space<vmem>>, vector<8x128xf32>
    tpu.vector_store %arg12[%c0_270, %c0_271], %563 {strides = array<i32>} : memref<8x128xf32, #tpu.memory_space<vmem>>, vector<8x128xf32>,
    %566 = arith.truncf %563 : vector<8x128xf32> to vector<8x128xbf16>
    %c0_272 = arith.constant 0 : index
    %c0_273 = arith.constant 0 : index
    %567 = vector.load %arg5[%c0_272, %c0_273] : memref<128x512xbf16, #tpu.memory_space<vmem>>, vector<128x512xbf16>
    %cst_274 = arith.constant dense<0.000000e+00> : vector<8x512xf32>
    %568 = tpu.matmul %566, %567, %cst_274 {dimension_numbers = #tpu.dot_dimension_numbers<[1], [0], [0], [1], [0, 0, 1, 1], [], []>} : vector<8x128xbf16>, vector<128x512xbf16>, vector<8x512xf32> -> vector<8x512xf32>
    %c0_275 = arith.constant 0 : index
    %c0_276 = arith.constant 0 : index
    %569 = vector.load %arg14[%c0_275, %c0_276] : memref<8x128xf32, #tpu.memory_space<vmem>>, vector<8x128xf32>
    %570 = arith.truncf %569 : vector<8x128xf32> to vector<8x128xbf16>
    %c0_277 = arith.constant 0 : index
    %c0_278 = arith.constant 0 : index
    %571 = vector.load %arg6[%c0_277, %c0_278] : memref<128x512xbf16, #tpu.memory_space<vmem>>, vector<128x512xbf16>
    %cst_279 = arith.constant dense<0.000000e+00> : vector<8x512xf32>
    %572 = tpu.matmul %570, %571, %cst_279 {dimension_numbers = #tpu.dot_dimension_numbers<[1], [0], [0], [1], [0, 0, 1, 1], [], []>} : vector<8x128xbf16>, vector<128x512xbf16>, vector<8x512xf32> -> vector<8x512xf32>
    %573 = arith.addf %568, %572 : vector<8x512xf32>
    %c0_280 = arith.constant 0 : index
    %c0_281 = arith.constant 0 : index
    %574 = vector.load %arg7[%c0_280, %c0_281] : memref<1x512xf32, #tpu.memory_space<vmem>>, vector<1x512xf32>
    %575 = vector.broadcast %574 : vector<1x512xf32> to vector<8x512xf32>
    %576 = arith.addf %573, %575 : vector<8x512xf32>
    %577 = vector.extract_strided_slice %576 {offsets = [0, 0], sizes = [8, 128], strides = [1, 1]} : vector<8x512xf32> to vector<8x128xf32>
    %578 = arith.negf %577 : vector<8x128xf32>
    %579 = math.exp %578 : vector<8x128xf32>
    %cst_282 = arith.constant 1.000000e+00 : f32
    %580 = vector.broadcast %cst_282 : f32 to vector<8x128xf32>
    %581 = arith.addf %580, %579 : vector<8x128xf32>
    %582 = arith.divf %580, %581 : vector<8x128xf32>
    %583 = vector.extract_strided_slice %576 {offsets = [0, 128], sizes = [8, 128], strides = [1, 1]} : vector<8x512xf32> to vector<8x128xf32>
    %584 = arith.negf %583 : vector<8x128xf32>
    %585 = math.exp %584 : vector<8x128xf32>
    %cst_283 = arith.constant 1.000000e+00 : f32
    %586 = vector.broadcast %cst_283 : f32 to vector<8x128xf32>
    %587 = arith.addf %586, %585 : vector<8x128xf32>
    %588 = arith.divf %586, %587 : vector<8x128xf32>
    %589 = vector.extract_strided_slice %576 {offsets = [0, 256], sizes = [8, 128], strides = [1, 1]} : vector<8x512xf32> to vector<8x128xf32>
    %590 = math.tanh %589 : vector<8x128xf32>
    %591 = vector.extract_strided_slice %576 {offsets = [0, 384], sizes = [8, 128], strides = [1, 1]} : vector<8x512xf32> to vector<8x128xf32>
    %592 = arith.negf %591 : vector<8x128xf32>
    %593 = math.exp %592 : vector<8x128xf32>
    %cst_284 = arith.constant 1.000000e+00 : f32
    %594 = vector.broadcast %cst_284 : f32 to vector<8x128xf32>
    %595 = arith.addf %594, %593 : vector<8x128xf32>
    %596 = arith.divf %594, %595 : vector<8x128xf32>
    %c0_285 = arith.constant 0 : index
    %c0_286 = arith.constant 0 : index
    %597 = vector.load %arg15[%c0_285, %c0_286] : memref<8x128xf32, #tpu.memory_space<vmem>>, vector<8x128xf32>
    %598 = arith.mulf %588, %597 : vector<8x128xf32>
    %599 = arith.mulf %582, %590 : vector<8x128xf32>
    %600 = arith.addf %598, %599 : vector<8x128xf32>
    %601 = math.tanh %600 : vector<8x128xf32>
    %602 = arith.mulf %596, %601 : vector<8x128xf32>
    %c0_287 = arith.constant 0 : index
    %c0_288 = arith.constant 0 : index
    %603 = vector.load %arg15[%c0_287, %c0_288] : memref<8x128xf32, #tpu.memory_space<vmem>>, vector<8x128xf32>
    tpu.vector_store %arg15[%c0_287, %c0_288], %600 {strides = array<i32>} : memref<8x128xf32, #tpu.memory_space<vmem>>, vector<8x128xf32>,
    %c0_289 = arith.constant 0 : index
    %c0_290 = arith.constant 0 : index
    %604 = vector.load %arg14[%c0_289, %c0_290] : memref<8x128xf32, #tpu.memory_space<vmem>>, vector<8x128xf32>
    tpu.vector_store %arg14[%c0_289, %c0_290], %602 {strides = array<i32>} : memref<8x128xf32, #tpu.memory_space<vmem>>, vector<8x128xf32>,
    %c0_i32_291 = arith.constant 0 : i32
    %605 = arith.cmpi eq, %arg0, %c0_i32_291 : i32
    %606 = arith.extui %605 : i1 to i32
    %c0_i32_292 = arith.constant 0 : i32
    %607 = arith.cmpi ne, %606, %c0_i32_292 : i32
    scf.if %607 {
      %c0_293 = arith.constant 0 : index
      %c0_294 = arith.constant 0 : index
      %608 = vector.load %arg14[%c0_293, %c0_294] : memref<8x128xf32, #tpu.memory_space<vmem>>, vector<8x128xf32>
      %609 = arith.truncf %608 : vector<8x128xf32> to vector<8x128xbf16>
      %c0_295 = arith.constant 0 : index
      %c0_296 = arith.constant 0 : index
      %610 = vector.load %arg8[%c0_295, %c0_296] : memref<128x128xbf16, #tpu.memory_space<vmem>>, vector<128x128xbf16>
      %cst_297 = arith.constant dense<0.000000e+00> : vector<8x128xf32>
      %611 = tpu.matmul %609, %610, %cst_297 {dimension_numbers = #tpu.dot_dimension_numbers<[1], [0], [0], [1], [0, 0, 1, 1], [], []>} : vector<8x128xbf16>, vector<128x128xbf16>, vector<8x128xf32> -> vector<8x128xf32>
      %c0_298 = arith.constant 0 : index
      %c0_299 = arith.constant 0 : index
      %612 = vector.load %arg9[%c0_298, %c0_299] : memref<1x128xf32, #tpu.memory_space<vmem>>, vector<1x128xf32>
      %613 = vector.broadcast %612 : vector<1x128xf32> to vector<8x128xf32>
      %614 = arith.addf %611, %613 : vector<8x128xf32>
      %c0_300 = arith.constant 0 : index
      %c0_301 = arith.constant 0 : index
      %615 = vector.load %arg10[%c0_300, %c0_301] : memref<8x128xf32, #tpu.memory_space<vmem>>, vector<8x128xf32>
      tpu.vector_store %arg10[%c0_300, %c0_301], %614 {strides = array<i32>} : memref<8x128xf32, #tpu.memory_space<vmem>>, vector<8x128xf32>,
    } else {
    }
    return
  }
  func.func @transform_0(%arg0: i32) -> (i32, i32, i32) {
    %c0_i32 = arith.constant 0 : i32
    %c0_i32_0 = arith.constant 0 : i32
    %c0_i32_1 = arith.constant 0 : i32
    return %arg0, %c0_i32, %c0_i32_0 : i32, i32, i32
  }
  func.func @transform_1(%arg0: i32) -> (i32, i32) {
    %c0_i32 = arith.constant 0 : i32
    %c0_i32_0 = arith.constant 0 : i32
    %c0_i32_1 = arith.constant 0 : i32
    return %c0_i32, %c0_i32_0 : i32, i32
  }
  func.func @transform_2(%arg0: i32) -> (i32, i32) {
    %c0_i32 = arith.constant 0 : i32
    %c0_i32_0 = arith.constant 0 : i32
    %c0_i32_1 = arith.constant 0 : i32
    return %c0_i32, %c0_i32_0 : i32, i32
  }
  func.func @transform_3(%arg0: i32) -> (i32, i32) {
    %c0_i32 = arith.constant 0 : i32
    %c0_i32_0 = arith.constant 0 : i32
    %c0_i32_1 = arith.constant 0 : i32
    return %c0_i32, %c0_i32_0 : i32, i32
  }
  func.func @transform_4(%arg0: i32) -> (i32, i32) {
    %c0_i32 = arith.constant 0 : i32
    %c0_i32_0 = arith.constant 0 : i32
    %c0_i32_1 = arith.constant 0 : i32
    return %c0_i32, %c0_i32_0 : i32, i32
  }
  func.func @transform_5(%arg0: i32) -> (i32, i32) {
    %c0_i32 = arith.constant 0 : i32
    %c0_i32_0 = arith.constant 0 : i32
    %c0_i32_1 = arith.constant 0 : i32
    return %c0_i32, %c0_i32_0 : i32, i32
  }
  func.func @transform_6(%arg0: i32) -> (i32, i32) {
    %c0_i32 = arith.constant 0 : i32
    %c0_i32_0 = arith.constant 0 : i32
    %c0_i32_1 = arith.constant 0 : i32
    return %c0_i32, %c0_i32_0 : i32, i32
  }
  func.func @transform_7(%arg0: i32) -> (i32, i32) {
    %c0_i32 = arith.constant 0 : i32
    %c0_i32_0 = arith.constant 0 : i32
    %c0_i32_1 = arith.constant 0 : i32
    return %c0_i32, %c0_i32_0 : i32, i32
  }
  func.func @transform_8(%arg0: i32) -> (i32, i32) {
    %c0_i32 = arith.constant 0 : i32
    %c0_i32_0 = arith.constant 0 : i32
    %c0_i32_1 = arith.constant 0 : i32
    return %c0_i32, %c0_i32_0 : i32, i32
  }
  func.func @transform_9(%arg0: i32) -> (i32, i32) {
    %c0_i32 = arith.constant 0 : i32
    %c0_i32_0 = arith.constant 0 : i32
    %c0_i32_1 = arith.constant 0 : i32
    return %c0_i32, %c0_i32_0 : i32, i32
  }
}

</mosaic_0001>

<bundles_post_ra>
// kernel: _recursive_rollout.1
= control target key start
LH: loop header
LB: loop body
LE: loop exit
PB: predicated region body
PF: predicated region fallthrough
CT: control target
= control target key end

     0   :  { %14 = vsyncpa [#allocation8], 0  ;;  %s11769_s0 = inlined_call_operand.vmem [shape: f32[8,8,128], index: 0, kind: input, shape index: {}]   ;;  %s11770_s1 = inlined_call_operand.hbm [shape: bf16[128,512], index: 1, kind: input, shape index: {}]   ;;  %s11771_s2 = inlined_call_operand.hbm [shape: bf16[128,512], index: 2, kind: input, shape index: {}]   ;;  %s11772_s3 = inlined_call_operand.vmem [shape: f32[1,512], index: 3, kind: input, shape index: {}]   ;;  %s11773_s4 = inlined_call_operand.hbm [shape: bf16[128,512], index: 4, kind: input, shape index: {}]   ;;  %s11774_s5 = inlined_call_operand.hbm [shape: bf16[128,512], index: 5, kind: input, shape index: {}]   ;;  %s11775_s6 = inlined_call_operand.vmem [shape: f32[1,512], index: 6, kind: input, shape index: {}]   ;;  %s11776_s7 = inlined_call_operand.vmem [shape: bf16[128,128], index: 7, kind: input, shape index: {}]   ;;  %s11777_s8 = inlined_call_operand.vmem [shape: f32[1,128], index: 8, kind: input, shape index: {}]   ;;  %s11778_s9 = inlined_call_operand.vmem [shape: f32[8,128], index: 9, kind: output, shape index: {}]  }
   0x1   :  { %15 = vsyncpa [#allocation10], 0 }
   0x2   :  { %16 = vsyncpa [#allocation13], 0  ;;  %s9889_s30 = smov [#allocation9]   ;;  %s9890_s11 = smov [#allocation7]  }
   0x3   :  { %s36_s10 = sshll.u32 %s9889_s30, 4  ;;  %s24_s12 = sshll.u32 %s9890_s11, 4  ;;  %s37_s10 = int_to_ptr.vmem [resolvable:$true] %s36_s10  ;;  %s25_s12 = int_to_ptr.vmem [resolvable:$true] %s24_s12 }
   0x4   :  { %s9811_s13 = scalar_lea.vmem %s37_s10, 4096  ;;  %p9816_p1 = scmp.lt.s32.totalorder %s37_s10, %s37_s10 }
   0x5   :  { %p9812_p0 = scmp.ne.s32.totalorder %s37_s10, %s9811_s13  ;;  %p9817_p2 = scmp.lt.s32.totalorder %s9811_s13, %s9811_s13 }
   0x7   :  { %p9818_p3 = por %p9817_p2, %p9816_p1 }
   0x9   :  { %p9819_p4 = pnand %p9818_p3, %p9812_p0 }
   0xb   :  { %9822 = shalt.err (!%p9819_p4)
}
   0xc   :  { %s9891_s14 = smov 256   ;;  %s9892_s15 = smov 16  }
   0xd   :  { %42 = dma.hbm_to_vmem [thread:$0]  %s11771_s2, 4096, %s37_s10, [#allocation10], %s9891_s14, %s9891_s14, %s9892_s15  }
   0xe   :  { %s9831_s18 = scalar_lea.vmem %s25_s12, 4096  ;;  %p9836_p6 = scmp.lt.s32.totalorder %s25_s12, %s25_s12 }
   0xf   :  { %p9832_p5 = scmp.ne.s32.totalorder %s25_s12, %s9831_s18  ;;  %p9837_p7 = scmp.lt.s32.totalorder %s9831_s18, %s9831_s18 }
  0x11   :  { %p9838_p8 = por %p9837_p7, %p9836_p6 }
  0x13   :  { %p9839_p9 = pnand %p9838_p8, %p9832_p5 }
  0x15   :  { %9842 = shalt.err (!%p9839_p9)
}
  0x16   :  { %30 = dma.hbm_to_vmem [thread:$0]  %s11770_s1, 4096, %s25_s12, [#allocation8], %s9891_s14, %s9891_s14, %s9892_s15  }
  0x17   :  { %s9893_s21 = smov [#allocation11]   ;;  %s9894_s23 = smov [#allocation12]  }
  0x18   :  { %s50_s22 = sshll.u32 %s9893_s21, 4  ;;  %s62_s24 = sshll.u32 %s9894_s23, 4  ;;  %s51_s22 = int_to_ptr.vmem [resolvable:$true] %s50_s22  ;;  %s63_s24 = int_to_ptr.vmem [resolvable:$true] %s62_s24 }
  0x19   :  { %s9851_s2 = scalar_lea.vmem %s51_s22, 4096  ;;  %p9856_p11 = scmp.lt.s32.totalorder %s51_s22, %s51_s22 }
  0x1a   :  { %p9852_p10 = scmp.ne.s32.totalorder %s51_s22, %s9851_s2  ;;  %p9857_p12 = scmp.lt.s32.totalorder %s9851_s2, %s9851_s2 }
  0x1c   :  { %p9858_p13 = por %p9857_p12, %p9856_p11 }
  0x1e   :  { %p9859_p0 = pnand %p9858_p13, %p9852_p10 }
  0x20   :  { %9862 = shalt.err (!%p9859_p0)
}
  0x21   :  { %56 = dma.hbm_to_vmem [thread:$0]  %s11773_s4, 4096, %s51_s22, [#allocation10], %s9891_s14, %s9891_s14, %s9892_s15  }
  0x22   :  { %s9871_s1 = scalar_lea.vmem %s63_s24, 4096  ;;  %p9876_p2 = scmp.lt.s32.totalorder %s63_s24, %s63_s24 }
  0x23   :  { %p9872_p1 = scmp.ne.s32.totalorder %s63_s24, %s9871_s1  ;;  %p9877_p3 = scmp.lt.s32.totalorder %s9871_s1, %s9871_s1 }
  0x25   :  { %p9878_p4 = por %p9877_p3, %p9876_p2 }
  0x27   :  { %p9879_p5 = pnand %p9878_p4, %p9872_p1 }
  0x29   :  { %9882 = shalt.err (!%p9879_p5)
}
  0x2a   :  { %68 = dma.hbm_to_vmem [thread:$0]  %s11774_s5, 4096, %s63_s24, [#allocation13], %s9891_s14, %s9891_s14, %s9892_s15  }
  0x2b   :  { %9883 = dma.done.wait [#allocation8], 4096  }
  0x2c   :  { %9884 = vsyncadd [#allocation8], 4294963200 }
  0x2d   :  { %9885 = dma.done.wait [#allocation10], 8192  }
  0x2e   :  { %9886 = vsyncadd [#allocation10], 4294959104 }
  0x2f   :  { %9887 = dma.done.wait [#allocation13], 4096  }
  0x30   :  { %9888 = vsyncadd [#allocation13], 4294963200  ;;  %v11779_v0 = vmov 0   ;;  %v8883_v1 = vld [vmem:[#allocation7 + $0xe4] ss:$16 sps:$4 sm:$0xff]   ;;  %v97_v34 = vld [vmem:[%s11769_s0 + $0x8] sm:$0xff] }
  0x31   :  { %382 = vmatprep.mubr.bf16.mxu0 %v11779_v0  ;;  %455 = vmatprep.mubr.bf16.mxu1 %v11779_v0  ;;  %v8885_v2 = vld [vmem:[#allocation7 + $0xec] ss:$16 sps:$4 sm:$0xff]   ;;  %v8887_v3 = vld [vmem:[#allocation7 + $0xe0] ss:$16 sps:$4 sm:$0xff]   ;;  %v8888_v4 = vld [vmem:[#allocation7 + $0xe8] ss:$16 sps:$4 sm:$0xff]  }
  0x32   :  { %350 = vmatprep.subr.bf16.mxu0 %v8883_v1  ;;  %423 = vmatprep.subr.bf16.mxu1 %v8885_v2  ;;  %v8889_v5 = vld [vmem:[#allocation7 + $0xc4] ss:$16 sps:$4 sm:$0xff]   ;;  %v8891_v6 = vld [vmem:[#allocation7 + $0xcc] ss:$16 sps:$4 sm:$0xff]   ;;  %v8893_v7 = vld [vmem:[#allocation7 + $0xc0] ss:$16 sps:$4 sm:$0xff]  }
  0x33   :  { %351 = vmatpush1.bf16.msra.mxu0 %v8887_v3  ;;  %424 = vmatpush1.bf16.msra.mxu1 %v8888_v4  ;;  %v8894_v8 = vld [vmem:[#allocation7 + $0xc8] ss:$16 sps:$4 sm:$0xff]   ;;  %v8895_v9 = vld [vmem:[#allocation7 + $0xa4] ss:$16 sps:$4 sm:$0xff]   ;;  %v8897_v10 = vld [vmem:[#allocation7 + $0xac] ss:$16 sps:$4 sm:$0xff]  }
  0x34   :  { %352 = vmatprep.subr.bf16.mxu0 %v8889_v5  ;;  %425 = vmatprep.subr.bf16.mxu1 %v8891_v6  ;;  %v8899_v11 = vld [vmem:[#allocation7 + $0xa0] ss:$16 sps:$4 sm:$0xff]   ;;  %v8900_v12 = vld [vmem:[#allocation7 + $0xa8] ss:$16 sps:$4 sm:$0xff]   ;;  %v8901_v13 = vld [vmem:[#allocation7 + $0x84] ss:$16 sps:$4 sm:$0xff]  }
  0x35   :  { %v8903_v14 = vld [vmem:[#allocation7 + $0x8c] ss:$16 sps:$4 sm:$0xff]   ;;  %v8905_v15 = vld [vmem:[#allocation7 + $0x80] ss:$16 sps:$4 sm:$0xff]   ;;  %v8906_v16 = vld [vmem:[#allocation7 + $0x88] ss:$16 sps:$4 sm:$0xff]  }
  0x36   :  { %v8907_v17 = vld [vmem:[#allocation7 + $0x64] ss:$16 sps:$4 sm:$0xff]   ;;  %v8909_v18 = vld [vmem:[#allocation7 + $0x6c] ss:$16 sps:$4 sm:$0xff]   ;;  %v8911_v19 = vld [vmem:[#allocation7 + $0x60] ss:$16 sps:$4 sm:$0xff]  }
  0x37   :  { %353 = vmatpush1.bf16.msra.mxu0 %v8893_v7  ;;  %426 = vmatpush1.bf16.msra.mxu1 %v8894_v8  ;;  %v8912_v20 = vld [vmem:[#allocation7 + $0x68] ss:$16 sps:$4 sm:$0xff]   ;;  %v8913_v21 = vld [vmem:[#allocation7 + $0x44] ss:$16 sps:$4 sm:$0xff]   ;;  %v8915_v22 = vld [vmem:[#allocation7 + $0x4c] ss:$16 sps:$4 sm:$0xff]  }
  0x38   :  { %354 = vmatprep.subr.bf16.mxu0 %v8895_v9  ;;  %427 = vmatprep.subr.bf16.mxu1 %v8897_v10  ;;  %v8917_v23 = vld [vmem:[#allocation7 + $0x40] ss:$16 sps:$4 sm:$0xff]   ;;  %v8918_v24 = vld [vmem:[#allocation7 + $0x48] ss:$16 sps:$4 sm:$0xff]   ;;  %v8919_v25 = vld [vmem:[#allocation7 + $0x24] ss:$16 sps:$4 sm:$0xff]  }
  0x39   :  { %v8921_v26 = vld [vmem:[#allocation7 + $0x2c] ss:$16 sps:$4 sm:$0xff]   ;;  %v8923_v27 = vld [vmem:[#allocation7 + $0x20] ss:$16 sps:$4 sm:$0xff]   ;;  %v8924_v28 = vld [vmem:[#allocation7 + $0x28] ss:$16 sps:$4 sm:$0xff]  }
  0x3a   :  { %v8925_v29 = vld [vmem:[#allocation7 + $0x4] ss:$16 sps:$4 sm:$0xff]   ;;  %v8927_v30 = vld [vmem:[#allocation7 + $0xc] ss:$16 sps:$4 sm:$0xff]   ;;  %v8929_v31 = vld [vmem:[#allocation7] ss:$16 sps:$4 sm:$0xff]  }
  0x3b   :  { %355 = vmatpush1.bf16.msra.mxu0 %v8899_v11  ;;  %428 = vmatpush1.bf16.msra.mxu1 %v8900_v12  ;;  %v8930_v32 = vld [vmem:[#allocation7 + $0x8] ss:$16 sps:$4 sm:$0xff]   ;;  %v96_v33 = vld [vmem:[%s11769_s0] sm:$0xff]  ;;  %v8936_v36 = vld [vmem:[#allocation9 + $0xec] ss:$16 sps:$4 sm:$0xff]   ;;  %vm9898_vm0 = vmmov 0  }
  0x3c   :  { %356 = vmatprep.subr.bf16.mxu0 %v8901_v13  ;;  %429 = vmatprep.subr.bf16.mxu1 %v8903_v14  ;;  %v8933_v35 = vld [vmem:[#allocation9 + $0xe4] ss:$16 sps:$4 sm:$0xff]   ;;  %v8840_v37 = vpack.c.bf16 %v97_v34, %v96_v33  ;;  %v8931_v38 = vld [vmem:[#allocation9 + $0xe0] ss:$16 sps:$4 sm:$0xff]   ;;  %v8934_v39 = vld [vmem:[#allocation9 + $0xe8] ss:$16 sps:$4 sm:$0xff]  }
  0x3d   :  { %v8939_v40 = vld [vmem:[#allocation9 + $0xc4] ss:$16 sps:$4 sm:$0xff]   ;;  %v8942_v41 = vld [vmem:[#allocation9 + $0xcc] ss:$16 sps:$4 sm:$0xff]   ;;  %v8937_v42 = vld [vmem:[#allocation9 + $0xc0] ss:$16 sps:$4 sm:$0xff]  }
  0x3e   :  { %v8940_v43 = vld [vmem:[#allocation9 + $0xc8] ss:$16 sps:$4 sm:$0xff]   ;;  %v98_v44 = vld [vmem:[%s11769_s0 + $0x10] sm:$0xff]  ;;  %v8948_v47 = vld [vmem:[#allocation9 + $0xac] ss:$16 sps:$4 sm:$0xff]   ;;  %v9896_v14 = vmov 0.0|0.0  }
  0x3f   :  { %357 = vmatpush1.bf16.msra.mxu0 %v8905_v15  ;;  %430 = vmatpush1.bf16.msra.mxu1 %v8906_v16  ;;  %v99_v45 = vld [vmem:[%s11769_s0 + $0x18] sm:$0xff]  ;;  %v8945_v46 = vld [vmem:[#allocation9 + $0xa4] ss:$16 sps:$4 sm:$0xff]   ;;  %v8943_v49 = vld [vmem:[#allocation9 + $0xa0] ss:$16 sps:$4 sm:$0xff]  }
  0x40   :  { %358 = vmatprep.subr.bf16.mxu0 %v8907_v17  ;;  %431 = vmatprep.subr.bf16.mxu1 %v8909_v18  ;;  %v8841_v48 = vpack.c.bf16 %v99_v45, %v98_v44  ;;  %v8946_v50 = vld [vmem:[#allocation9 + $0xa8] ss:$16 sps:$4 sm:$0xff]   ;;  %v8951_v51 = vld [vmem:[#allocation9 + $0x84] ss:$16 sps:$4 sm:$0xff]   ;;  %v8954_v52 = vld [vmem:[#allocation9 + $0x8c] ss:$16 sps:$4 sm:$0xff]  }
  0x41   :  { %v8949_v53 = vld [vmem:[#allocation9 + $0x80] ss:$16 sps:$4 sm:$0xff]   ;;  %v8952_v54 = vld [vmem:[#allocation9 + $0x88] ss:$16 sps:$4 sm:$0xff]   ;;  %v8957_v57 = vld [vmem:[#allocation9 + $0x64] ss:$16 sps:$4 sm:$0xff]  }
  0x42   :  { %v100_v55 = vld [vmem:[%s11769_s0 + $0x20] sm:$0xff]  ;;  %v101_v56 = vld [vmem:[%s11769_s0 + $0x28] sm:$0xff]  ;;  %v102_v3 = vld [vmem:[%s11769_s0 + $0x30] sm:$0xff] }
  0x43   :  { %359 = vmatpush1.bf16.msra.mxu0 %v8911_v19  ;;  %432 = vmatpush1.bf16.msra.mxu1 %v8912_v20  ;;  %v8960_v58 = vld [vmem:[#allocation9 + $0x6c] ss:$16 sps:$4 sm:$0xff]   ;;  %v8955_v59 = vld [vmem:[#allocation9 + $0x60] ss:$16 sps:$4 sm:$0xff]   ;;  %v8958_v60 = vld [vmem:[#allocation9 + $0x68] ss:$16 sps:$4 sm:$0xff]   ;;  %v8842_v61 = vpack.c.bf16 %v101_v56, %v100_v55 }
  0x44   :  { %360 = vmatprep.subr.bf16.mxu0 %v8913_v21  ;;  %433 = vmatprep.subr.bf16.mxu1 %v8915_v22  ;;  %v8963_v62 = vld [vmem:[#allocation9 + $0x44] ss:$16 sps:$4 sm:$0xff]   ;;  %v8966_v63 = vld [vmem:[#allocation9 + $0x4c] ss:$16 sps:$4 sm:$0xff]   ;;  %v8961_v1 = vld [vmem:[#allocation9 + $0x40] ss:$16 sps:$4 sm:$0xff]  }
  0x45   :  { %v8964_v2 = vld [vmem:[#allocation9 + $0x48] ss:$16 sps:$4 sm:$0xff]   ;;  %v8969_v5 = vld [vmem:[#allocation9 + $0x24] ss:$16 sps:$4 sm:$0xff]   ;;  %v8972_v6 = vld [vmem:[#allocation9 + $0x2c] ss:$16 sps:$4 sm:$0xff]  }
  0x46   :  { %v103_v4 = vld [vmem:[%s11769_s0 + $0x38] sm:$0xff]  ;;  %v8967_v7 = vld [vmem:[#allocation9 + $0x20] ss:$16 sps:$4 sm:$0xff]   ;;  %v8975_v10 = vld [vmem:[#allocation9 + $0x4] ss:$16 sps:$4 sm:$0xff]  }
  0x47   :  { %361 = vmatpush1.bf16.msra.mxu0 %v8917_v23  ;;  %434 = vmatpush1.bf16.msra.mxu1 %v8918_v24  ;;  %v8970_v8 = vld [vmem:[#allocation9 + $0x28] ss:$16 sps:$4 sm:$0xff]   ;;  %v8843_v9 = vpack.c.bf16 %v103_v4, %v102_v3  ;;  %v8978_v11 = vld [vmem:[#allocation9 + $0xc] ss:$16 sps:$4 sm:$0xff]   ;;  %v8973_v12 = vld [vmem:[#allocation9] ss:$16 sps:$4 sm:$0xff]  }
  0x48   :  { %362 = vmatprep.subr.bf16.mxu0 %v8919_v25  ;;  %435 = vmatprep.subr.bf16.mxu1 %v8921_v26  ;;  %v8976_v13 = vld [vmem:[#allocation9 + $0x8] ss:$16 sps:$4 sm:$0xff]   ;;  %v10011_v15 = vld [vmem:[#allocation12 + $0xe4] ss:$16 sps:$4 sm:$0xff]   ;;  %v10013_v16 = vld [vmem:[#allocation12 + $0xe0] ss:$16 sps:$4 sm:$0xff]  }
  0x49   :  { %v10017_v17 = vld [vmem:[#allocation12 + $0xec] ss:$16 sps:$4 sm:$0xff]   ;;  %v10019_v18 = vld [vmem:[#allocation12 + $0xc4] ss:$16 sps:$4 sm:$0xff]   ;;  %v10021_v19 = vld [vmem:[#allocation12 + $0xe8] ss:$16 sps:$4 sm:$0xff]  }
  0x4a   :  { %v10023_v20 = vld [vmem:[#allocation12 + $0xc0] ss:$16 sps:$4 sm:$0xff]   ;;  %v10029_v21 = vld [vmem:[#allocation12 + $0xcc] ss:$16 sps:$4 sm:$0xff]   ;;  %v10031_v22 = vld [vmem:[#allocation12 + $0xa4] ss:$16 sps:$4 sm:$0xff]  }
  0x4b   :  { %363 = vmatpush1.bf16.msra.mxu0 %v8923_v27  ;;  %436 = vmatpush1.bf16.msra.mxu1 %v8924_v28  ;;  %v10033_v23 = vld [vmem:[#allocation12 + $0xc8] ss:$16 sps:$4 sm:$0xff]   ;;  %v10035_v24 = vld [vmem:[#allocation12 + $0xa0] ss:$16 sps:$4 sm:$0xff]   ;;  %v10041_v25 = vld [vmem:[#allocation12 + $0xac] ss:$16 sps:$4 sm:$0xff]  }
  0x4c   :  { %364 = vmatprep.subr.bf16.mxu0 %v8925_v29  ;;  %437 = vmatprep.subr.bf16.mxu1 %v8927_v30  ;;  %v10043_v26 = vld [vmem:[#allocation12 + $0x84] ss:$16 sps:$4 sm:$0xff]   ;;  %v10045_v27 = vld [vmem:[#allocation12 + $0xa8] ss:$16 sps:$4 sm:$0xff]   ;;  %v10047_v28 = vld [vmem:[#allocation12 + $0x80] ss:$16 sps:$4 sm:$0xff]  }
  0x4d   :  { %v10053_v29 = vld [vmem:[#allocation12 + $0x8c] ss:$16 sps:$4 sm:$0xff]   ;;  %v10055_v30 = vld [vmem:[#allocation12 + $0x64] ss:$16 sps:$4 sm:$0xff]   ;;  %v10095_v44 = vld [vmem:[#allocation12] ss:$16 sps:$4 sm:$0xff]  }
  0x4e   :  { %v10065_v33 = vld [vmem:[#allocation12 + $0x6c] ss:$16 sps:$4 sm:$0xff]   ;;  %v10067_v34 = vld [vmem:[#allocation12 + $0x44] ss:$16 sps:$4 sm:$0xff]  }
  0x4f   :  { %365 = vmatpush1.bf16.msra.mxu0 %v8929_v31  ;;  %438 = vmatpush1.bf16.msra.mxu1 %v8930_v32  ;;  %v10057_v31 = vld [vmem:[#allocation12 + $0x88] ss:$16 sps:$4 sm:$0xff]   ;;  %v10059_v32 = vld [vmem:[#allocation12 + $0x60] ss:$16 sps:$4 sm:$0xff]   ;;  %v10101_v45 = vld [vmem:[#allocation12 + $0xc] ss:$16 sps:$4 sm:$0xff]  }
  0x50   :  { %726 = vmatprep.subr.bf16.mxu0 %v8933_v35  ;;  %767 = vmatprep.subr.bf16.mxu1 %v8936_v36  ;;  %v10069_v35 = vld [vmem:[#allocation12 + $0x68] ss:$16 sps:$4 sm:$0xff]   ;;  %v10071_v36 = vld [vmem:[#allocation12 + $0x40] ss:$16 sps:$4 sm:$0xff]   ;;  %v10135_v55 = vld [vmem:[#allocation11 + $0xa4] ss:$16 sps:$4 sm:$0xff]  }
  0x51   :  { %11948 = vst [vmem:[#allocation23_spill] sm:$0xff] %v10135_v55  ;;  %v10137_v56 = vld [vmem:[#allocation11 + $0xac] ss:$16 sps:$4 sm:$0xff]   ;;  %v10167_v4 = vld [vmem:[#allocation11 + $0x44] ss:$16 sps:$4 sm:$0xff]  }
  0x52   :  { %383 = vmatmul.mubr.bf16.vlgmr.msra.gmra.mxu0 %v8840_v37  ;;  %456 = vmatmul.mubr.bf16.vlgmr.msra.gmra.mxu1 %v8840_v37  ;;  %v10077_v37 = vld [vmem:[#allocation12 + $0x4c] ss:$16 sps:$4 sm:$0xff]   ;;  %11949 = vst [vmem:[#allocation24_spill] sm:$0xff] %v10137_v56  ;;  %11960 = vst [vmem:[#allocation35_spill] sm:$0xff] %v10167_v4 }
  0x53   :  { %727 = vmatpush1.bf16.msra.mxu0 %v8931_v38  ;;  %768 = vmatpush1.bf16.msra.mxu1 %v8934_v39  ;;  %v10079_v38 = vld [vmem:[#allocation12 + $0x24] ss:$16 sps:$4 sm:$0xff]   ;;  %v10081_v39 = vld [vmem:[#allocation12 + $0x48] ss:$16 sps:$4 sm:$0xff]   ;;  %v10165_v3 = vld [vmem:[#allocation11 + $0x6c] ss:$16 sps:$4 sm:$0xff]  }
  0x54   :  { %728 = vmatprep.subr.bf16.mxu0 %v8939_v40  ;;  %769 = vmatprep.subr.bf16.mxu1 %v8942_v41  ;;  %v10083_v40 = vld [vmem:[#allocation12 + $0x20] ss:$16 sps:$4 sm:$0xff]   ;;  %v10089_v41 = vld [vmem:[#allocation12 + $0x2c] ss:$16 sps:$4 sm:$0xff]   ;;  %11959 = vst [vmem:[#allocation34_spill] sm:$0xff] %v10165_v3 }
  0x55   :  { %392 = vmatprep.mubr.bf16.mxu0 %v11779_v0  ;;  %465 = vmatprep.mubr.bf16.mxu1 %v11779_v0 }
  0x57   :  { %729 = vmatpush1.bf16.msra.mxu0 %v8937_v42  ;;  %770 = vmatpush1.bf16.msra.mxu1 %v8940_v43  ;;  %v10091_v42 = vld [vmem:[#allocation12 + $0x4] ss:$16 sps:$4 sm:$0xff]   ;;  %v10093_v43 = vld [vmem:[#allocation12 + $0x28] ss:$16 sps:$4 sm:$0xff]  }
  0x58   :  { %730 = vmatprep.subr.bf16.mxu0 %v8945_v46  ;;  %771 = vmatprep.subr.bf16.mxu1 %v8948_v47  ;;  %v10103_v46 = vld [vmem:[#allocation12 + $0x8] ss:$16 sps:$4 sm:$0xff]   ;;  %v10109_v47 = vld [vmem:[#allocation11 + $0xe4] ss:$16 sps:$4 sm:$0xff]  }
  0x5a   :  { %393 = vmatmul.mubr.bf16.gmra.mxu0 %v8841_v48  ;;  %466 = vmatmul.mubr.bf16.gmra.mxu1 %v8841_v48  ;;  %v10111_v48 = vld [vmem:[#allocation11 + $0xec] ss:$16 sps:$4 sm:$0xff]  }
  0x5b   :  { %731 = vmatpush1.bf16.msra.mxu0 %v8943_v49  ;;  %772 = vmatpush1.bf16.msra.mxu1 %v8946_v50  ;;  %v10113_v49 = vld [vmem:[#allocation11 + $0xe0] ss:$16 sps:$4 sm:$0xff]   ;;  %v10115_v50 = vld [vmem:[#allocation11 + $0xe8] ss:$16 sps:$4 sm:$0xff]  }
  0x5c   :  { %732 = vmatprep.subr.bf16.mxu0 %v8951_v51  ;;  %773 = vmatprep.subr.bf16.mxu1 %v8954_v52  ;;  %11942 = vst [vmem:[#allocation17_spill] sm:$0xff] %v10113_v49  ;;  %11943 = vst [vmem:[#allocation18_spill] sm:$0xff] %v10115_v50  ;;  %v10122_v51 = vld [vmem:[#allocation11 + $0xc4] ss:$16 sps:$4 sm:$0xff]   ;;  %v10124_v52 = vld [vmem:[#allocation11 + $0xcc] ss:$16 sps:$4 sm:$0xff]  }
  0x5d   :  { %402 = vmatprep.mubr.bf16.mxu0 %v11779_v0  ;;  %475 = vmatprep.mubr.bf16.mxu1 %v11779_v0  ;;  %11944 = vst [vmem:[#allocation19_spill] sm:$0xff] %v10122_v51  ;;  %11945 = vst [vmem:[#allocation20_spill] sm:$0xff] %v10124_v52 }
  0x5f   :  { %733 = vmatpush1.bf16.msra.mxu0 %v8949_v53  ;;  %774 = vmatpush1.bf16.msra.mxu1 %v8952_v54  ;;  %v10127_v53 = vld [vmem:[#allocation11 + $0xc0] ss:$16 sps:$4 sm:$0xff]   ;;  %v10129_v54 = vld [vmem:[#allocation11 + $0xc8] ss:$16 sps:$4 sm:$0xff]  }
  0x60   :  { %734 = vmatprep.subr.bf16.mxu0 %v8957_v57  ;;  %775 = vmatprep.subr.bf16.mxu1 %v8960_v58  ;;  %11946 = vst [vmem:[#allocation21_spill] sm:$0xff] %v10127_v53  ;;  %11947 = vst [vmem:[#allocation22_spill] sm:$0xff] %v10129_v54  ;;  %v10139_v57 = vld [vmem:[#allocation11 + $0xa0] ss:$16 sps:$4 sm:$0xff]   ;;  %v10141_v58 = vld [vmem:[#allocation11 + $0xa8] ss:$16 sps:$4 sm:$0xff]  }
  0x61   :  { %11950 = vst [vmem:[#allocation25_spill] sm:$0xff] %v10139_v57  ;;  %11951 = vst [vmem:[#allocation26_spill] sm:$0xff] %v10141_v58 }
  0x62   :  { %403 = vmatmul.mubr.bf16.gmra.mxu0 %v8842_v61  ;;  %476 = vmatmul.mubr.bf16.gmra.mxu1 %v8842_v61  ;;  %v10151_v61 = vld [vmem:[#allocation11 + $0x80] ss:$16 sps:$4 sm:$0xff]  }
  0x63   :  { %735 = vmatpush1.bf16.msra.mxu0 %v8955_v59  ;;  %776 = vmatpush1.bf16.msra.mxu1 %v8958_v60  ;;  %v10147_v59 = vld [vmem:[#allocation11 + $0x84] ss:$16 sps:$4 sm:$0xff]   ;;  %v10149_v60 = vld [vmem:[#allocation11 + $0x8c] ss:$16 sps:$4 sm:$0xff]   ;;  %11954 = vst [vmem:[#allocation29_spill] sm:$0xff] %v10151_v61 }
  0x64   :  { %736 = vmatprep.subr.bf16.mxu0 %v8963_v62  ;;  %777 = vmatprep.subr.bf16.mxu1 %v8966_v63  ;;  %11952 = vst [vmem:[#allocation27_spill] sm:$0xff] %v10147_v59  ;;  %11953 = vst [vmem:[#allocation28_spill] sm:$0xff] %v10149_v60  ;;  %v10153_v62 = vld [vmem:[#allocation11 + $0x88] ss:$16 sps:$4 sm:$0xff]   ;;  %v10159_v63 = vld [vmem:[#allocation11 + $0x60] ss:$16 sps:$4 sm:$0xff]  }
  0x65   :  { %412 = vmatprep.mubr.bf16.mxu0 %v11779_v0  ;;  %485 = vmatprep.mubr.bf16.mxu1 %v11779_v0  ;;  %11955 = vst [vmem:[#allocation30_spill] sm:$0xff] %v10153_v62  ;;  %11956 = vst [vmem:[#allocation31_spill] sm:$0xff] %v10159_v63 }
  0x67   :  { %737 = vmatpush1.bf16.msra.mxu0 %v8961_v1  ;;  %778 = vmatpush1.bf16.msra.mxu1 %v8964_v2  ;;  %v10161_v1 = vld [vmem:[#allocation11 + $0x64] ss:$16 sps:$4 sm:$0xff]   ;;  %v10163_v2 = vld [vmem:[#allocation11 + $0x68] ss:$16 sps:$4 sm:$0xff]  }
  0x68   :  { %738 = vmatprep.subr.bf16.mxu0 %v8969_v5  ;;  %779 = vmatprep.subr.bf16.mxu1 %v8972_v6  ;;  %11957 = vst [vmem:[#allocation32_spill] sm:$0xff] %v10161_v1  ;;  %11958 = vst [vmem:[#allocation33_spill] sm:$0xff] %v10163_v2  ;;  %v10170_v5 = vld [vmem:[#allocation11 + $0x4c] ss:$16 sps:$4 sm:$0xff]   ;;  %v10174_v6 = vld [vmem:[#allocation11 + $0x40] ss:$16 sps:$4 sm:$0xff]  }
  0x69   :  { %11961 = vst [vmem:[#allocation36_spill] sm:$0xff] %v10170_v5  ;;  %11962 = vst [vmem:[#allocation37_spill] sm:$0xff] %v10174_v6 }
  0x6a   :  { %413 = vmatmul.mubr.bf16.gmra.mxu0 %v8843_v9  ;;  %486 = vmatmul.mubr.bf16.gmra.mxu1 %v8843_v9  ;;  %v10183_v9 = vld [vmem:[#allocation11 + $0x20] ss:$16 sps:$4 sm:$0xff]  }
  0x6b   :  { %739 = vmatpush1.bf16.msra.mxu0 %v8967_v7  ;;  %780 = vmatpush1.bf16.msra.mxu1 %v8970_v8  ;;  %v10178_v7 = vld [vmem:[#allocation11 + $0x48] ss:$16 sps:$4 sm:$0xff]   ;;  %v10180_v8 = vld [vmem:[#allocation11 + $0x24] ss:$16 sps:$4 sm:$0xff]   ;;  %11965 = vst [vmem:[#allocation40_spill] sm:$0xff] %v10183_v9 }
  0x6c   :  { %740 = vmatprep.subr.bf16.mxu0 %v8975_v10  ;;  %781 = vmatprep.subr.bf16.mxu1 %v8978_v11  ;;  %11963 = vst [vmem:[#allocation38_spill] sm:$0xff] %v10178_v7  ;;  %11964 = vst [vmem:[#allocation39_spill] sm:$0xff] %v10180_v8  ;;  %v10185_v10 = vld [vmem:[#allocation11 + $0x2c] ss:$16 sps:$4 sm:$0xff]   ;;  %v10187_v11 = vld [vmem:[#allocation11 + $0x28] ss:$16 sps:$4 sm:$0xff]  }
  0x6d   :  { %758 = vmatprep.mubr.bf16.mxu0 %v11779_v0  ;;  %799 = vmatprep.mubr.bf16.mxu1 %v11779_v0  ;;  %11966 = vst [vmem:[#allocation41_spill] sm:$0xff] %v10185_v10  ;;  %11967 = vst [vmem:[#allocation42_spill] sm:$0xff] %v10187_v11 }
  0x6f   :  { %741 = vmatpush1.bf16.msra.mxu0 %v8973_v12  ;;  %782 = vmatpush1.bf16.msra.mxu1 %v8976_v13  ;;  %v10189_v12 = vld [vmem:[#allocation11 + $0x4] ss:$16 sps:$4 sm:$0xff]   ;;  %v10192_v13 = vld [vmem:[#allocation11 + $0xc] ss:$16 sps:$4 sm:$0xff]  }
  0x70   :  { %1066 = vmatprep.subr.bf16.mxu0 %v10011_v15  ;;  %1107 = vmatprep.subr.bf16.mxu1 %v10017_v17  ;;  %11968 = vst [vmem:[#allocation43_spill] sm:$0xff] %v10189_v12  ;;  %11969 = vst [vmem:[#allocation44_spill] sm:$0xff] %v10192_v13 }
  0x72   :  { %759 = vmatmul.mubr.bf16.vlgmr.msra.gmra.mxu0 %v9896_v14  ;;  %800 = vmatmul.mubr.bf16.vlgmr.msra.gmra.mxu1 %v9896_v14 }
  0x73   :  { %1098 = vmatprep.mubr.bf16.mxu0 %v11779_v0  ;;  %1139 = vmatprep.mubr.bf16.mxu1 %v11779_v0 }
  0x74   :  { %1067 = vmatpush1.bf16.msra.mxu0 %v10013_v16  ;;  %1108 = vmatpush1.bf16.msra.mxu1 %v10021_v19 }
  0x75   :  { %1068 = vmatprep.subr.bf16.mxu0 %v10019_v18  ;;  %1109 = vmatprep.subr.bf16.mxu1 %v10029_v21 }
  0x78   :  { %1069 = vmatpush1.bf16.msra.mxu0 %v10023_v20  ;;  %1110 = vmatpush1.bf16.msra.mxu1 %v10033_v23 }
  0x79   :  { %1070 = vmatprep.subr.bf16.mxu0 %v10031_v22  ;;  %1111 = vmatprep.subr.bf16.mxu1 %v10041_v25 }
  0x7c   :  { %1071 = vmatpush1.bf16.msra.mxu0 %v10035_v24  ;;  %1112 = vmatpush1.bf16.msra.mxu1 %v10045_v27 }
  0x7d   :  { %1072 = vmatprep.subr.bf16.mxu0 %v10043_v26  ;;  %1113 = vmatprep.subr.bf16.mxu1 %v10053_v29 }
  0x80   :  { %1073 = vmatpush1.bf16.msra.mxu0 %v10047_v28  ;;  %1114 = vmatpush1.bf16.msra.mxu1 %v10057_v31 }
  0x81   :  { %1074 = vmatprep.subr.bf16.mxu0 %v10055_v30  ;;  %1115 = vmatprep.subr.bf16.mxu1 %v10065_v33 }
  0x84   :  { %1075 = vmatpush1.bf16.msra.mxu0 %v10059_v32  ;;  %1116 = vmatpush1.bf16.msra.mxu1 %v10069_v35 }
  0x85   :  { %1076 = vmatprep.subr.bf16.mxu0 %v10067_v34  ;;  %1117 = vmatprep.subr.bf16.mxu1 %v10077_v37 }
  0x88   :  { %1077 = vmatpush1.bf16.msra.mxu0 %v10071_v36  ;;  %1118 = vmatpush1.bf16.msra.mxu1 %v10081_v39 }
  0x89   :  { %1078 = vmatprep.subr.bf16.mxu0 %v10079_v38  ;;  %1119 = vmatprep.subr.bf16.mxu1 %v10089_v41 }
  0x8c   :  { %1079 = vmatpush1.bf16.msra.mxu0 %v10083_v40  ;;  %1120 = vmatpush1.bf16.msra.mxu1 %v10093_v43 }
  0x8d   :  { %1080 = vmatprep.subr.bf16.mxu0 %v10091_v42  ;;  %1121 = vmatprep.subr.bf16.mxu1 %v10101_v45 }
  0x90   :  { %1081 = vmatpush1.bf16.msra.mxu0 %v10095_v44  ;;  %1122 = vmatpush1.bf16.msra.mxu1 %v10103_v46 }
  0x91   :  { %1308 = vmatprep.subr.bf16.mxu0 %v10109_v47  ;;  %1349 = vmatprep.subr.bf16.mxu1 %v10111_v48 }
  0x93   :  { %1099 = vmatmul.mubr.bf16.vlgmr.msra.gmra.mxu0 %v9896_v14  ;;  %1140 = vmatmul.mubr.bf16.vlgmr.msra.gmra.mxu1 %v9896_v14  ;;  %v10197_v14 = vld [vmem:[#allocation11] ss:$16 sps:$4 sm:$0xff]  }
  0x94   :  { %1340 = vmatprep.mubr.bf16.mxu0 %v11779_v0  ;;  %1309 = vmatpush1.bf16.msra.mxu0 %v10113_v49  ;;  %11970 = vst [vmem:[#allocation45_spill] sm:$0xff] %v10197_v14 }
  0x95   :  { %1350 = vmatpush1.bf16.msra.mxu1 %v10115_v50  ;;  %1381 = vmatprep.mubr.bf16.mxu1 %v11779_v0  ;;  %v10199_v0 = vld [vmem:[#allocation11 + $0x8] ss:$16 sps:$4 sm:$0xff]  }
  0x96   :  { %1310 = vmatprep.subr.bf16.mxu0 %v10122_v51  ;;  %1351 = vmatprep.subr.bf16.mxu1 %v10124_v52  ;;  %11971 = vst [vmem:[#allocation46_spill] sm:$0xff] %v10199_v0 }
  0x98   :  { %1311 = vmatpush1.bf16.msra.mxu0 %v10127_v53 }
  0x99   :  { %1352 = vmatpush1.bf16.msra.mxu1 %v10129_v54  ;;  %1312 = vmatprep.subr.bf16.mxu0 %v10135_v55 }
  0x9a   :  { %1353 = vmatprep.subr.bf16.mxu1 %v10137_v56 }
  0x9c   :  { %1313 = vmatpush1.bf16.msra.mxu0 %v10139_v57 }
  0x9d   :  { %1354 = vmatpush1.bf16.msra.mxu1 %v10141_v58  ;;  %1314 = vmatprep.subr.bf16.mxu0 %v10147_v59 }
  0x9e   :  { %1355 = vmatprep.subr.bf16.mxu1 %v10149_v60 }
  0xa0   :  { %1315 = vmatpush1.bf16.msra.mxu0 %v10151_v61 }
  0xa1   :  { %1356 = vmatpush1.bf16.msra.mxu1 %v10153_v62  ;;  %1316 = vmatprep.subr.bf16.mxu0 %v10161_v1 }
  0xa2   :  { %1357 = vmatprep.subr.bf16.mxu1 %v10165_v3 }
  0xa4   :  { %1317 = vmatpush1.bf16.msra.mxu0 %v10159_v63 }
  0xa5   :  { %1358 = vmatpush1.bf16.msra.mxu1 %v10163_v2  ;;  %1318 = vmatprep.subr.bf16.mxu0 %v10167_v4 }
  0xa6   :  { %1359 = vmatprep.subr.bf16.mxu1 %v10170_v5 }
  0xa8   :  { %1319 = vmatpush1.bf16.msra.mxu0 %v10174_v6 }
  0xa9   :  { %1360 = vmatpush1.bf16.msra.mxu1 %v10178_v7  ;;  %1320 = vmatprep.subr.bf16.mxu0 %v10180_v8  ;;  %v9771_v7 = vld [vmem:[#allocation9 + $0xe4] ss:$16 sps:$4 sm:$0xff]   ;;  %v9772_v8 = vld [vmem:[#allocation9 + $0xec] ss:$16 sps:$4 sm:$0xff]  }
  0xaa   :  { %1361 = vmatprep.subr.bf16.mxu1 %v10185_v10  ;;  %v146_v10 = vlaneseq }
  0xac   :  { %1321 = vmatpush1.bf16.msra.mxu0 %v10183_v9  ;;  %v147_v6 = vshrl.u32 %v146_v10, 7 }
  0xad   :  { %1362 = vmatpush1.bf16.msra.mxu1 %v10187_v11  ;;  %1322 = vmatprep.subr.bf16.mxu0 %v10189_v12 }
  0xae   :  { %1363 = vmatprep.subr.bf16.mxu1 %v10192_v13  ;;  %v10207_v5 = vsub.s32 2, %v147_v6  ;;  %v10209_v4 = vsub.s32 0, %v147_v6  ;;  %v10211_v9 = vsub.s32 3, %v147_v6  ;;  %v144_v13 = vld [vmem:[%s11772_s3] sm:$0xf]  ;;  %v10229_v3 = vsub.s32 1, %v147_v6 }
  0xb0   :  { %1323 = vmatpush1.bf16.msra.mxu0 %v10197_v14  ;;  %11972 = vst [vmem:[#allocation47_spill] sm:$0xff] %v10209_v4  ;;  %v149_v10 = vrot.slane %v144_v13, %v10209_v4  ;;  %v10227_v11 = vrot.slane %v144_v13, %v10211_v9  ;;  %11973 = vst [vmem:[#allocation48_spill] sm:$0xff] %v10229_v3  ;;  %v10242_v56 = vrot.slane %v144_v13, %v10229_v3 }
  0xb1   :  { %1364 = vmatpush1.bf16.msra.mxu1 %v10199_v0  ;;  %1642 = vmatprep.subr.bf16.mxu0 %v9771_v7  ;;  %v10219_v0 = vrot.slane %v144_v13, %v10207_v5 }
  0xb2   :  { %1683 = vmatprep.subr.bf16.mxu1 %v9772_v8 }
 0x112   :  { %v384_v12 = vpop.f32.mrf.mxu0  ;;  %v10216_v14 = vpop.f32.mrf.mxu1 }
 0x114   :  { %v10221_v7 = vpop.f32.mrf.mxu0  ;;  %v10223_v8 = vpop.f32.mrf.mxu1 }
 0x116   :  { %v388_v2 = vpop.f32.mrf.mxu0  ;;  %v461_v63 = vpop.f32.mrf.mxu1 }
 0x117   :  { %v10231_v1 = vadd.f32 %v388_v2, %v149_v10  ;;  %v10234_v62 = vadd.f32 %v461_v63, %v10219_v0 }
 0x118   :  { %v10236_v61 = vpop.f32.mrf.mxu0  ;;  %v463_v60 = vpop.f32.mrf.mxu1 }
 0x119   :  { %11974 = vst [vmem:[#allocation49_spill] sm:$0xff] %v10234_v62  ;;  %v10239_v59 = vadd.f32 %v463_v60, %v10227_v11 }
 0x11a   :  { %v394_v58 = vpop.f32.mrf.mxu0  ;;  %v467_v57 = vpop.f32.mrf.mxu1 }
 0x11b   :  { %11975 = vst [vmem:[#allocation50_spill] sm:$0xff] %v10239_v59  ;;  %v10244_v55 = vadd.f32 %v394_v58, %v149_v10  ;;  %v10247_v6 = vadd.f32 %v467_v57, %v10219_v0 }
 0x11c   :  { %v396_v2 = vpop.f32.mrf.mxu0  ;;  %v469_v54 = vpop.f32.mrf.mxu1 }
 0x11d   :  { %11976 = vst [vmem:[#allocation51_spill] sm:$0xff] %v10244_v55  ;;  %11977 = vst [vmem:[#allocation52_spill] sm:$0xff] %v10247_v6  ;;  %v10250_v63 = vadd.f32 %v396_v2, %v10242_v56  ;;  %v10253_v53 = vadd.f32 %v469_v54, %v10227_v11 }
 0x11e   :  { %v398_v60 = vpop.f32.mrf.mxu0  ;;  %v471_v52 = vpop.f32.mrf.mxu1 }
 0x11f   :  { %11978 = vst [vmem:[#allocation53_spill] sm:$0xff] %v10250_v63  ;;  %11979 = vst [vmem:[#allocation54_spill] sm:$0xff] %v10253_v53  ;;  %v10255_v51 = vadd.f32 %v398_v60, %v149_v10  ;;  %v10258_v13 = vadd.f32 %v471_v52, %v10219_v0 }
 0x120   :  { %v400_v58 = vpop.f32.mrf.mxu0  ;;  %v473_v55 = vpop.f32.mrf.mxu1 }
 0x121   :  { %11980 = vst [vmem:[#allocation55_spill] sm:$0xff] %v10255_v51  ;;  %11981 = vst [vmem:[#allocation56_spill] sm:$0xff] %v10258_v13  ;;  %v10261_v57 = vadd.f32 %v400_v58, %v10242_v56  ;;  %v10264_v6 = vadd.f32 %v473_v55, %v10227_v11 }
 0x122   :  { %v404_v2 = vpop.f32.mrf.mxu0  ;;  %v477_v63 = vpop.f32.mrf.mxu1 }
 0x123   :  { %11982 = vst [vmem:[#allocation57_spill] sm:$0xff] %v10261_v57  ;;  %11983 = vst [vmem:[#allocation58_spill] sm:$0xff] %v10264_v6  ;;  %v10266_v50 = vadd.f32 %v404_v2, %v149_v10  ;;  %v10269_v54 = vadd.f32 %v477_v63, %v10219_v0 }
 0x124   :  { %v406_v60 = vpop.f32.mrf.mxu0  ;;  %v479_v51 = vpop.f32.mrf.mxu1 }
 0x125   :  { %11984 = vst [vmem:[#allocation59_spill] sm:$0xff] %v10266_v50  ;;  %11985 = vst [vmem:[#allocation60_spill] sm:$0xff] %v10269_v54  ;;  %v10272_v52 = vadd.f32 %v406_v60, %v10242_v56  ;;  %v10275_v13 = vadd.f32 %v479_v51, %v10227_v11 }
 0x126   :  { %v408_v58 = vpop.f32.mrf.mxu0  ;;  %v481_v57 = vpop.f32.mrf.mxu1 }
 0x127   :  { %11986 = vst [vmem:[#allocation61_spill] sm:$0xff] %v10272_v52  ;;  %11987 = vst [vmem:[#allocation62_spill] sm:$0xff] %v10275_v13  ;;  %v10277_v53 = vadd.f32 %v408_v58, %v149_v10  ;;  %v10280_v55 = vadd.f32 %v481_v57, %v10219_v0 }
 0x128   :  { %v410_v2 = vpop.f32.mrf.mxu0  ;;  %v483_v50 = vpop.f32.mrf.mxu1 }
 0x129   :  { %11988 = vst [vmem:[#allocation63_spill] sm:$0xff] %v10277_v53  ;;  %11989 = vst [vmem:[#allocation64_spill] sm:$0xff] %v10280_v55  ;;  %v10283_v63 = vadd.f32 %v410_v2, %v10242_v56  ;;  %v10286_v54 = vadd.f32 %v483_v50, %v10227_v11 }
 0x12a   :  { %v414_v60 = vpop.f32.mrf.mxu0  ;;  %v487_v52 = vpop.f32.mrf.mxu1 }
 0x12b   :  { %11990 = vst [vmem:[#allocation65_spill] sm:$0xff] %v10283_v63  ;;  %11991 = vst [vmem:[#allocation66_spill] sm:$0xff] %v10286_v54  ;;  %v10288_v6 = vadd.f32 %v414_v60, %v149_v10  ;;  %v10291_v51 = vadd.f32 %v487_v52, %v10219_v0  ;;  %v385_v54 = vadd.f32 %v384_v12, %v149_v10 }
 0x12c   :  { %v416_v58 = vpop.f32.mrf.mxu0  ;;  %v489_v53 = vpop.f32.mrf.mxu1 }
 0x12d   :  { %11992 = vst [vmem:[#allocation67_spill] sm:$0xff] %v10288_v6  ;;  %11993 = vst [vmem:[#allocation68_spill] sm:$0xff] %v10291_v51  ;;  %v10294_v57 = vadd.f32 %v416_v58, %v10242_v56  ;;  %v10297_v55 = vadd.f32 %v489_v53, %v10227_v11  ;;  %v387_v53 = vadd.f32 %v10221_v7, %v10242_v56 }
 0x12e   :  { %v418_v2 = vpop.f32.mrf.mxu0  ;;  %v491_v63 = vpop.f32.mrf.mxu1 }
 0x12f   :  { %11994 = vst [vmem:[#allocation69_spill] sm:$0xff] %v10294_v57  ;;  %11995 = vst [vmem:[#allocation70_spill] sm:$0xff] %v10297_v55  ;;  %v10299_v13 = vadd.f32 %v418_v2, %v149_v10  ;;  %v10302_v50 = vadd.f32 %v491_v63, %v10219_v0 }
 0x130   :  { %v420_v60 = vpop.f32.mrf.mxu0  ;;  %v493_v6 = vpop.f32.mrf.mxu1 }
 0x131   :  { %11996 = vst [vmem:[#allocation71_spill] sm:$0xff] %v10299_v13  ;;  %11997 = vst [vmem:[#allocation72_spill] sm:$0xff] %v10302_v50  ;;  %v10305_v52 = vadd.f32 %v420_v60, %v10242_v56  ;;  %v10308_v51 = vadd.f32 %v493_v6, %v10227_v11  ;;  %v460_v6 = vadd.f32 %v10223_v8, %v10227_v11 }
 0x132   :  { %v760_v58 = vpop.f32.mrf.mxu0  ;;  %v801_v57 = vpop.f32.mrf.mxu1 }
 0x133   :  { %11998 = vst [vmem:[#allocation73_spill] sm:$0xff] %v10305_v52  ;;  %11999 = vst [vmem:[#allocation74_spill] sm:$0xff] %v10308_v51  ;;  %v808_v55 = vadd.f32 %v760_v58, %v385_v54  ;;  %v458_v52 = vadd.f32 %v10216_v14, %v10219_v0 }
 0x134   :  { %v762_v2 = vpop.f32.mrf.mxu0  ;;  %v803_v13 = vpop.f32.mrf.mxu1 }
 0x135   :  { %v8047_v49 = vmul.f32 -1.442695, %v808_v55  ;;  %v809_v63 = vadd.f32 %v762_v2, %v387_v53  ;;  %v811_v51 = vadd.f32 %v803_v13, %v460_v6  ;;  %v810_v58 = vadd.f32 %v801_v57, %v458_v52  ;;  %v9774_v52 = vld [vmem:[#allocation9 + $0xe8] ss:$16 sps:$4 sm:$0xff]   ;;  %v9777_v6 = vld [vmem:[#allocation9 + $0xc0] ss:$16 sps:$4 sm:$0xff]  }
 0x136   :  { %v764_v50 = vpop.f32.mrf.mxu0  ;;  %v805_v62 = vpop.f32.mrf.mxu1 }
 0x137   :  { %9515 = vpow2.f32 %v8047_v49  ;;  %v8048_v12 = vmul.f32 -1.442695, %v809_v63  ;;  %v8049_v7 = vmul.f32 -1.442695, %v811_v51 }
 0x138   :  { %v765_v10 = vpop.f32.mrf.mxu0  ;;  %v806_v60 = vpop.f32.mrf.mxu1 }
 0x139   :  { %9517 = vpow2.f32 %v8048_v12  ;;  %v9775_v12 = vld [vmem:[#allocation9 + $0xc4] ss:$16 sps:$4 sm:$0xff]   ;;  %v9776_v10 = vld [vmem:[#allocation9 + $0xcc] ss:$16 sps:$4 sm:$0xff]   ;;  %v12000_v60 = vmov 0  }
 0x13a   :  { %9519 = vpow2.f32 %v8049_v7  ;;  %v9778_v7 = vld [vmem:[#allocation9 + $0xc8] ss:$16 sps:$4 sm:$0xff]  }
 0x144   :  { %v9516_v54 = vpop.eup %9515 }
 0x145   :  { %v815_v59 = vadd.f32 1.0, %v9516_v54  ;;  %v9779_v54 = vld [vmem:[#allocation9 + $0xa4] ss:$16 sps:$4 sm:$0xff]  }
 0x146   :  { %v9518_v55 = vpop.eup %9517 }
 0x147   :  { %9521 = vrcp.f32 %v815_v59  ;;  %v821_v62 = vadd.f32 1.0, %v9518_v55  ;;  %v9520_v49 = vpop.eup %9519  ;;  %v9773_v59 = vld [vmem:[#allocation9 + $0xe0] ss:$16 sps:$4 sm:$0xff]  }
 0x148   :  { %9523 = vtanh.f32 %v810_v58  ;;  %v828_v63 = vadd.f32 1.0, %v9520_v49  ;;  %v9780_v58 = vld [vmem:[#allocation9 + $0xac] ss:$16 sps:$4 sm:$0xff]   ;;  %v9781_v55 = vld [vmem:[#allocation9 + $0xa0] ss:$16 sps:$4 sm:$0xff]  }
 0x149   :  { %9525 = vrcp.f32 %v821_v62  ;;  %v9782_v62 = vld [vmem:[#allocation9 + $0xa8] ss:$16 sps:$4 sm:$0xff]   ;;  %v9783_v49 = vld [vmem:[#allocation9 + $0x84] ss:$16 sps:$4 sm:$0xff]  }
 0x14a   :  { %9527 = vrcp.f32 %v828_v63  ;;  %v9787_v63 = vld [vmem:[#allocation9 + $0x64] ss:$16 sps:$4 sm:$0xff]  }
 0x154   :  { %v9522_v50 = vpop.eup %9521 }
 0x155   :  { %v9524_v53 = vpop.eup %9523 }
 0x156   :  { %v9526_v2 = vpop.eup %9525  ;;  %v833_v8 = vmul.f32 %v9524_v53, %v9522_v50  ;;  %v9784_v50 = vld [vmem:[#allocation9 + $0x8c] ss:$16 sps:$4 sm:$0xff]   ;;  %v9785_v53 = vld [vmem:[#allocation9 + $0x80] ss:$16 sps:$4 sm:$0xff]  }
 0x157   :  { %v832_v11 = vmul.f32 0.0, %v9526_v2  ;;  %v9528_v0 = vpop.eup %9527  ;;  %v9786_v2 = vld [vmem:[#allocation9 + $0x88] ss:$16 sps:$4 sm:$0xff]  }
 0x159   :  { %v10316_v13 = vadd.f32 %v833_v8, %v832_v11  ;;  %v9788_v11 = vld [vmem:[#allocation9 + $0x6c] ss:$16 sps:$4 sm:$0xff]   ;;  %v9789_v8 = vld [vmem:[#allocation9 + $0x60] ss:$16 sps:$4 sm:$0xff]  }
 0x15b   :  { %9529 = vtanh.f32 %v10316_v13 }
 0x168   :  { %v9530_v14 = vpop.eup %9529 }
 0x169   :  { %v836_v51 = vmul.f32 %v9530_v14, %v9528_v0  ;;  %v9790_v0 = vld [vmem:[#allocation9 + $0x68] ss:$16 sps:$4 sm:$0xff]   ;;  %v9791_v14 = vld [vmem:[#allocation9 + $0x44] ss:$16 sps:$4 sm:$0xff]  }
 0x16b   :  { %v10319_v57 = vpack.c.bf16 %v836_v51, %v836_v51  ;;  %v9792_v51 = vld [vmem:[#allocation9 + $0x4c] ss:$16 sps:$4 sm:$0xff]  }
 0x16d   :  { %1341 = vmatmul.mubr.bf16.vlgmr.msra.gmra.mxu0 %v10319_v57  ;;  %1382 = vmatmul.mubr.bf16.vlgmr.msra.gmra.mxu1 %v10319_v57 }
 0x16e   :  { %1643 = vmatpush1.bf16.msra.mxu0 %v9773_v59  ;;  %1684 = vmatpush1.bf16.msra.mxu1 %v9774_v52  ;;  %v9793_v59 = vld [vmem:[#allocation9 + $0x40] ss:$16 sps:$4 sm:$0xff]   ;;  %v9794_v52 = vld [vmem:[#allocation9 + $0x48] ss:$16 sps:$4 sm:$0xff]  }
 0x16f   :  { %1644 = vmatprep.subr.bf16.mxu0 %v9775_v12  ;;  %1685 = vmatprep.subr.bf16.mxu1 %v9776_v10  ;;  %v9795_v12 = vld [vmem:[#allocation9 + $0x24] ss:$16 sps:$4 sm:$0xff]   ;;  %v9796_v10 = vld [vmem:[#allocation9 + $0x2c] ss:$16 sps:$4 sm:$0xff]  }
 0x170   :  { %1674 = vmatprep.mubr.bf16.mxu0 %v12000_v60  ;;  %1715 = vmatprep.mubr.bf16.mxu1 %v12000_v60 }
 0x172   :  { %1645 = vmatpush1.bf16.msra.mxu0 %v9777_v6  ;;  %1686 = vmatpush1.bf16.msra.mxu1 %v9778_v7  ;;  %v9797_v6 = vld [vmem:[#allocation9 + $0x20] ss:$16 sps:$4 sm:$0xff]   ;;  %v9798_v7 = vld [vmem:[#allocation9 + $0x28] ss:$16 sps:$4 sm:$0xff]  }
 0x173   :  { %1646 = vmatprep.subr.bf16.mxu0 %v9779_v54  ;;  %1687 = vmatprep.subr.bf16.mxu1 %v9780_v58  ;;  %v9799_v54 = vld [vmem:[#allocation9 + $0x4] ss:$16 sps:$4 sm:$0xff]   ;;  %v9800_v58 = vld [vmem:[#allocation9 + $0xc] ss:$16 sps:$4 sm:$0xff]  }
 0x176   :  { %1647 = vmatpush1.bf16.msra.mxu0 %v9781_v55  ;;  %1688 = vmatpush1.bf16.msra.mxu1 %v9782_v62  ;;  %v1100_v55 = vpop.f32.mrf.mxu0  ;;  %v9801_v62 = vld [vmem:[#allocation9] ss:$16 sps:$4 sm:$0xff]  }
 0x177   :  { %1648 = vmatprep.subr.bf16.mxu0 %v9783_v49  ;;  %1689 = vmatprep.subr.bf16.mxu1 %v9784_v50  ;;  %v9802_v49 = vld [vmem:[#allocation9 + $0x8] ss:$16 sps:$4 sm:$0xff]  }
 0x178   :  { %v1102_v50 = vpop.f32.mrf.mxu0 }
 0x17a   :  { %1649 = vmatpush1.bf16.msra.mxu0 %v9785_v53  ;;  %1690 = vmatpush1.bf16.msra.mxu1 %v9786_v2  ;;  %v1104_v53 = vpop.f32.mrf.mxu0  ;;  %v1141_v2 = vpop.f32.mrf.mxu1 }
 0x17b   :  { %1650 = vmatprep.subr.bf16.mxu0 %v9787_v63  ;;  %1691 = vmatprep.subr.bf16.mxu1 %v9788_v11 }
 0x17c   :  { %v1105_v63 = vpop.f32.mrf.mxu0  ;;  %v1143_v11 = vpop.f32.mrf.mxu1 }
 0x17e   :  { %1651 = vmatpush1.bf16.msra.mxu0 %v9789_v8  ;;  %1692 = vmatpush1.bf16.msra.mxu1 %v9790_v0 }
 0x17f   :  { %1652 = vmatprep.subr.bf16.mxu0 %v9791_v14  ;;  %1693 = vmatprep.subr.bf16.mxu1 %v9792_v51 }
 0x182   :  { %1653 = vmatpush1.bf16.msra.mxu0 %v9793_v59  ;;  %1694 = vmatpush1.bf16.msra.mxu1 %v9794_v52 }
 0x183   :  { %1654 = vmatprep.subr.bf16.mxu0 %v9795_v12  ;;  %1695 = vmatprep.subr.bf16.mxu1 %v9796_v10 }
 0x186   :  { %1655 = vmatpush1.bf16.msra.mxu0 %v9797_v6  ;;  %1696 = vmatpush1.bf16.msra.mxu1 %v9798_v7 }
 0x187   :  { %1656 = vmatprep.subr.bf16.mxu0 %v9799_v54  ;;  %1697 = vmatprep.subr.bf16.mxu1 %v9800_v58 }
 0x18a   :  { %1657 = vmatpush1.bf16.msra.mxu0 %v9801_v62  ;;  %1698 = vmatpush1.bf16.msra.mxu1 %v9802_v49 }
 0x18b   :  { %1982 = vmatprep.subr.bf16.mxu0 %v10011_v15  ;;  %2023 = vmatprep.subr.bf16.mxu1 %v10017_v17  ;;  %v1145_v15 = vpop.f32.mrf.mxu1  ;;  %v1390_v17 = vld [vmem:[%s11775_s6] sm:$0xf] }
 0x18d   :  { %1675 = vmatmul.mubr.bf16.vlgmr.msra.gmra.mxu0 %v10319_v57  ;;  %1716 = vmatmul.mubr.bf16.vlgmr.msra.gmra.mxu1 %v10319_v57 }
 0x18e   :  { %1983 = vmatpush1.bf16.msra.mxu0 %v10013_v16  ;;  %2024 = vmatpush1.bf16.msra.mxu1 %v10021_v19  ;;  %v1146_v16 = vpop.f32.mrf.mxu1 }
 0x18f   :  { %1984 = vmatprep.subr.bf16.mxu0 %v10019_v18  ;;  %2025 = vmatprep.subr.bf16.mxu1 %v10029_v21  ;;  %v1395_v18 = vrot.slane %v1390_v17, %v10209_v4 }
 0x190   :  { %2014 = vmatprep.mubr.bf16.mxu0 %v12000_v60  ;;  %2055 = vmatprep.mubr.bf16.mxu1 %v12000_v60 }
 0x192   :  { %1985 = vmatpush1.bf16.msra.mxu0 %v10023_v20  ;;  %2026 = vmatpush1.bf16.msra.mxu1 %v10033_v23 }
 0x193   :  { %1986 = vmatprep.subr.bf16.mxu0 %v10031_v22  ;;  %2027 = vmatprep.subr.bf16.mxu1 %v10041_v25  ;;  %v1399_v22 = vrot.slane %v1390_v17, %v10229_v3 }
 0x196   :  { %1987 = vmatpush1.bf16.msra.mxu0 %v10035_v24  ;;  %2028 = vmatpush1.bf16.msra.mxu1 %v10045_v27 }
 0x197   :  { %1988 = vmatprep.subr.bf16.mxu0 %v10043_v26  ;;  %2029 = vmatprep.subr.bf16.mxu1 %v10053_v29 }
 0x19a   :  { %1989 = vmatpush1.bf16.msra.mxu0 %v10047_v28  ;;  %2030 = vmatpush1.bf16.msra.mxu1 %v10057_v31 }
 0x19b   :  { %1990 = vmatprep.subr.bf16.mxu0 %v10055_v30  ;;  %2031 = vmatprep.subr.bf16.mxu1 %v10065_v33 }
 0x19e   :  { %1991 = vmatpush1.bf16.msra.mxu0 %v10059_v32  ;;  %2032 = vmatpush1.bf16.msra.mxu1 %v10069_v35  ;;  %v1407_v35 = vrot.slane %v1390_v17, %v10211_v9 }
 0x19f   :  { %1992 = vmatprep.subr.bf16.mxu0 %v10067_v34  ;;  %2033 = vmatprep.subr.bf16.mxu1 %v10077_v37 }
 0x1a2   :  { %1993 = vmatpush1.bf16.msra.mxu0 %v10071_v36  ;;  %2034 = vmatpush1.bf16.msra.mxu1 %v10081_v39 }
 0x1a3   :  { %1994 = vmatprep.subr.bf16.mxu0 %v10079_v38  ;;  %2035 = vmatprep.subr.bf16.mxu1 %v10089_v41  ;;  %v1403_v38 = vrot.slane %v1390_v17, %v10207_v5 }
 0x1a6   :  { %1995 = vmatpush1.bf16.msra.mxu0 %v10083_v40  ;;  %2036 = vmatpush1.bf16.msra.mxu1 %v10093_v43 }
 0x1a7   :  { %1996 = vmatprep.subr.bf16.mxu0 %v10091_v42  ;;  %2037 = vmatprep.subr.bf16.mxu1 %v10101_v45 }
 0x1aa   :  { %1997 = vmatpush1.bf16.msra.mxu0 %v10095_v44  ;;  %2038 = vmatpush1.bf16.msra.mxu1 %v10103_v46 }
 0x1ab   :  { %2224 = vmatprep.subr.bf16.mxu0 %v10109_v47  ;;  %2265 = vmatprep.subr.bf16.mxu1 %v10111_v48  ;;  %v391_v47 = vadd.f32 %v10236_v61, %v10242_v56  ;;  %v12001_v61 = vld [vmem:[#allocation50_spill] sm:$0xff] }
 0x22d   :  { %v1342_v19 = vpop.f32.mrf.mxu0  ;;  %v1383_v20 = vpop.f32.mrf.mxu1 }
 0x22e   :  { %v1343_v21 = vadd.f32 %v1342_v19, %v1100_v55  ;;  %v1384_v37 = vadd.f32 %v1383_v20, %v1141_v2 }
 0x22f   :  { %v1344_v23 = vpop.f32.mrf.mxu0  ;;  %v1385_v24 = vpop.f32.mrf.mxu1 }
 0x230   :  { %v1412_v25 = vadd.f32 %v1395_v18, %v1343_v21  ;;  %v1345_v26 = vadd.f32 %v1344_v23, %v1102_v50  ;;  %v1386_v34 = vadd.f32 %v1385_v24, %v1143_v11  ;;  %v1414_v41 = vadd.f32 %v1403_v38, %v1384_v37  ;;  %v12002_v50 = vld [vmem:[#allocation49_spill] sm:$0xff]  ;;  %v12005_v23 = vld [vmem:[#allocation19_spill] sm:$0xff]  ;;  %v12006_v24 = vld [vmem:[#allocation20_spill] sm:$0xff] }
 0x231   :  { %v1346_v27 = vpop.f32.mrf.mxu0  ;;  %v1387_v28 = vpop.f32.mrf.mxu1  ;;  %v12003_v21 = vld [vmem:[#allocation17_spill] sm:$0xff]  ;;  %v12012_v37 = vld [vmem:[#allocation26_spill] sm:$0xff] }
 0x232   :  { %v8114_v29 = vmul.f32 -1.442695, %v1412_v25  ;;  %v1413_v30 = vadd.f32 %v1399_v22, %v1345_v26  ;;  %v1415_v36 = vadd.f32 %v1407_v35, %v1386_v34  ;;  %v12004_v22 = vld [vmem:[#allocation18_spill] sm:$0xff]  ;;  %v12007_v28 = vld [vmem:[#allocation21_spill] sm:$0xff] }
 0x233   :  { %v1347_v31 = vpop.f32.mrf.mxu0  ;;  %v1388_v32 = vpop.f32.mrf.mxu1 }
 0x234   :  { %9531 = vpow2.f32 %v8114_v29  ;;  %v8115_v33 = vmul.f32 -1.442695, %v1413_v30  ;;  %v8116_v39 = vmul.f32 -1.442695, %v1415_v36  ;;  %v12008_v29 = vld [vmem:[#allocation22_spill] sm:$0xff]  ;;  %v12009_v31 = vld [vmem:[#allocation23_spill] sm:$0xff] }
 0x235   :  { %v12010_v32 = vld [vmem:[#allocation24_spill] sm:$0xff]  ;;  %v12011_v36 = vld [vmem:[#allocation25_spill] sm:$0xff] }
 0x236   :  { %9533 = vpow2.f32 %v8115_v33 }
 0x237   :  { %9535 = vpow2.f32 %v8116_v39  ;;  %v12013_v39 = vld [vmem:[#allocation27_spill] sm:$0xff] }
 0x241   :  { %v9532_v40 = vpop.eup %9531 }
 0x242   :  { %v1419_v42 = vadd.f32 1.0, %v9532_v40  ;;  %v12014_v40 = vld [vmem:[#allocation28_spill] sm:$0xff] }
 0x243   :  { %v9534_v43 = vpop.eup %9533 }
 0x244   :  { %9537 = vrcp.f32 %v1419_v42  ;;  %v1425_v44 = vadd.f32 1.0, %v9534_v43  ;;  %v9536_v0 = vpop.eup %9535  ;;  %v12016_v42 = vld [vmem:[#allocation30_spill] sm:$0xff]  ;;  %v12017_v43 = vld [vmem:[#allocation32_spill] sm:$0xff] }
 0x245   :  { %9539 = vtanh.f32 %v1414_v41  ;;  %v1432_v54 = vadd.f32 1.0, %v9536_v0  ;;  %v12015_v41 = vld [vmem:[#allocation29_spill] sm:$0xff] }
 0x246   :  { %9541 = vrcp.f32 %v1425_v44  ;;  %v12019_v44 = vld [vmem:[#allocation31_spill] sm:$0xff]  ;;  %v12026_v0 = vld [vmem:[#allocation41_spill] sm:$0xff] }
 0x24d   :  { %v1676_v45 = vpop.f32.mrf.mxu0  ;;  %v1717_v46 = vpop.f32.mrf.mxu1 }
 0x24e   :  { %v1724_v48 = vadd.f32 %v1676_v45, %v10231_v1  ;;  %v1726_v53 = vadd.f32 %v1717_v46, %v12002_v50  ;;  %v12020_v45 = vld [vmem:[#allocation33_spill] sm:$0xff]  ;;  %v12021_v46 = vld [vmem:[#allocation35_spill] sm:$0xff]  ;;  %v10428_v50 = vld [vmem:[#allocation9 + $0xcc] ss:$16 sps:$4 sm:$0xff]  }
 0x24f   :  { %v1678_v57 = vpop.f32.mrf.mxu0  ;;  %v1719_v8 = vpop.f32.mrf.mxu1 }
 0x250   :  { %v8149_v14 = vmul.f32 -1.442695, %v1724_v48  ;;  %v1725_v51 = vadd.f32 %v1678_v57, %v391_v47  ;;  %v1727_v1 = vadd.f32 %v1719_v8, %v12001_v61  ;;  %v12022_v47 = vld [vmem:[#allocation36_spill] sm:$0xff]  ;;  %v12023_v48 = vld [vmem:[#allocation37_spill] sm:$0xff]  ;;  %v12024_v57 = vld [vmem:[#allocation38_spill] sm:$0xff] }
 0x251   :  { %v9538_v59 = vpop.eup %9537  ;;  %v1680_v52 = vpop.f32.mrf.mxu0  ;;  %v12025_v8 = vld [vmem:[#allocation39_spill] sm:$0xff] }
 0x252   :  { %v1721_v12 = vpop.f32.mrf.mxu1  ;;  %v9540_v10 = vpop.eup %9539  ;;  %9543 = vpow2.f32 %v8149_v14  ;;  %v8150_v6 = vmul.f32 -1.442695, %v1725_v51  ;;  %v8151_v2 = vmul.f32 -1.442695, %v1727_v1  ;;  %v12028_v52 = vld [vmem:[#allocation42_spill] sm:$0xff] }
 0x253   :  { %v9542_v7 = vpop.eup %9541  ;;  %v1681_v58 = vpop.f32.mrf.mxu0  ;;  %v1437_v49 = vmul.f32 %v9540_v10, %v9538_v59  ;;  %v12027_v59 = vld [vmem:[#allocation40_spill] sm:$0xff]  ;;  %v12029_v12 = vld [vmem:[#allocation43_spill] sm:$0xff] }
 0x254   :  { %v1722_v55 = vpop.f32.mrf.mxu1  ;;  %v1436_v62 = vmul.f32 0.0, %v9542_v7  ;;  %9545 = vpow2.f32 %v8150_v6  ;;  %v12030_v10 = vld [vmem:[#allocation44_spill] sm:$0xff]  ;;  %v10412_v7 = vld [vmem:[#allocation9 + $0xe4] ss:$16 sps:$4 sm:$0xff]  }
 0x255   :  { %9547 = vrcp.f32 %v1432_v54  ;;  %v10414_v54 = vld [vmem:[#allocation9 + $0xec] ss:$16 sps:$4 sm:$0xff]   ;;  %v12031_v58 = vld [vmem:[#allocation45_spill] sm:$0xff] }
 0x256   :  { %v10373_v56 = vadd.f32 %v1437_v49, %v1436_v62  ;;  %v12032_v55 = vld [vmem:[#allocation46_spill] sm:$0xff]  ;;  %v10418_v62 = vld [vmem:[#allocation9 + $0xe0] ss:$16 sps:$4 sm:$0xff]   ;;  %v10426_v1 = vld [vmem:[#allocation9 + $0xc4] ss:$16 sps:$4 sm:$0xff]  }
 0x257   :  { %v10420_v49 = vld [vmem:[#allocation9 + $0xe8] ss:$16 sps:$4 sm:$0xff]  }
 0x258   :  { %9549 = vtanh.f32 %v10373_v56 }
 0x259   :  { %9551 = vtanh.f32 %v1726_v53  ;;  %v10434_v53 = vld [vmem:[#allocation9 + $0xc0] ss:$16 sps:$4 sm:$0xff]  }
 0x25a   :  { %9553 = vpow2.f32 %v8151_v2  ;;  %v10436_v2 = vld [vmem:[#allocation9 + $0xc8] ss:$16 sps:$4 sm:$0xff]  }
 0x25f   :  { %v9544_v63 = vpop.eup %9543 }
 0x260   :  { %v1731_v11 = vadd.f32 1.0, %v9544_v63  ;;  %v10440_v63 = vld [vmem:[#allocation9 + $0xa4] ss:$16 sps:$4 sm:$0xff]  }
 0x261   :  { %v9546_v15 = vpop.eup %9545 }
 0x262   :  { %9555 = vrcp.f32 %v1731_v11  ;;  %v1737_v16 = vadd.f32 1.0, %v9546_v15  ;;  %v9548_v17 = vpop.eup %9547  ;;  %v10442_v11 = vld [vmem:[#allocation9 + $0xac] ss:$16 sps:$4 sm:$0xff]   ;;  %v10448_v15 = vld [vmem:[#allocation9 + $0xa0] ss:$16 sps:$4 sm:$0xff]  }
 0x264   :  { %9557 = vrcp.f32 %v1737_v16  ;;  %v10450_v16 = vld [vmem:[#allocation9 + $0xa8] ss:$16 sps:$4 sm:$0xff]  }
 0x265   :  { %v9550_v18 = vpop.eup %9549 }
 0x266   :  { %v1440_v19 = vmul.f32 %v9550_v18, %v9548_v17  ;;  %v9552_v25 = vpop.eup %9551  ;;  %v10454_v17 = vld [vmem:[#allocation9 + $0x84] ss:$16 sps:$4 sm:$0xff]   ;;  %v10456_v18 = vld [vmem:[#allocation9 + $0x8c] ss:$16 sps:$4 sm:$0xff]  }
 0x267   :  { %v9554_v26 = vpop.eup %9553 }
 0x268   :  { %v1789_v20 = vpack.c.bf16 %v1440_v19, %v1440_v19  ;;  %v1744_v34 = vadd.f32 1.0, %v9554_v26  ;;  %v10460_v19 = vld [vmem:[#allocation9 + $0x80] ss:$16 sps:$4 sm:$0xff]   ;;  %v10480_v26 = vld [vmem:[#allocation9 + $0x4c] ss:$16 sps:$4 sm:$0xff]  }
 0x26a   :  { %2015 = vmatmul.mubr.bf16.vlgmr.msra.gmra.mxu0 %v1789_v20  ;;  %2056 = vmatmul.mubr.bf16.vlgmr.msra.gmra.mxu1 %v1789_v20  ;;  %9559 = vrcp.f32 %v1744_v34  ;;  %v10462_v20 = vld [vmem:[#allocation9 + $0x88] ss:$16 sps:$4 sm:$0xff]   ;;  %v10504_v34 = vld [vmem:[#allocation9 + $0xc] ss:$16 sps:$4 sm:$0xff]  }
 0x26b   :  { %2225 = vmatpush1.bf16.msra.mxu0 %v12003_v21  ;;  %2266 = vmatpush1.bf16.msra.mxu1 %v12004_v22  ;;  %v10466_v21 = vld [vmem:[#allocation9 + $0x64] ss:$16 sps:$4 sm:$0xff]   ;;  %v10468_v22 = vld [vmem:[#allocation9 + $0x6c] ss:$16 sps:$4 sm:$0xff]  }
 0x26c   :  { %2226 = vmatprep.subr.bf16.mxu0 %v12005_v23  ;;  %2267 = vmatprep.subr.bf16.mxu1 %v12006_v24  ;;  %v10472_v23 = vld [vmem:[#allocation9 + $0x60] ss:$16 sps:$4 sm:$0xff]   ;;  %v10474_v24 = vld [vmem:[#allocation9 + $0x68] ss:$16 sps:$4 sm:$0xff]  }
 0x26d   :  { %2256 = vmatprep.mubr.bf16.mxu0 %v12000_v60  ;;  %2297 = vmatprep.mubr.bf16.mxu1 %v12000_v60 }
 0x26f   :  { %v9556_v27 = vpop.eup %9555  ;;  %2227 = vmatpush1.bf16.msra.mxu0 %v12007_v28  ;;  %2268 = vmatpush1.bf16.msra.mxu1 %v12008_v29  ;;  %v10486_v28 = vld [vmem:[#allocation9 + $0x48] ss:$16 sps:$4 sm:$0xff]   ;;  %v10490_v29 = vld [vmem:[#allocation9 + $0x24] ss:$16 sps:$4 sm:$0xff]  }
 0x270   :  { %v1749_v30 = vmul.f32 %v9556_v27, %v9552_v25  ;;  %2228 = vmatprep.subr.bf16.mxu0 %v12009_v31  ;;  %2269 = vmatprep.subr.bf16.mxu1 %v12010_v32  ;;  %v10478_v25 = vld [vmem:[#allocation9 + $0x44] ss:$16 sps:$4 sm:$0xff]   ;;  %v10484_v27 = vld [vmem:[#allocation9 + $0x40] ss:$16 sps:$4 sm:$0xff]   ;;  %v10498_v32 = vld [vmem:[#allocation9 + $0x28] ss:$16 sps:$4 sm:$0xff]  }
 0x271   :  { %v9558_v33 = vpop.eup %9557  ;;  %v10496_v31 = vld [vmem:[#allocation9 + $0x20] ss:$16 sps:$4 sm:$0xff]  }
 0x272   :  { %v1748_v35 = vmul.f32 %v9558_v33, %v10316_v13  ;;  %v12018_v13 = vld [vmem:[#allocation34_spill] sm:$0xff]  ;;  %v10502_v33 = vld [vmem:[#allocation9 + $0x4] ss:$16 sps:$4 sm:$0xff]  }
 0x273   :  { %2229 = vmatpush1.bf16.msra.mxu0 %v12011_v36  ;;  %2270 = vmatpush1.bf16.msra.mxu1 %v12012_v37  ;;  %v10510_v36 = vld [vmem:[#allocation9 + $0x8] ss:$16 sps:$4 sm:$0xff]   ;;  %v10520_v37 = vld [vmem:[#allocation12 + $0xe4] ss:$16 sps:$4 sm:$0xff]  }
 0x274   :  { %v10391_v38 = vadd.f32 %v1749_v30, %v1748_v35  ;;  %2230 = vmatprep.subr.bf16.mxu0 %v12013_v39  ;;  %2271 = vmatprep.subr.bf16.mxu1 %v12014_v40  ;;  %v10492_v30 = vld [vmem:[#allocation9 + $0x2c] ss:$16 sps:$4 sm:$0xff]   ;;  %v10508_v35 = vld [vmem:[#allocation9] ss:$16 sps:$4 sm:$0xff]  }
 0x275   :  { %v10522_v39 = vld [vmem:[#allocation12 + $0xec] ss:$16 sps:$4 sm:$0xff]   ;;  %v10524_v40 = vld [vmem:[#allocation12 + $0xe0] ss:$16 sps:$4 sm:$0xff]  }
 0x276   :  { %9561 = vtanh.f32 %v10391_v38  ;;  %12033 = vst [vmem:[#allocation50_spill] sm:$0xff] %v10522_v39  ;;  %12034 = vst [vmem:[#allocation49_spill] sm:$0xff] %v10524_v40 }
 0x277   :  { %2231 = vmatpush1.bf16.msra.mxu0 %v12015_v41  ;;  %2272 = vmatpush1.bf16.msra.mxu1 %v12016_v42  ;;  %v9560_v14 = vpop.eup %9559  ;;  %v10526_v41 = vld [vmem:[#allocation12 + $0xe8] ss:$16 sps:$4 sm:$0xff]   ;;  %v10532_v42 = vld [vmem:[#allocation12 + $0xc4] ss:$16 sps:$4 sm:$0xff]  }
 0x278   :  { %2232 = vmatprep.subr.bf16.mxu0 %v12017_v43  ;;  %2273 = vmatprep.subr.bf16.mxu1 %v12018_v13  ;;  %12035 = vst [vmem:[#allocation17_spill] sm:$0xff] %v10526_v41  ;;  %12036 = vst [vmem:[#allocation18_spill] sm:$0xff] %v10532_v42  ;;  %v10534_v43 = vld [vmem:[#allocation12 + $0xcc] ss:$16 sps:$4 sm:$0xff]   ;;  %v10536_v13 = vld [vmem:[#allocation12 + $0xc0] ss:$16 sps:$4 sm:$0xff]  }
 0x279   :  { %12037 = vst [vmem:[#allocation19_spill] sm:$0xff] %v10534_v43  ;;  %12038 = vst [vmem:[#allocation20_spill] sm:$0xff] %v10536_v13 }
 0x27b   :  { %2233 = vmatpush1.bf16.msra.mxu0 %v12019_v44  ;;  %2274 = vmatpush1.bf16.msra.mxu1 %v12020_v45  ;;  %v10538_v44 = vld [vmem:[#allocation12 + $0xc8] ss:$16 sps:$4 sm:$0xff]   ;;  %v10544_v45 = vld [vmem:[#allocation12 + $0xa4] ss:$16 sps:$4 sm:$0xff]  }
 0x27c   :  { %2234 = vmatprep.subr.bf16.mxu0 %v12021_v46  ;;  %2275 = vmatprep.subr.bf16.mxu1 %v12022_v47  ;;  %12039 = vst [vmem:[#allocation21_spill] sm:$0xff] %v10538_v44  ;;  %12040 = vst [vmem:[#allocation22_spill] sm:$0xff] %v10544_v45  ;;  %v10546_v46 = vld [vmem:[#allocation12 + $0xac] ss:$16 sps:$4 sm:$0xff]   ;;  %v10548_v47 = vld [vmem:[#allocation12 + $0xa0] ss:$16 sps:$4 sm:$0xff]  }
 0x27d   :  { %12041 = vst [vmem:[#allocation23_spill] sm:$0xff] %v10546_v46  ;;  %12042 = vst [vmem:[#allocation24_spill] sm:$0xff] %v10548_v47 }
 0x27f   :  { %2235 = vmatpush1.bf16.msra.mxu0 %v12023_v48  ;;  %2276 = vmatpush1.bf16.msra.mxu1 %v12024_v57  ;;  %v10550_v48 = vld [vmem:[#allocation12 + $0xa8] ss:$16 sps:$4 sm:$0xff]   ;;  %v10556_v57 = vld [vmem:[#allocation12 + $0x84] ss:$16 sps:$4 sm:$0xff]  }
 0x280   :  { %2236 = vmatprep.subr.bf16.mxu0 %v12025_v8  ;;  %2277 = vmatprep.subr.bf16.mxu1 %v12026_v0  ;;  %12043 = vst [vmem:[#allocation25_spill] sm:$0xff] %v10550_v48  ;;  %12044 = vst [vmem:[#allocation26_spill] sm:$0xff] %v10556_v57  ;;  %v10558_v8 = vld [vmem:[#allocation12 + $0x8c] ss:$16 sps:$4 sm:$0xff]   ;;  %v10560_v0 = vld [vmem:[#allocation12 + $0x80] ss:$16 sps:$4 sm:$0xff]  }
 0x281   :  { %12045 = vst [vmem:[#allocation27_spill] sm:$0xff] %v10558_v8  ;;  %12046 = vst [vmem:[#allocation28_spill] sm:$0xff] %v10560_v0 }
 0x283   :  { %v9562_v51 = vpop.eup %9561  ;;  %2237 = vmatpush1.bf16.msra.mxu0 %v12027_v59  ;;  %2278 = vmatpush1.bf16.msra.mxu1 %v12028_v52  ;;  %v10570_v59 = vld [vmem:[#allocation12 + $0x6c] ss:$16 sps:$4 sm:$0xff]   ;;  %v10572_v52 = vld [vmem:[#allocation12 + $0x60] ss:$16 sps:$4 sm:$0xff]  }
 0x284   :  { %2238 = vmatprep.subr.bf16.mxu0 %v12029_v12  ;;  %2279 = vmatprep.subr.bf16.mxu1 %v12030_v10  ;;  %v1752_v6 = vmul.f32 %v9562_v51, %v9560_v14  ;;  %v10562_v14 = vld [vmem:[#allocation12 + $0x88] ss:$16 sps:$4 sm:$0xff]   ;;  %v10568_v51 = vld [vmem:[#allocation12 + $0x64] ss:$16 sps:$4 sm:$0xff]   ;;  %12049 = vst [vmem:[#allocation32_spill] sm:$0xff] %v10570_v59  ;;  %12050 = vst [vmem:[#allocation34_spill] sm:$0xff] %v10572_v52 }
 0x285   :  { %12047 = vst [vmem:[#allocation29_spill] sm:$0xff] %v10562_v14  ;;  %12048 = vst [vmem:[#allocation30_spill] sm:$0xff] %v10568_v51  ;;  %v10574_v12 = vld [vmem:[#allocation12 + $0x68] ss:$16 sps:$4 sm:$0xff]   ;;  %v10580_v10 = vld [vmem:[#allocation12 + $0x44] ss:$16 sps:$4 sm:$0xff]  }
 0x286   :  { %v10422_v61 = vpack.c.bf16 %v1752_v6, %v1752_v6  ;;  %12051 = vst [vmem:[#allocation31_spill] sm:$0xff] %v10574_v12  ;;  %12052 = vst [vmem:[#allocation33_spill] sm:$0xff] %v10580_v10  ;;  %v10582_v6 = vld [vmem:[#allocation12 + $0x4c] ss:$16 sps:$4 sm:$0xff]  }
 0x287   :  { %2239 = vmatpush1.bf16.msra.mxu0 %v12031_v58  ;;  %2280 = vmatpush1.bf16.msra.mxu1 %v12032_v55  ;;  %12053 = vst [vmem:[#allocation35_spill] sm:$0xff] %v10582_v6  ;;  %v10584_v58 = vld [vmem:[#allocation12 + $0x40] ss:$16 sps:$4 sm:$0xff]   ;;  %v10586_v55 = vld [vmem:[#allocation12 + $0x48] ss:$16 sps:$4 sm:$0xff]  }
 0x288   :  { %2558 = vmatprep.subr.bf16.mxu0 %v10412_v7  ;;  %2599 = vmatprep.subr.bf16.mxu1 %v10414_v54  ;;  %12054 = vst [vmem:[#allocation36_spill] sm:$0xff] %v10584_v58  ;;  %12055 = vst [vmem:[#allocation37_spill] sm:$0xff] %v10586_v55 }
 0x28a   :  { %2257 = vmatmul.mubr.bf16.vlgmr.msra.gmra.mxu0 %v10422_v61  ;;  %2298 = vmatmul.mubr.bf16.vlgmr.msra.gmra.mxu1 %v10422_v61 }
 0x28b   :  { %2559 = vmatpush1.bf16.msra.mxu0 %v10418_v62  ;;  %2600 = vmatpush1.bf16.msra.mxu1 %v10420_v49 }
 0x28c   :  { %2560 = vmatprep.subr.bf16.mxu0 %v10426_v1  ;;  %2601 = vmatprep.subr.bf16.mxu1 %v10428_v50 }
 0x28d   :  { %2590 = vmatprep.mubr.bf16.mxu0 %v12000_v60  ;;  %2631 = vmatprep.mubr.bf16.mxu1 %v12000_v60 }
 0x28f   :  { %2561 = vmatpush1.bf16.msra.mxu0 %v10434_v53  ;;  %2602 = vmatpush1.bf16.msra.mxu1 %v10436_v2 }
 0x290   :  { %2562 = vmatprep.subr.bf16.mxu0 %v10440_v63  ;;  %2603 = vmatprep.subr.bf16.mxu1 %v10442_v11 }
 0x293   :  { %2563 = vmatpush1.bf16.msra.mxu0 %v10448_v15  ;;  %2604 = vmatpush1.bf16.msra.mxu1 %v10450_v16 }
 0x294   :  { %2564 = vmatprep.subr.bf16.mxu0 %v10454_v17  ;;  %2605 = vmatprep.subr.bf16.mxu1 %v10456_v18 }
 0x297   :  { %2565 = vmatpush1.bf16.msra.mxu0 %v10460_v19  ;;  %2606 = vmatpush1.bf16.msra.mxu1 %v10462_v20 }
 0x298   :  { %2566 = vmatprep.subr.bf16.mxu0 %v10466_v21  ;;  %2607 = vmatprep.subr.bf16.mxu1 %v10468_v22 }
 0x29b   :  { %2567 = vmatpush1.bf16.msra.mxu0 %v10472_v23  ;;  %2608 = vmatpush1.bf16.msra.mxu1 %v10474_v24 }
 0x29c   :  { %2568 = vmatprep.subr.bf16.mxu0 %v10478_v25  ;;  %2609 = vmatprep.subr.bf16.mxu1 %v10480_v26 }
 0x29f   :  { %2569 = vmatpush1.bf16.msra.mxu0 %v10484_v27  ;;  %2610 = vmatpush1.bf16.msra.mxu1 %v10486_v28 }
 0x2a0   :  { %2570 = vmatprep.subr.bf16.mxu0 %v10490_v29  ;;  %2611 = vmatprep.subr.bf16.mxu1 %v10492_v30 }
 0x2a3   :  { %2571 = vmatpush1.bf16.msra.mxu0 %v10496_v31  ;;  %2612 = vmatpush1.bf16.msra.mxu1 %v10498_v32 }
 0x2a4   :  { %2572 = vmatprep.subr.bf16.mxu0 %v10502_v33  ;;  %2613 = vmatprep.subr.bf16.mxu1 %v10504_v34 }
 0x2a7   :  { %2573 = vmatpush1.bf16.msra.mxu0 %v10508_v35  ;;  %2614 = vmatpush1.bf16.msra.mxu1 %v10510_v36 }
 0x2a8   :  { %2898 = vmatprep.subr.bf16.mxu0 %v10520_v37  ;;  %2939 = vmatprep.subr.bf16.mxu1 %v10522_v39 }
 0x2aa   :  { %2591 = vmatmul.mubr.bf16.vlgmr.msra.gmra.mxu0 %v10422_v61  ;;  %2632 = vmatmul.mubr.bf16.vlgmr.msra.gmra.mxu1 %v10422_v61  ;;  %v10592_v61 = vld [vmem:[#allocation12 + $0x24] ss:$16 sps:$4 sm:$0xff]  }
 0x2ab   :  { %2930 = vmatprep.mubr.bf16.mxu0 %v12000_v60  ;;  %2971 = vmatprep.mubr.bf16.mxu1 %v12000_v60  ;;  %12056 = vst [vmem:[#allocation38_spill] sm:$0xff] %v10592_v61 }
 0x2ac   :  { %2899 = vmatpush1.bf16.msra.mxu0 %v10524_v40  ;;  %2940 = vmatpush1.bf16.msra.mxu1 %v10526_v41 }
 0x2ad   :  { %2900 = vmatprep.subr.bf16.mxu0 %v10532_v42  ;;  %2941 = vmatprep.subr.bf16.mxu1 %v10534_v43 }
 0x2b0   :  { %2901 = vmatpush1.bf16.msra.mxu0 %v10536_v13  ;;  %2942 = vmatpush1.bf16.msra.mxu1 %v10538_v44 }
 0x2b1   :  { %2902 = vmatprep.subr.bf16.mxu0 %v10544_v45  ;;  %2943 = vmatprep.subr.bf16.mxu1 %v10546_v46 }
 0x2b4   :  { %2903 = vmatpush1.bf16.msra.mxu0 %v10548_v47  ;;  %2944 = vmatpush1.bf16.msra.mxu1 %v10550_v48 }
 0x2b5   :  { %2904 = vmatprep.subr.bf16.mxu0 %v10556_v57  ;;  %2945 = vmatprep.subr.bf16.mxu1 %v10558_v8 }
 0x2b8   :  { %2905 = vmatpush1.bf16.msra.mxu0 %v10560_v0  ;;  %2946 = vmatpush1.bf16.msra.mxu1 %v10562_v14 }
 0x2b9   :  { %2906 = vmatprep.subr.bf16.mxu0 %v10568_v51  ;;  %2947 = vmatprep.subr.bf16.mxu1 %v10570_v59  ;;  %v10598_v59 = vld [vmem:[#allocation12 + $0x28] ss:$16 sps:$4 sm:$0xff]  }
 0x2ba   :  { %12059 = vst [vmem:[#allocation40_spill] sm:$0xff] %v10598_v59 }
 0x2bc   :  { %2907 = vmatpush1.bf16.msra.mxu0 %v10572_v52  ;;  %2948 = vmatpush1.bf16.msra.mxu1 %v10574_v12  ;;  %v10594_v52 = vld [vmem:[#allocation12 + $0x2c] ss:$16 sps:$4 sm:$0xff]   ;;  %v10596_v12 = vld [vmem:[#allocation12 + $0x20] ss:$16 sps:$4 sm:$0xff]  }
 0x2bd   :  { %2908 = vmatprep.subr.bf16.mxu0 %v10580_v10  ;;  %2949 = vmatprep.subr.bf16.mxu1 %v10582_v6  ;;  %12057 = vst [vmem:[#allocation39_spill] sm:$0xff] %v10594_v52  ;;  %12058 = vst [vmem:[#allocation41_spill] sm:$0xff] %v10596_v12  ;;  %v10604_v6 = vld [vmem:[#allocation12 + $0x4] ss:$16 sps:$4 sm:$0xff]   ;;  %v10610_v10 = vld [vmem:[#allocation12 + $0x8] ss:$16 sps:$4 sm:$0xff]  }
 0x2be   :  { %12060 = vst [vmem:[#allocation42_spill] sm:$0xff] %v10604_v6  ;;  %12063 = vst [vmem:[#allocation45_spill] sm:$0xff] %v10610_v10 }
 0x2c0   :  { %2909 = vmatpush1.bf16.msra.mxu0 %v10584_v58  ;;  %2950 = vmatpush1.bf16.msra.mxu1 %v10586_v55  ;;  %v10606_v58 = vld [vmem:[#allocation12 + $0xc] ss:$16 sps:$4 sm:$0xff]   ;;  %v10608_v55 = vld [vmem:[#allocation12] ss:$16 sps:$4 sm:$0xff]  }
 0x2c1   :  { %2910 = vmatprep.subr.bf16.mxu0 %v10592_v61  ;;  %2951 = vmatprep.subr.bf16.mxu1 %v10594_v52  ;;  %12061 = vst [vmem:[#allocation43_spill] sm:$0xff] %v10606_v58  ;;  %12062 = vst [vmem:[#allocation44_spill] sm:$0xff] %v10608_v55  ;;  %v10616_v52 = vld [vmem:[#allocation11 + $0xe4] ss:$16 sps:$4 sm:$0xff]  }
 0x2c2   :  { %12064 = vst [vmem:[#allocation46_spill] sm:$0xff] %v10616_v52 }
 0x2c4   :  { %2911 = vmatpush1.bf16.msra.mxu0 %v10596_v12  ;;  %2952 = vmatpush1.bf16.msra.mxu1 %v10598_v59  ;;  %v10618_v12 = vld [vmem:[#allocation11 + $0xec] ss:$16 sps:$4 sm:$0xff]  }
 0x2c5   :  { %2912 = vmatprep.subr.bf16.mxu0 %v10604_v6  ;;  %2953 = vmatprep.subr.bf16.mxu1 %v10606_v58  ;;  %12065 = vst [vmem:[#allocation75_spill] sm:$0xff] %v10618_v12 }
 0x2c8   :  { %2913 = vmatpush1.bf16.msra.mxu0 %v10608_v55  ;;  %2954 = vmatpush1.bf16.msra.mxu1 %v10610_v10  ;;  %v2306_v10 = vld [vmem:[%s11775_s6] sm:$0xf] }
 0x2c9   :  { %3140 = vmatprep.subr.bf16.mxu0 %v10616_v52  ;;  %3181 = vmatprep.subr.bf16.mxu1 %v10618_v12  ;;  %v2311_v55 = vrot.slane %v2306_v10, %v10209_v4  ;;  %v2315_v52 = vrot.slane %v2306_v10, %v10229_v3  ;;  %v2323_v4 = vrot.slane %v2306_v10, %v10211_v9 }
 0x32a   :  { %v2016_v59 = vpop.f32.mrf.mxu0  ;;  %v2057_v61 = vpop.f32.mrf.mxu1 }
 0x32c   :  { %v2018_v51 = vpop.f32.mrf.mxu0  ;;  %v2059_v14 = vpop.f32.mrf.mxu1 }
 0x32e   :  { %v2020_v0 = vpop.f32.mrf.mxu0  ;;  %v2061_v6 = vpop.f32.mrf.mxu1 }
 0x330   :  { %v2021_v8 = vpop.f32.mrf.mxu0  ;;  %v2062_v58 = vpop.f32.mrf.mxu1 }
 0x34a   :  { %v2258_v57 = vpop.f32.mrf.mxu0  ;;  %v2299_v48 = vpop.f32.mrf.mxu1 }
 0x34b   :  { %v2259_v47 = vadd.f32 %v2258_v57, %v2016_v59  ;;  %v2300_v57 = vadd.f32 %v2299_v48, %v2057_v61  ;;  %v2319_v59 = vrot.slane %v2306_v10, %v10207_v5  ;;  %v12067_v48 = vld [vmem:[#allocation53_spill] sm:$0xff] }
 0x34c   :  { %v2260_v12 = vpop.f32.mrf.mxu0  ;;  %v2301_v46 = vpop.f32.mrf.mxu1 }
 0x34d   :  { %v2328_v45 = vadd.f32 %v2311_v55, %v2259_v47  ;;  %v2261_v44 = vadd.f32 %v2260_v12, %v2018_v51  ;;  %v2302_v41 = vadd.f32 %v2301_v46, %v2059_v14  ;;  %v2330_v47 = vadd.f32 %v2319_v59, %v2300_v57 }
 0x34e   :  { %v2262_v13 = vpop.f32.mrf.mxu0  ;;  %v2303_v0 = vpop.f32.mrf.mxu1 }
 0x34f   :  { %v8216_v6 = vmul.f32 -1.442695, %v2328_v45  ;;  %v2329_v8 = vadd.f32 %v2315_v52, %v2261_v44  ;;  %v2331_v40 = vadd.f32 %v2323_v4, %v2302_v41 }
 0x350   :  { %v2263_v58 = vpop.f32.mrf.mxu0  ;;  %v2304_v43 = vpop.f32.mrf.mxu1 }
 0x351   :  { %9563 = vpow2.f32 %v8216_v6  ;;  %v8217_v42 = vmul.f32 -1.442695, %v2329_v8  ;;  %v8218_v3 = vmul.f32 -1.442695, %v2331_v40 }
 0x353   :  { %9565 = vpow2.f32 %v8217_v42  ;;  %v12066_v42 = vld [vmem:[#allocation51_spill] sm:$0xff] }
 0x354   :  { %9567 = vpow2.f32 %v8218_v3 }
 0x35e   :  { %v9564_v39 = vpop.eup %9563 }
 0x35f   :  { %v2335_v51 = vadd.f32 1.0, %v9564_v39 }
 0x360   :  { %v9566_v13 = vpop.eup %9565 }
 0x361   :  { %9569 = vrcp.f32 %v2335_v51  ;;  %v2341_v44 = vadd.f32 1.0, %v9566_v13  ;;  %v9568_v4 = vpop.eup %9567  ;;  %v12069_v13 = vld [vmem:[#allocation52_spill] sm:$0xff] }
 0x362   :  { %9571 = vtanh.f32 %v2330_v47  ;;  %v2348_v0 = vadd.f32 1.0, %v9568_v4  ;;  %v12068_v47 = vld [vmem:[#allocation54_spill] sm:$0xff] }
 0x363   :  { %9573 = vrcp.f32 %v2341_v44 }
 0x36a   :  { %v2592_v43 = vpop.f32.mrf.mxu0  ;;  %v2633_v45 = vpop.f32.mrf.mxu1 }
 0x36b   :  { %v2640_v46 = vadd.f32 %v2592_v43, %v12066_v42  ;;  %v2642_v44 = vadd.f32 %v2633_v45, %v12069_v13  ;;  %v10643_v45 = vld [vmem:[#allocation11 + $0xcc] ss:$16 sps:$4 sm:$0xff]  }
 0x36c   :  { %v2594_v14 = vpop.f32.mrf.mxu0  ;;  %v2635_v52 = vpop.f32.mrf.mxu1  ;;  %v10669_v13 = vld [vmem:[#allocation11 + $0x8c] ss:$16 sps:$4 sm:$0xff]  }
 0x36d   :  { %v8251_v41 = vmul.f32 -1.442695, %v2640_v46  ;;  %v2641_v12 = vadd.f32 %v2594_v14, %v12067_v48  ;;  %v2643_v51 = vadd.f32 %v2635_v52, %v12068_v47  ;;  %v10641_v52 = vld [vmem:[#allocation11 + $0xc4] ss:$16 sps:$4 sm:$0xff]  }
 0x36e   :  { %v9570_v40 = vpop.eup %9569  ;;  %v2596_v10 = vpop.f32.mrf.mxu0 }
 0x36f   :  { %v2637_v55 = vpop.f32.mrf.mxu1  ;;  %v9572_v39 = vpop.eup %9571  ;;  %9575 = vpow2.f32 %v8251_v41  ;;  %v8252_v3 = vmul.f32 -1.442695, %v2641_v12  ;;  %v8253_v43 = vmul.f32 -1.442695, %v2643_v51  ;;  %v10637_v12 = vld [vmem:[#allocation11 + $0xe0] ss:$16 sps:$4 sm:$0xff]  }
 0x370   :  { %v9574_v61 = vpop.eup %9573  ;;  %v2597_v6 = vpop.f32.mrf.mxu0  ;;  %v2353_v58 = vmul.f32 %v9572_v39, %v9570_v40  ;;  %v10639_v40 = vld [vmem:[#allocation11 + $0xe8] ss:$16 sps:$4 sm:$0xff]   ;;  %v10647_v55 = vld [vmem:[#allocation11 + $0xc0] ss:$16 sps:$4 sm:$0xff]   ;;  %v10667_v51 = vld [vmem:[#allocation11 + $0x84] ss:$16 sps:$4 sm:$0xff]  }
 0x371   :  { %v2638_v8 = vpop.f32.mrf.mxu1  ;;  %v2352_v57 = vmul.f32 %v9574_v61, %v10373_v56  ;;  %9577 = vpow2.f32 %v8252_v3  ;;  %v10649_v39 = vld [vmem:[#allocation11 + $0xc8] ss:$16 sps:$4 sm:$0xff]   ;;  %v10653_v3 = vld [vmem:[#allocation11 + $0xa4] ss:$16 sps:$4 sm:$0xff]   ;;  %v10655_v61 = vld [vmem:[#allocation11 + $0xac] ss:$16 sps:$4 sm:$0xff]  }
 0x372   :  { %9579 = vrcp.f32 %v2348_v0 }
 0x373   :  { %v10632_v59 = vadd.f32 %v2353_v58, %v2352_v57  ;;  %v10661_v58 = vld [vmem:[#allocation11 + $0xa0] ss:$16 sps:$4 sm:$0xff]   ;;  %v10663_v57 = vld [vmem:[#allocation11 + $0xa8] ss:$16 sps:$4 sm:$0xff]  }
 0x375   :  { %9581 = vtanh.f32 %v10632_v59 }
 0x376   :  { %9583 = vtanh.f32 %v2642_v44 }
 0x377   :  { %9585 = vpow2.f32 %v8253_v43 }
 0x37c   :  { %v9576_v42 = vpop.eup %9575 }
 0x37d   :  { %v2647_v46 = vadd.f32 1.0, %v9576_v42 }
 0x37e   :  { %v9578_v14 = vpop.eup %9577 }
 0x37f   :  { %9587 = vrcp.f32 %v2647_v46  ;;  %v2653_v4 = vadd.f32 1.0, %v9578_v14  ;;  %v9580_v41 = vpop.eup %9579  ;;  %v10674_v46 = vld [vmem:[#allocation11 + $0x80] ss:$16 sps:$4 sm:$0xff]   ;;  %v10676_v14 = vld [vmem:[#allocation11 + $0x88] ss:$16 sps:$4 sm:$0xff]  }
 0x381   :  { %9589 = vrcp.f32 %v2653_v4 }
 0x382   :  { %v9582_v56 = vpop.eup %9581 }
 0x383   :  { %v2356_v48 = vmul.f32 %v9582_v56, %v9580_v41  ;;  %v9584_v0 = vpop.eup %9583  ;;  %v10682_v41 = vld [vmem:[#allocation11 + $0x64] ss:$16 sps:$4 sm:$0xff]   ;;  %v10684_v56 = vld [vmem:[#allocation11 + $0x6c] ss:$16 sps:$4 sm:$0xff]  }
 0x384   :  { %v9586_v6 = vpop.eup %9585 }
 0x385   :  { %v2705_v10 = vpack.c.bf16 %v2356_v48, %v2356_v48  ;;  %v2660_v43 = vadd.f32 1.0, %v9586_v6  ;;  %v10691_v48 = vld [vmem:[#allocation11 + $0x68] ss:$16 sps:$4 sm:$0xff]   ;;  %v10701_v6 = vld [vmem:[#allocation11 + $0x40] ss:$16 sps:$4 sm:$0xff]  }
 0x386   :  { %12071 = vst [vmem:[#allocation53_spill] sm:$0xff] %v10691_v48  ;;  %12074 = vst [vmem:[#allocation76_spill] sm:$0xff] %v10701_v6 }
 0x387   :  { %2931 = vmatmul.mubr.bf16.vlgmr.msra.gmra.mxu0 %v2705_v10  ;;  %2972 = vmatmul.mubr.bf16.vlgmr.msra.gmra.mxu1 %v2705_v10  ;;  %9591 = vrcp.f32 %v2660_v43  ;;  %v10695_v10 = vld [vmem:[#allocation11 + $0x44] ss:$16 sps:$4 sm:$0xff]   ;;  %v10713_v43 = vld [vmem:[#allocation11 + $0x20] ss:$16 sps:$4 sm:$0xff]  }
 0x388   :  { %3141 = vmatpush1.bf16.msra.mxu0 %v10637_v12  ;;  %3182 = vmatpush1.bf16.msra.mxu1 %v10639_v40  ;;  %12072 = vst [vmem:[#allocation54_spill] sm:$0xff] %v10695_v10 }
 0x389   :  { %3142 = vmatprep.subr.bf16.mxu0 %v10641_v52  ;;  %3183 = vmatprep.subr.bf16.mxu1 %v10643_v45 }
 0x38a   :  { %3172 = vmatprep.mubr.bf16.mxu0 %v12000_v60  ;;  %3213 = vmatprep.mubr.bf16.mxu1 %v12000_v60 }
 0x38c   :  { %v9588_v8 = vpop.eup %9587  ;;  %3143 = vmatpush1.bf16.msra.mxu0 %v10647_v55  ;;  %3184 = vmatpush1.bf16.msra.mxu1 %v10649_v39 }
 0x38d   :  { %v2665_v47 = vmul.f32 %v9588_v8, %v9584_v0  ;;  %3144 = vmatprep.subr.bf16.mxu0 %v10653_v3  ;;  %3185 = vmatprep.subr.bf16.mxu1 %v10655_v61  ;;  %v10697_v0 = vld [vmem:[#allocation11 + $0x4c] ss:$16 sps:$4 sm:$0xff]   ;;  %v10703_v8 = vld [vmem:[#allocation11 + $0x48] ss:$16 sps:$4 sm:$0xff]  }
 0x38e   :  { %v9590_v44 = vpop.eup %9589  ;;  %12073 = vst [vmem:[#allocation52_spill] sm:$0xff] %v10697_v0  ;;  %12075 = vst [vmem:[#allocation77_spill] sm:$0xff] %v10703_v8 }
 0x38f   :  { %v2664_v42 = vmul.f32 %v9590_v44, %v10391_v38  ;;  %v10689_v38 = vld [vmem:[#allocation11 + $0x60] ss:$16 sps:$4 sm:$0xff]   ;;  %v10709_v44 = vld [vmem:[#allocation11 + $0x2c] ss:$16 sps:$4 sm:$0xff]  }
 0x390   :  { %3145 = vmatpush1.bf16.msra.mxu0 %v10661_v58  ;;  %3186 = vmatpush1.bf16.msra.mxu1 %v10663_v57  ;;  %12070 = vst [vmem:[#allocation51_spill] sm:$0xff] %v10689_v38  ;;  %12077 = vst [vmem:[#allocation79_spill] sm:$0xff] %v10709_v44 }
 0x391   :  { %v10678_v4 = vadd.f32 %v2665_v47, %v2664_v42  ;;  %3146 = vmatprep.subr.bf16.mxu0 %v10667_v51  ;;  %3187 = vmatprep.subr.bf16.mxu1 %v10669_v13  ;;  %v10707_v47 = vld [vmem:[#allocation11 + $0x24] ss:$16 sps:$4 sm:$0xff]   ;;  %v10715_v42 = vld [vmem:[#allocation11 + $0x28] ss:$16 sps:$4 sm:$0xff]  }
 0x392   :  { %12076 = vst [vmem:[#allocation78_spill] sm:$0xff] %v10707_v47 }
 0x393   :  { %9593 = vtanh.f32 %v10678_v4 }
 0x394   :  { %3147 = vmatpush1.bf16.msra.mxu0 %v10674_v46  ;;  %3188 = vmatpush1.bf16.msra.mxu1 %v10676_v14 }
 0x395   :  { %3148 = vmatprep.subr.bf16.mxu0 %v10682_v41  ;;  %3189 = vmatprep.subr.bf16.mxu1 %v10684_v56 }
 0x398   :  { %3149 = vmatpush1.bf16.msra.mxu0 %v10689_v38  ;;  %3190 = vmatpush1.bf16.msra.mxu1 %v10691_v48  ;;  %v10719_v48 = vld [vmem:[#allocation11 + $0x4] ss:$16 sps:$4 sm:$0xff]  }
 0x399   :  { %3150 = vmatprep.subr.bf16.mxu0 %v10695_v10  ;;  %3191 = vmatprep.subr.bf16.mxu1 %v10697_v0  ;;  %v10721_v10 = vld [vmem:[#allocation11 + $0xc] ss:$16 sps:$4 sm:$0xff]   ;;  %v9592_v0 = vpop.eup %9591 }
 0x39c   :  { %3151 = vmatpush1.bf16.msra.mxu0 %v10701_v6  ;;  %3192 = vmatpush1.bf16.msra.mxu1 %v10703_v8  ;;  %v10725_v6 = vld [vmem:[#allocation11] ss:$16 sps:$4 sm:$0xff]   ;;  %v10727_v8 = vld [vmem:[#allocation11 + $0x8] ss:$16 sps:$4 sm:$0xff]  }
 0x39d   :  { %3152 = vmatprep.subr.bf16.mxu0 %v10707_v47  ;;  %3193 = vmatprep.subr.bf16.mxu1 %v10709_v44 }
 0x3a0   :  { %v9594_v38 = vpop.eup %9593  ;;  %3153 = vmatpush1.bf16.msra.mxu0 %v10713_v43  ;;  %3194 = vmatpush1.bf16.msra.mxu1 %v10715_v42 }
 0x3a1   :  { %3154 = vmatprep.subr.bf16.mxu0 %v10719_v48  ;;  %3195 = vmatprep.subr.bf16.mxu1 %v10721_v10  ;;  %v2668_v47 = vmul.f32 %v9594_v38, %v9592_v0 }
 0x3a3   :  { %v2671_v44 = vpack.c.bf16 %v2668_v47, %v2668_v47 }
 0x3a4   :  { %3155 = vmatpush1.bf16.msra.mxu0 %v10725_v6  ;;  %3196 = vmatpush1.bf16.msra.mxu1 %v10727_v8 }
 0x3a5   :  { %3474 = vmatprep.subr.bf16.mxu0 %v10412_v7  ;;  %3515 = vmatprep.subr.bf16.mxu1 %v10414_v54  ;;  %v12078_v7 = vld [vmem:[#allocation50_spill] sm:$0xff]  ;;  %v12079_v54 = vld [vmem:[#allocation49_spill] sm:$0xff] }
 0x3a7   :  { %3173 = vmatmul.mubr.bf16.vlgmr.msra.gmra.mxu0 %v2671_v44  ;;  %3214 = vmatmul.mubr.bf16.vlgmr.msra.gmra.mxu1 %v2671_v44 }
 0x3a8   :  { %3475 = vmatpush1.bf16.msra.mxu0 %v10418_v62  ;;  %3516 = vmatpush1.bf16.msra.mxu1 %v10420_v49  ;;  %v12080_v62 = vld [vmem:[#allocation17_spill] sm:$0xff]  ;;  %v12081_v49 = vld [vmem:[#allocation18_spill] sm:$0xff] }
 0x3a9   :  { %3476 = vmatprep.subr.bf16.mxu0 %v10426_v1  ;;  %3517 = vmatprep.subr.bf16.mxu1 %v10428_v50  ;;  %v12082_v1 = vld [vmem:[#allocation19_spill] sm:$0xff]  ;;  %v12083_v50 = vld [vmem:[#allocation20_spill] sm:$0xff] }
 0x3aa   :  { %3506 = vmatprep.mubr.bf16.mxu0 %v12000_v60  ;;  %3547 = vmatprep.mubr.bf16.mxu1 %v12000_v60 }
 0x3ac   :  { %3477 = vmatpush1.bf16.msra.mxu0 %v10434_v53  ;;  %3518 = vmatpush1.bf16.msra.mxu1 %v10436_v2  ;;  %v12084_v53 = vld [vmem:[#allocation21_spill] sm:$0xff]  ;;  %v12085_v2 = vld [vmem:[#allocation22_spill] sm:$0xff] }
 0x3ad   :  { %3478 = vmatprep.subr.bf16.mxu0 %v10440_v63  ;;  %3519 = vmatprep.subr.bf16.mxu1 %v10442_v11  ;;  %v12086_v63 = vld [vmem:[#allocation23_spill] sm:$0xff]  ;;  %v12087_v11 = vld [vmem:[#allocation24_spill] sm:$0xff] }
 0x3b0   :  { %3479 = vmatpush1.bf16.msra.mxu0 %v10448_v15  ;;  %3520 = vmatpush1.bf16.msra.mxu1 %v10450_v16  ;;  %v12088_v15 = vld [vmem:[#allocation25_spill] sm:$0xff]  ;;  %v12089_v16 = vld [vmem:[#allocation26_spill] sm:$0xff] }
 0x3b1   :  { %3480 = vmatprep.subr.bf16.mxu0 %v10454_v17  ;;  %3521 = vmatprep.subr.bf16.mxu1 %v10456_v18  ;;  %v12090_v17 = vld [vmem:[#allocation27_spill] sm:$0xff]  ;;  %v12091_v18 = vld [vmem:[#allocation28_spill] sm:$0xff] }
 0x3b4   :  { %3481 = vmatpush1.bf16.msra.mxu0 %v10460_v19  ;;  %3522 = vmatpush1.bf16.msra.mxu1 %v10462_v20  ;;  %v12092_v19 = vld [vmem:[#allocation29_spill] sm:$0xff]  ;;  %v12093_v20 = vld [vmem:[#allocation30_spill] sm:$0xff] }
 0x3b5   :  { %3482 = vmatprep.subr.bf16.mxu0 %v10466_v21  ;;  %3523 = vmatprep.subr.bf16.mxu1 %v10468_v22  ;;  %v12094_v21 = vld [vmem:[#allocation32_spill] sm:$0xff]  ;;  %v12095_v22 = vld [vmem:[#allocation34_spill] sm:$0xff] }
 0x3b8   :  { %3483 = vmatpush1.bf16.msra.mxu0 %v10472_v23  ;;  %3524 = vmatpush1.bf16.msra.mxu1 %v10474_v24  ;;  %v12096_v23 = vld [vmem:[#allocation31_spill] sm:$0xff]  ;;  %v12097_v24 = vld [vmem:[#allocation33_spill] sm:$0xff] }
 0x3b9   :  { %3484 = vmatprep.subr.bf16.mxu0 %v10478_v25  ;;  %3525 = vmatprep.subr.bf16.mxu1 %v10480_v26  ;;  %v12098_v25 = vld [vmem:[#allocation35_spill] sm:$0xff]  ;;  %v12099_v26 = vld [vmem:[#allocation36_spill] sm:$0xff] }
 0x3bc   :  { %3485 = vmatpush1.bf16.msra.mxu0 %v10484_v27  ;;  %3526 = vmatpush1.bf16.msra.mxu1 %v10486_v28  ;;  %v12100_v27 = vld [vmem:[#allocation37_spill] sm:$0xff]  ;;  %v12101_v28 = vld [vmem:[#allocation38_spill] sm:$0xff] }
 0x3bd   :  { %3486 = vmatprep.subr.bf16.mxu0 %v10490_v29  ;;  %3527 = vmatprep.subr.bf16.mxu1 %v10492_v30  ;;  %v12102_v29 = vld [vmem:[#allocation39_spill] sm:$0xff]  ;;  %v12103_v30 = vld [vmem:[#allocation41_spill] sm:$0xff] }
 0x3c0   :  { %3487 = vmatpush1.bf16.msra.mxu0 %v10496_v31  ;;  %3528 = vmatpush1.bf16.msra.mxu1 %v10498_v32  ;;  %v12104_v31 = vld [vmem:[#allocation40_spill] sm:$0xff]  ;;  %v12105_v32 = vld [vmem:[#allocation42_spill] sm:$0xff] }
 0x3c1   :  { %3488 = vmatprep.subr.bf16.mxu0 %v10502_v33  ;;  %3529 = vmatprep.subr.bf16.mxu1 %v10504_v34  ;;  %v12106_v33 = vld [vmem:[#allocation43_spill] sm:$0xff]  ;;  %v12107_v34 = vld [vmem:[#allocation44_spill] sm:$0xff] }
 0x3c4   :  { %3489 = vmatpush1.bf16.msra.mxu0 %v10508_v35  ;;  %3530 = vmatpush1.bf16.msra.mxu1 %v10510_v36  ;;  %v12108_v35 = vld [vmem:[#allocation45_spill] sm:$0xff]  ;;  %v12109_v36 = vld [vmem:[#allocation46_spill] sm:$0xff] }
 0x3c5   :  { %3814 = vmatprep.subr.bf16.mxu0 %v10520_v37  ;;  %3855 = vmatprep.subr.bf16.mxu1 %v12078_v7  ;;  %v12110_v37 = vld [vmem:[#allocation75_spill] sm:$0xff] }
 0x3c7   :  { %3507 = vmatmul.mubr.bf16.vlgmr.msra.gmra.mxu0 %v2671_v44  ;;  %3548 = vmatmul.mubr.bf16.vlgmr.msra.gmra.mxu1 %v2671_v44 }
 0x3c8   :  { %3815 = vmatpush1.bf16.msra.mxu0 %v12079_v54  ;;  %3856 = vmatpush1.bf16.msra.mxu1 %v12080_v62 }
 0x3c9   :  { %3816 = vmatprep.subr.bf16.mxu0 %v12081_v49  ;;  %3857 = vmatprep.subr.bf16.mxu1 %v12082_v1  ;;  %v3222_v1 = vld [vmem:[%s11775_s6] sm:$0xf] }
 0x3ca   :  { %3846 = vmatprep.mubr.bf16.mxu0 %v12000_v60  ;;  %3887 = vmatprep.mubr.bf16.mxu1 %v12000_v60 }
 0x3cc   :  { %3817 = vmatpush1.bf16.msra.mxu0 %v12083_v50  ;;  %3858 = vmatpush1.bf16.msra.mxu1 %v12084_v53  ;;  %v12111_v50 = vld [vmem:[#allocation47_spill] sm:$0xff] }
 0x3cd   :  { %3818 = vmatprep.subr.bf16.mxu0 %v12085_v2  ;;  %3859 = vmatprep.subr.bf16.mxu1 %v12086_v63  ;;  %v3227_v53 = vrot.slane %v3222_v1, %v12111_v50 }
 0x3d0   :  { %3819 = vmatpush1.bf16.msra.mxu0 %v12087_v11  ;;  %3860 = vmatpush1.bf16.msra.mxu1 %v12088_v15  ;;  %v12112_v15 = vld [vmem:[#allocation48_spill] sm:$0xff] }
 0x3d1   :  { %3820 = vmatprep.subr.bf16.mxu0 %v12089_v16  ;;  %3861 = vmatprep.subr.bf16.mxu1 %v12090_v17  ;;  %v3231_v16 = vrot.slane %v3222_v1, %v12112_v15 }
 0x3d4   :  { %3821 = vmatpush1.bf16.msra.mxu0 %v12091_v18  ;;  %3862 = vmatpush1.bf16.msra.mxu1 %v12092_v19 }
 0x3d5   :  { %3822 = vmatprep.subr.bf16.mxu0 %v12093_v20  ;;  %3863 = vmatprep.subr.bf16.mxu1 %v12094_v21 }
 0x3d8   :  { %3823 = vmatpush1.bf16.msra.mxu0 %v12095_v22  ;;  %3864 = vmatpush1.bf16.msra.mxu1 %v12096_v23 }
 0x3d9   :  { %3824 = vmatprep.subr.bf16.mxu0 %v12097_v24  ;;  %3865 = vmatprep.subr.bf16.mxu1 %v12098_v25 }
 0x3dc   :  { %3825 = vmatpush1.bf16.msra.mxu0 %v12099_v26  ;;  %3866 = vmatpush1.bf16.msra.mxu1 %v12100_v27 }
 0x3dd   :  { %3826 = vmatprep.subr.bf16.mxu0 %v12101_v28  ;;  %3867 = vmatprep.subr.bf16.mxu1 %v12102_v29  ;;  %v3239_v29 = vrot.slane %v3222_v1, %v10211_v9 }
 0x3e0   :  { %3827 = vmatpush1.bf16.msra.mxu0 %v12103_v30  ;;  %3868 = vmatpush1.bf16.msra.mxu1 %v12104_v31 }
 0x3e1   :  { %3828 = vmatprep.subr.bf16.mxu0 %v12105_v32  ;;  %3869 = vmatprep.subr.bf16.mxu1 %v12106_v33  ;;  %v3235_v32 = vrot.slane %v3222_v1, %v10207_v5 }
 0x3e4   :  { %3829 = vmatpush1.bf16.msra.mxu0 %v12107_v34  ;;  %3870 = vmatpush1.bf16.msra.mxu1 %v12108_v35 }
 0x3e5   :  { %4056 = vmatprep.subr.bf16.mxu0 %v12109_v36  ;;  %4097 = vmatprep.subr.bf16.mxu1 %v12110_v37 }
 0x447   :  { %v2932_v38 = vpop.f32.mrf.mxu0  ;;  %v2973_v0 = vpop.f32.mrf.mxu1 }
 0x449   :  { %v2934_v47 = vpop.f32.mrf.mxu0  ;;  %v2975_v44 = vpop.f32.mrf.mxu1 }
 0x44b   :  { %v2936_v7 = vpop.f32.mrf.mxu0  ;;  %v2977_v54 = vpop.f32.mrf.mxu1 }
 0x44c   :  { %v12113_v54 = vld [vmem:[#allocation55_spill] sm:$0xff] }
 0x44d   :  { %v2937_v62 = vpop.f32.mrf.mxu0  ;;  %v2978_v49 = vpop.f32.mrf.mxu1 }
 0x467   :  { %v3174_v2 = vpop.f32.mrf.mxu0  ;;  %v3215_v63 = vpop.f32.mrf.mxu1 }
 0x468   :  { %v3175_v11 = vadd.f32 %v3174_v2, %v2932_v38  ;;  %v3216_v31 = vadd.f32 %v3215_v63, %v2973_v0  ;;  %v12114_v2 = vld [vmem:[#allocation57_spill] sm:$0xff] }
 0x469   :  { %v3176_v17 = vpop.f32.mrf.mxu0  ;;  %v3217_v18 = vpop.f32.mrf.mxu1 }
 0x46a   :  { %v3244_v19 = vadd.f32 %v3227_v53, %v3175_v11  ;;  %v3177_v20 = vadd.f32 %v3176_v17, %v2934_v47  ;;  %v3218_v28 = vadd.f32 %v3217_v18, %v2975_v44  ;;  %v3246_v35 = vadd.f32 %v3235_v32, %v3216_v31 }
 0x46b   :  { %v3178_v21 = vpop.f32.mrf.mxu0  ;;  %v3219_v22 = vpop.f32.mrf.mxu1 }
 0x46c   :  { %v8318_v23 = vmul.f32 -1.442695, %v3244_v19  ;;  %v3245_v24 = vadd.f32 %v3231_v16, %v3177_v20  ;;  %v3247_v30 = vadd.f32 %v3239_v29, %v3218_v28  ;;  %v12116_v28 = vld [vmem:[#allocation56_spill] sm:$0xff] }
 0x46d   :  { %v3179_v25 = vpop.f32.mrf.mxu0  ;;  %v3220_v26 = vpop.f32.mrf.mxu1 }
 0x46e   :  { %9595 = vpow2.f32 %v8318_v23  ;;  %v8319_v27 = vmul.f32 -1.442695, %v3245_v24  ;;  %v8320_v33 = vmul.f32 -1.442695, %v3247_v30  ;;  %v12115_v26 = vld [vmem:[#allocation58_spill] sm:$0xff] }
 0x470   :  { %9597 = vpow2.f32 %v8319_v27 }
 0x471   :  { %9599 = vpow2.f32 %v8320_v33 }
 0x47b   :  { %v9596_v34 = vpop.eup %9595 }
 0x47c   :  { %v3251_v36 = vadd.f32 1.0, %v9596_v34 }
 0x47d   :  { %v9598_v37 = vpop.eup %9597 }
 0x47e   :  { %9601 = vrcp.f32 %v3251_v36  ;;  %v3257_v38 = vadd.f32 1.0, %v9598_v37  ;;  %v9600_v53 = vpop.eup %9599 }
 0x47f   :  { %9603 = vtanh.f32 %v3246_v35  ;;  %v3264_v20 = vadd.f32 1.0, %v9600_v53  ;;  %v10888_v53 = vld [vmem:[#allocation9 + $0xa0] ss:$16 sps:$4 sm:$0xff]  }
 0x480   :  { %9605 = vrcp.f32 %v3257_v38 }
 0x487   :  { %v3508_v47 = vpop.f32.mrf.mxu0  ;;  %v3549_v7 = vpop.f32.mrf.mxu1 }
 0x488   :  { %v3556_v44 = vadd.f32 %v3508_v47, %v12113_v54  ;;  %v3558_v29 = vadd.f32 %v3549_v7, %v12116_v28  ;;  %v10938_v28 = vld [vmem:[#allocation9 + $0x28] ss:$16 sps:$4 sm:$0xff]  }
 0x489   :  { %v3510_v62 = vpop.f32.mrf.mxu0  ;;  %v3551_v49 = vpop.f32.mrf.mxu1 }
 0x48a   :  { %v8353_v0 = vmul.f32 -1.442695, %v3556_v44  ;;  %v3557_v1 = vadd.f32 %v3510_v62, %v12114_v2  ;;  %v3559_v27 = vadd.f32 %v3551_v49, %v12115_v26  ;;  %v10860_v62 = vld [vmem:[#allocation9 + $0xe0] ss:$16 sps:$4 sm:$0xff]   ;;  %v10882_v49 = vld [vmem:[#allocation9 + $0xac] ss:$16 sps:$4 sm:$0xff]  }
 0x48b   :  { %v9602_v63 = vpop.eup %9601  ;;  %v3512_v11 = vpop.f32.mrf.mxu0  ;;  %v10894_v2 = vld [vmem:[#allocation9 + $0x84] ss:$16 sps:$4 sm:$0xff]   ;;  %v10932_v26 = vld [vmem:[#allocation9 + $0x2c] ss:$16 sps:$4 sm:$0xff]  }
 0x48c   :  { %v3553_v16 = vpop.f32.mrf.mxu1  ;;  %v9604_v17 = vpop.eup %9603  ;;  %9607 = vpow2.f32 %v8353_v0  ;;  %v8354_v18 = vmul.f32 -1.442695, %v3557_v1  ;;  %v8355_v30 = vmul.f32 -1.442695, %v3559_v27  ;;  %v10890_v0 = vld [vmem:[#allocation9 + $0xa8] ss:$16 sps:$4 sm:$0xff]  }
 0x48d   :  { %v9606_v19 = vpop.eup %9605  ;;  %v3513_v21 = vpop.f32.mrf.mxu0  ;;  %v3269_v23 = vmul.f32 %v9604_v17, %v9602_v63  ;;  %v10896_v1 = vld [vmem:[#allocation9 + $0x8c] ss:$16 sps:$4 sm:$0xff]   ;;  %v10900_v63 = vld [vmem:[#allocation9 + $0x80] ss:$16 sps:$4 sm:$0xff]   ;;  %v10902_v11 = vld [vmem:[#allocation9 + $0x88] ss:$16 sps:$4 sm:$0xff]  }
 0x48e   :  { %v3554_v22 = vpop.f32.mrf.mxu1  ;;  %v3268_v24 = vmul.f32 %v9606_v19, %v10632_v59  ;;  %9609 = vpow2.f32 %v8354_v18  ;;  %v10906_v16 = vld [vmem:[#allocation9 + $0x64] ss:$16 sps:$4 sm:$0xff]   ;;  %v10908_v17 = vld [vmem:[#allocation9 + $0x6c] ss:$16 sps:$4 sm:$0xff]   ;;  %v10912_v18 = vld [vmem:[#allocation9 + $0x60] ss:$16 sps:$4 sm:$0xff]  }
 0x48f   :  { %9611 = vrcp.f32 %v3264_v20  ;;  %v10914_v19 = vld [vmem:[#allocation9 + $0x68] ss:$16 sps:$4 sm:$0xff]   ;;  %v10918_v20 = vld [vmem:[#allocation9 + $0x44] ss:$16 sps:$4 sm:$0xff]   ;;  %v10920_v21 = vld [vmem:[#allocation9 + $0x4c] ss:$16 sps:$4 sm:$0xff]  }
 0x490   :  { %v10813_v25 = vadd.f32 %v3269_v23, %v3268_v24  ;;  %v10924_v22 = vld [vmem:[#allocation9 + $0x40] ss:$16 sps:$4 sm:$0xff]   ;;  %v10926_v23 = vld [vmem:[#allocation9 + $0x48] ss:$16 sps:$4 sm:$0xff]   ;;  %v10930_v24 = vld [vmem:[#allocation9 + $0x24] ss:$16 sps:$4 sm:$0xff]  }
 0x491   :  { %v10936_v27 = vld [vmem:[#allocation9 + $0x20] ss:$16 sps:$4 sm:$0xff]  }
 0x492   :  { %9613 = vtanh.f32 %v10813_v25 }
 0x493   :  { %9615 = vtanh.f32 %v3558_v29  ;;  %v10942_v29 = vld [vmem:[#allocation9 + $0x4] ss:$16 sps:$4 sm:$0xff]  }
 0x494   :  { %9617 = vpow2.f32 %v8355_v30  ;;  %v10944_v30 = vld [vmem:[#allocation9 + $0xc] ss:$16 sps:$4 sm:$0xff]  }
 0x499   :  { %v9608_v31 = vpop.eup %9607 }
 0x49a   :  { %v3563_v32 = vadd.f32 1.0, %v9608_v31  ;;  %v10948_v31 = vld [vmem:[#allocation9] ss:$16 sps:$4 sm:$0xff]  }
 0x49b   :  { %v9610_v33 = vpop.eup %9609 }
 0x49c   :  { %9619 = vrcp.f32 %v3563_v32  ;;  %v3569_v34 = vadd.f32 1.0, %v9610_v33  ;;  %v9612_v35 = vpop.eup %9611  ;;  %v10950_v32 = vld [vmem:[#allocation9 + $0x8] ss:$16 sps:$4 sm:$0xff]   ;;  %v10960_v33 = vld [vmem:[#allocation12 + $0xe4] ss:$16 sps:$4 sm:$0xff]  }
 0x49e   :  { %9621 = vrcp.f32 %v3569_v34  ;;  %v10962_v34 = vld [vmem:[#allocation12 + $0xec] ss:$16 sps:$4 sm:$0xff]  }
 0x49f   :  { %v9614_v59 = vpop.eup %9613  ;;  %12125 = vst [vmem:[#allocation50_spill] sm:$0xff] %v10962_v34 }
 0x4a0   :  { %v3272_v36 = vmul.f32 %v9614_v59, %v9612_v35  ;;  %v9616_v38 = vpop.eup %9615  ;;  %v10964_v35 = vld [vmem:[#allocation12 + $0xe0] ss:$16 sps:$4 sm:$0xff]   ;;  %v10966_v59 = vld [vmem:[#allocation12 + $0xe8] ss:$16 sps:$4 sm:$0xff]  }
 0x4a1   :  { %v9618_v47 = vpop.eup %9617  ;;  %12126 = vst [vmem:[#allocation49_spill] sm:$0xff] %v10964_v35  ;;  %12127 = vst [vmem:[#allocation17_spill] sm:$0xff] %v10966_v59 }
 0x4a2   :  { %v3621_v37 = vpack.c.bf16 %v3272_v36, %v3272_v36  ;;  %v10972_v36 = vld [vmem:[#allocation12 + $0xc4] ss:$16 sps:$4 sm:$0xff]  }
 0x4a3   :  { %12128 = vst [vmem:[#allocation18_spill] sm:$0xff] %v10972_v36 }
 0x4a4   :  { %3847 = vmatmul.mubr.bf16.vlgmr.msra.gmra.mxu0 %v3621_v37  ;;  %3888 = vmatmul.mubr.bf16.vlgmr.msra.gmra.mxu1 %v3621_v37  ;;  %v10974_v37 = vld [vmem:[#allocation12 + $0xcc] ss:$16 sps:$4 sm:$0xff]  }
 0x4a5   :  { %4057 = vmatpush1.bf16.msra.mxu0 %v10637_v12  ;;  %4098 = vmatpush1.bf16.msra.mxu1 %v10639_v40  ;;  %v3576_v40 = vadd.f32 1.0, %v9618_v47  ;;  %12129 = vst [vmem:[#allocation19_spill] sm:$0xff] %v10974_v37  ;;  %v10978_v47 = vld [vmem:[#allocation12 + $0xc8] ss:$16 sps:$4 sm:$0xff]  }
 0x4a6   :  { %4058 = vmatprep.subr.bf16.mxu0 %v10641_v52  ;;  %4099 = vmatprep.subr.bf16.mxu1 %v10643_v45  ;;  %12131 = vst [vmem:[#allocation21_spill] sm:$0xff] %v10978_v47 }
 0x4a7   :  { %4088 = vmatprep.mubr.bf16.mxu0 %v12000_v60  ;;  %4129 = vmatprep.mubr.bf16.mxu1 %v12000_v60  ;;  %9623 = vrcp.f32 %v3576_v40  ;;  %v10990_v40 = vld [vmem:[#allocation12 + $0xa8] ss:$16 sps:$4 sm:$0xff]  }
 0x4a8   :  { %12135 = vst [vmem:[#allocation25_spill] sm:$0xff] %v10990_v40 }
 0x4a9   :  { %v9620_v7 = vpop.eup %9619  ;;  %4059 = vmatpush1.bf16.msra.mxu0 %v10647_v55  ;;  %4100 = vmatpush1.bf16.msra.mxu1 %v10649_v39  ;;  %v12117_v55 = vld [vmem:[#allocation51_spill] sm:$0xff]  ;;  %v12118_v39 = vld [vmem:[#allocation53_spill] sm:$0xff] }
 0x4aa   :  { %v3581_v54 = vmul.f32 %v9620_v7, %v9616_v38  ;;  %4060 = vmatprep.subr.bf16.mxu0 %v10653_v3  ;;  %4101 = vmatprep.subr.bf16.mxu1 %v10655_v61  ;;  %v12119_v3 = vld [vmem:[#allocation54_spill] sm:$0xff]  ;;  %v12120_v61 = vld [vmem:[#allocation52_spill] sm:$0xff]  ;;  %v10976_v38 = vld [vmem:[#allocation12 + $0xc0] ss:$16 sps:$4 sm:$0xff]  }
 0x4ab   :  { %v9622_v12 = vpop.eup %9621  ;;  %12130 = vst [vmem:[#allocation20_spill] sm:$0xff] %v10976_v38  ;;  %v10984_v7 = vld [vmem:[#allocation12 + $0xa4] ss:$16 sps:$4 sm:$0xff]  }
 0x4ac   :  { %v3580_v52 = vmul.f32 %v9622_v12, %v10678_v4  ;;  %12132 = vst [vmem:[#allocation22_spill] sm:$0xff] %v10984_v7  ;;  %v10988_v12 = vld [vmem:[#allocation12 + $0xa0] ss:$16 sps:$4 sm:$0xff]  }
 0x4ad   :  { %4061 = vmatpush1.bf16.msra.mxu0 %v10661_v58  ;;  %4102 = vmatpush1.bf16.msra.mxu1 %v10663_v57  ;;  %v12121_v58 = vld [vmem:[#allocation76_spill] sm:$0xff]  ;;  %v12122_v57 = vld [vmem:[#allocation77_spill] sm:$0xff]  ;;  %12134 = vst [vmem:[#allocation24_spill] sm:$0xff] %v10988_v12 }
 0x4ae   :  { %v10831_v45 = vadd.f32 %v3581_v54, %v3580_v52  ;;  %4062 = vmatprep.subr.bf16.mxu0 %v10667_v51  ;;  %4103 = vmatprep.subr.bf16.mxu1 %v10669_v13  ;;  %v12123_v51 = vld [vmem:[#allocation78_spill] sm:$0xff]  ;;  %v12124_v13 = vld [vmem:[#allocation79_spill] sm:$0xff] }
 0x4af   :  { %v10986_v54 = vld [vmem:[#allocation12 + $0xac] ss:$16 sps:$4 sm:$0xff]   ;;  %v10996_v52 = vld [vmem:[#allocation12 + $0x84] ss:$16 sps:$4 sm:$0xff]  }
 0x4b0   :  { %9625 = vtanh.f32 %v10831_v45  ;;  %12133 = vst [vmem:[#allocation23_spill] sm:$0xff] %v10986_v54  ;;  %12136 = vst [vmem:[#allocation26_spill] sm:$0xff] %v10996_v52 }
 0x4b1   :  { %4063 = vmatpush1.bf16.msra.mxu0 %v10674_v46  ;;  %4104 = vmatpush1.bf16.msra.mxu1 %v10676_v14 }
 0x4b2   :  { %4064 = vmatprep.subr.bf16.mxu0 %v10682_v41  ;;  %4105 = vmatprep.subr.bf16.mxu1 %v10684_v56  ;;  %v10852_v41 = vld [vmem:[#allocation9 + $0xe4] ss:$16 sps:$4 sm:$0xff]   ;;  %v10854_v56 = vld [vmem:[#allocation9 + $0xec] ss:$16 sps:$4 sm:$0xff]  }
 0x4b4   :  { %v9624_v46 = vpop.eup %9623 }
 0x4b5   :  { %4065 = vmatpush1.bf16.msra.mxu0 %v12117_v55  ;;  %4106 = vmatpush1.bf16.msra.mxu1 %v12118_v39  ;;  %v10998_v55 = vld [vmem:[#allocation12 + $0x8c] ss:$16 sps:$4 sm:$0xff]   ;;  %v11000_v39 = vld [vmem:[#allocation12 + $0x80] ss:$16 sps:$4 sm:$0xff]  }
 0x4b6   :  { %4066 = vmatprep.subr.bf16.mxu0 %v12119_v3  ;;  %4107 = vmatprep.subr.bf16.mxu1 %v12120_v61  ;;  %12137 = vst [vmem:[#allocation27_spill] sm:$0xff] %v10998_v55  ;;  %12138 = vst [vmem:[#allocation28_spill] sm:$0xff] %v11000_v39  ;;  %v11002_v3 = vld [vmem:[#allocation12 + $0x88] ss:$16 sps:$4 sm:$0xff]   ;;  %v11008_v61 = vld [vmem:[#allocation12 + $0x64] ss:$16 sps:$4 sm:$0xff]  }
 0x4b7   :  { %12139 = vst [vmem:[#allocation29_spill] sm:$0xff] %v11002_v3  ;;  %12140 = vst [vmem:[#allocation30_spill] sm:$0xff] %v11008_v61 }
 0x4b9   :  { %4067 = vmatpush1.bf16.msra.mxu0 %v12121_v58  ;;  %4108 = vmatpush1.bf16.msra.mxu1 %v12122_v57  ;;  %v11010_v58 = vld [vmem:[#allocation12 + $0x6c] ss:$16 sps:$4 sm:$0xff]   ;;  %v11012_v57 = vld [vmem:[#allocation12 + $0x60] ss:$16 sps:$4 sm:$0xff]  }
 0x4ba   :  { %4068 = vmatprep.subr.bf16.mxu0 %v12123_v51  ;;  %4109 = vmatprep.subr.bf16.mxu1 %v12124_v13  ;;  %12141 = vst [vmem:[#allocation32_spill] sm:$0xff] %v11010_v58  ;;  %12142 = vst [vmem:[#allocation34_spill] sm:$0xff] %v11012_v57  ;;  %v11014_v51 = vld [vmem:[#allocation12 + $0x68] ss:$16 sps:$4 sm:$0xff]   ;;  %v11020_v13 = vld [vmem:[#allocation12 + $0x44] ss:$16 sps:$4 sm:$0xff]  }
 0x4bb   :  { %12143 = vst [vmem:[#allocation31_spill] sm:$0xff] %v11014_v51  ;;  %12144 = vst [vmem:[#allocation33_spill] sm:$0xff] %v11020_v13 }
 0x4bd   :  { %v9626_v14 = vpop.eup %9625  ;;  %4069 = vmatpush1.bf16.msra.mxu0 %v10713_v43  ;;  %4110 = vmatpush1.bf16.msra.mxu1 %v10715_v42  ;;  %v10862_v43 = vld [vmem:[#allocation9 + $0xe8] ss:$16 sps:$4 sm:$0xff]   ;;  %v10880_v42 = vld [vmem:[#allocation9 + $0xa4] ss:$16 sps:$4 sm:$0xff]  }
 0x4be   :  { %4070 = vmatprep.subr.bf16.mxu0 %v10719_v48  ;;  %4111 = vmatprep.subr.bf16.mxu1 %v10721_v10  ;;  %v3584_v4 = vmul.f32 %v9626_v14, %v9624_v46  ;;  %v10866_v48 = vld [vmem:[#allocation9 + $0xc4] ss:$16 sps:$4 sm:$0xff]   ;;  %v10868_v10 = vld [vmem:[#allocation9 + $0xcc] ss:$16 sps:$4 sm:$0xff]   ;;  %v11024_v14 = vld [vmem:[#allocation12 + $0x40] ss:$16 sps:$4 sm:$0xff]  }
 0x4bf   :  { %v11022_v46 = vld [vmem:[#allocation12 + $0x4c] ss:$16 sps:$4 sm:$0xff]   ;;  %12146 = vst [vmem:[#allocation36_spill] sm:$0xff] %v11024_v14 }
 0x4c0   :  { %v10856_v44 = vpack.c.bf16 %v3584_v4, %v3584_v4  ;;  %12145 = vst [vmem:[#allocation35_spill] sm:$0xff] %v11022_v46  ;;  %v11026_v4 = vld [vmem:[#allocation12 + $0x48] ss:$16 sps:$4 sm:$0xff]  }
 0x4c1   :  { %4071 = vmatpush1.bf16.msra.mxu0 %v10725_v6  ;;  %4112 = vmatpush1.bf16.msra.mxu1 %v10727_v8  ;;  %v10874_v6 = vld [vmem:[#allocation9 + $0xc0] ss:$16 sps:$4 sm:$0xff]   ;;  %v10876_v8 = vld [vmem:[#allocation9 + $0xc8] ss:$16 sps:$4 sm:$0xff]   ;;  %12147 = vst [vmem:[#allocation37_spill] sm:$0xff] %v11026_v4 }
 0x4c2   :  { %4390 = vmatprep.subr.bf16.mxu0 %v10852_v41  ;;  %4431 = vmatprep.subr.bf16.mxu1 %v10854_v56 }
 0x4c4   :  { %4089 = vmatmul.mubr.bf16.vlgmr.msra.gmra.mxu0 %v10856_v44  ;;  %4130 = vmatmul.mubr.bf16.vlgmr.msra.gmra.mxu1 %v10856_v44 }
 0x4c5   :  { %4391 = vmatpush1.bf16.msra.mxu0 %v10860_v62  ;;  %4432 = vmatpush1.bf16.msra.mxu1 %v10862_v43 }
 0x4c6   :  { %4392 = vmatprep.subr.bf16.mxu0 %v10866_v48  ;;  %4433 = vmatprep.subr.bf16.mxu1 %v10868_v10 }
 0x4c7   :  { %4422 = vmatprep.mubr.bf16.mxu0 %v12000_v60  ;;  %4463 = vmatprep.mubr.bf16.mxu1 %v12000_v60 }
 0x4c9   :  { %4393 = vmatpush1.bf16.msra.mxu0 %v10874_v6  ;;  %4434 = vmatpush1.bf16.msra.mxu1 %v10876_v8 }
 0x4ca   :  { %4394 = vmatprep.subr.bf16.mxu0 %v10880_v42  ;;  %4435 = vmatprep.subr.bf16.mxu1 %v10882_v49 }
 0x4cd   :  { %4395 = vmatpush1.bf16.msra.mxu0 %v10888_v53  ;;  %4436 = vmatpush1.bf16.msra.mxu1 %v10890_v0 }
 0x4ce   :  { %4396 = vmatprep.subr.bf16.mxu0 %v10894_v2  ;;  %4437 = vmatprep.subr.bf16.mxu1 %v10896_v1 }
 0x4d1   :  { %4397 = vmatpush1.bf16.msra.mxu0 %v10900_v63  ;;  %4438 = vmatpush1.bf16.msra.mxu1 %v10902_v11 }
 0x4d2   :  { %4398 = vmatprep.subr.bf16.mxu0 %v10906_v16  ;;  %4439 = vmatprep.subr.bf16.mxu1 %v10908_v17 }
 0x4d5   :  { %4399 = vmatpush1.bf16.msra.mxu0 %v10912_v18  ;;  %4440 = vmatpush1.bf16.msra.mxu1 %v10914_v19 }
 0x4d6   :  { %4400 = vmatprep.subr.bf16.mxu0 %v10918_v20  ;;  %4441 = vmatprep.subr.bf16.mxu1 %v10920_v21 }
 0x4d9   :  { %4401 = vmatpush1.bf16.msra.mxu0 %v10924_v22  ;;  %4442 = vmatpush1.bf16.msra.mxu1 %v10926_v23 }
 0x4da   :  { %4402 = vmatprep.subr.bf16.mxu0 %v10930_v24  ;;  %4443 = vmatprep.subr.bf16.mxu1 %v10932_v26 }
 0x4dd   :  { %4403 = vmatpush1.bf16.msra.mxu0 %v10936_v27  ;;  %4444 = vmatpush1.bf16.msra.mxu1 %v10938_v28 }
 0x4de   :  { %4404 = vmatprep.subr.bf16.mxu0 %v10942_v29  ;;  %4445 = vmatprep.subr.bf16.mxu1 %v10944_v30 }
 0x4e1   :  { %4405 = vmatpush1.bf16.msra.mxu0 %v10948_v31  ;;  %4446 = vmatpush1.bf16.msra.mxu1 %v10950_v32 }
 0x4e2   :  { %4730 = vmatprep.subr.bf16.mxu0 %v10960_v33  ;;  %4771 = vmatprep.subr.bf16.mxu1 %v10962_v34 }
 0x4e4   :  { %4423 = vmatmul.mubr.bf16.vlgmr.msra.gmra.mxu0 %v10856_v44  ;;  %4464 = vmatmul.mubr.bf16.vlgmr.msra.gmra.mxu1 %v10856_v44  ;;  %v11032_v44 = vld [vmem:[#allocation12 + $0x24] ss:$16 sps:$4 sm:$0xff]  }
 0x4e5   :  { %4762 = vmatprep.mubr.bf16.mxu0 %v12000_v60  ;;  %4803 = vmatprep.mubr.bf16.mxu1 %v12000_v60  ;;  %12148 = vst [vmem:[#allocation38_spill] sm:$0xff] %v11032_v44 }
 0x4e6   :  { %4731 = vmatpush1.bf16.msra.mxu0 %v10964_v35  ;;  %4772 = vmatpush1.bf16.msra.mxu1 %v10966_v59 }
 0x4e7   :  { %4732 = vmatprep.subr.bf16.mxu0 %v10972_v36  ;;  %4773 = vmatprep.subr.bf16.mxu1 %v10974_v37 }
 0x4ea   :  { %4733 = vmatpush1.bf16.msra.mxu0 %v10976_v38  ;;  %4774 = vmatpush1.bf16.msra.mxu1 %v10978_v47 }
 0x4eb   :  { %4734 = vmatprep.subr.bf16.mxu0 %v10984_v7  ;;  %4775 = vmatprep.subr.bf16.mxu1 %v10986_v54 }
 0x4ee   :  { %4735 = vmatpush1.bf16.msra.mxu0 %v10988_v12  ;;  %4776 = vmatpush1.bf16.msra.mxu1 %v10990_v40 }
 0x4ef   :  { %4736 = vmatprep.subr.bf16.mxu0 %v10996_v52  ;;  %4777 = vmatprep.subr.bf16.mxu1 %v10998_v55 }
 0x4f2   :  { %4737 = vmatpush1.bf16.msra.mxu0 %v11000_v39  ;;  %4778 = vmatpush1.bf16.msra.mxu1 %v11002_v3 }
 0x4f3   :  { %4738 = vmatprep.subr.bf16.mxu0 %v11008_v61  ;;  %4779 = vmatprep.subr.bf16.mxu1 %v11010_v58  ;;  %v11038_v58 = vld [vmem:[#allocation12 + $0x28] ss:$16 sps:$4 sm:$0xff]  }
 0x4f4   :  { %12151 = vst [vmem:[#allocation40_spill] sm:$0xff] %v11038_v58 }
 0x4f6   :  { %4739 = vmatpush1.bf16.msra.mxu0 %v11012_v57  ;;  %4780 = vmatpush1.bf16.msra.mxu1 %v11014_v51  ;;  %v11034_v57 = vld [vmem:[#allocation12 + $0x2c] ss:$16 sps:$4 sm:$0xff]   ;;  %v11036_v51 = vld [vmem:[#allocation12 + $0x20] ss:$16 sps:$4 sm:$0xff]  }
 0x4f7   :  { %4740 = vmatprep.subr.bf16.mxu0 %v11020_v13  ;;  %4781 = vmatprep.subr.bf16.mxu1 %v11022_v46  ;;  %12149 = vst [vmem:[#allocation39_spill] sm:$0xff] %v11034_v57  ;;  %12150 = vst [vmem:[#allocation41_spill] sm:$0xff] %v11036_v51  ;;  %v11044_v46 = vld [vmem:[#allocation12 + $0x4] ss:$16 sps:$4 sm:$0xff]   ;;  %v11050_v13 = vld [vmem:[#allocation12 + $0x8] ss:$16 sps:$4 sm:$0xff]  }
 0x4f8   :  { %12152 = vst [vmem:[#allocation42_spill] sm:$0xff] %v11044_v46  ;;  %12155 = vst [vmem:[#allocation45_spill] sm:$0xff] %v11050_v13 }
 0x4fa   :  { %4741 = vmatpush1.bf16.msra.mxu0 %v11024_v14  ;;  %4782 = vmatpush1.bf16.msra.mxu1 %v11026_v4  ;;  %v11046_v14 = vld [vmem:[#allocation12 + $0xc] ss:$16 sps:$4 sm:$0xff]   ;;  %v11048_v4 = vld [vmem:[#allocation12] ss:$16 sps:$4 sm:$0xff]  }
 0x4fb   :  { %4742 = vmatprep.subr.bf16.mxu0 %v11032_v44  ;;  %4783 = vmatprep.subr.bf16.mxu1 %v11034_v57  ;;  %12153 = vst [vmem:[#allocation43_spill] sm:$0xff] %v11046_v14  ;;  %12154 = vst [vmem:[#allocation44_spill] sm:$0xff] %v11048_v4  ;;  %v11056_v57 = vld [vmem:[#allocation11 + $0xe4] ss:$16 sps:$4 sm:$0xff]  }
 0x4fc   :  { %12156 = vst [vmem:[#allocation46_spill] sm:$0xff] %v11056_v57 }
 0x4fe   :  { %4743 = vmatpush1.bf16.msra.mxu0 %v11036_v51  ;;  %4784 = vmatpush1.bf16.msra.mxu1 %v11038_v58  ;;  %v11058_v51 = vld [vmem:[#allocation11 + $0xec] ss:$16 sps:$4 sm:$0xff]  }
 0x4ff   :  { %4744 = vmatprep.subr.bf16.mxu0 %v11044_v46  ;;  %4785 = vmatprep.subr.bf16.mxu1 %v11046_v14  ;;  %12157 = vst [vmem:[#allocation75_spill] sm:$0xff] %v11058_v51 }
 0x502   :  { %4745 = vmatpush1.bf16.msra.mxu0 %v11048_v4  ;;  %4786 = vmatpush1.bf16.msra.mxu1 %v11050_v13  ;;  %v4138_v13 = vld [vmem:[%s11775_s6] sm:$0xf] }
 0x503   :  { %4972 = vmatprep.subr.bf16.mxu0 %v11056_v57  ;;  %5013 = vmatprep.subr.bf16.mxu1 %v11058_v51  ;;  %v4143_v4 = vrot.slane %v4138_v13, %v12111_v50  ;;  %v4147_v57 = vrot.slane %v4138_v13, %v12112_v15  ;;  %v4155_v50 = vrot.slane %v4138_v13, %v10211_v9 }
 0x564   :  { %v3848_v58 = vpop.f32.mrf.mxu0  ;;  %v3889_v44 = vpop.f32.mrf.mxu1 }
 0x566   :  { %v3850_v61 = vpop.f32.mrf.mxu0  ;;  %v3891_v3 = vpop.f32.mrf.mxu1 }
 0x568   :  { %v3852_v39 = vpop.f32.mrf.mxu0  ;;  %v3893_v46 = vpop.f32.mrf.mxu1 }
 0x56a   :  { %v3853_v55 = vpop.f32.mrf.mxu0  ;;  %v3894_v14 = vpop.f32.mrf.mxu1 }
 0x584   :  { %v4090_v52 = vpop.f32.mrf.mxu0  ;;  %v4131_v40 = vpop.f32.mrf.mxu1 }
 0x585   :  { %v4091_v12 = vadd.f32 %v4090_v52, %v3848_v58  ;;  %v4132_v52 = vadd.f32 %v4131_v40, %v3889_v44  ;;  %v4151_v58 = vrot.slane %v4138_v13, %v10207_v5  ;;  %v12159_v40 = vld [vmem:[#allocation61_spill] sm:$0xff] }
 0x586   :  { %v4092_v51 = vpop.f32.mrf.mxu0  ;;  %v4133_v54 = vpop.f32.mrf.mxu1 }
 0x587   :  { %v4160_v7 = vadd.f32 %v4143_v4, %v4091_v12  ;;  %v4093_v47 = vadd.f32 %v4092_v51, %v3850_v61  ;;  %v4134_v59 = vadd.f32 %v4133_v54, %v3891_v3  ;;  %v4162_v12 = vadd.f32 %v4151_v58, %v4132_v52 }
 0x588   :  { %v4094_v38 = vpop.f32.mrf.mxu0  ;;  %v4135_v39 = vpop.f32.mrf.mxu1 }
 0x589   :  { %v8420_v46 = vmul.f32 -1.442695, %v4160_v7  ;;  %v4161_v55 = vadd.f32 %v4147_v57, %v4093_v47  ;;  %v4163_v35 = vadd.f32 %v4155_v50, %v4134_v59 }
 0x58a   :  { %v4095_v14 = vpop.f32.mrf.mxu0  ;;  %v4136_v37 = vpop.f32.mrf.mxu1 }
 0x58b   :  { %9627 = vpow2.f32 %v8420_v46  ;;  %v8421_v36 = vmul.f32 -1.442695, %v4161_v55  ;;  %v8422_v15 = vmul.f32 -1.442695, %v4163_v35 }
 0x58d   :  { %9629 = vpow2.f32 %v8421_v36  ;;  %v12158_v36 = vld [vmem:[#allocation59_spill] sm:$0xff] }
 0x58e   :  { %9631 = vpow2.f32 %v8422_v15 }
 0x598   :  { %v9628_v34 = vpop.eup %9627 }
 0x599   :  { %v4167_v61 = vadd.f32 1.0, %v9628_v34 }
 0x59a   :  { %v9630_v38 = vpop.eup %9629 }
 0x59b   :  { %9633 = vrcp.f32 %v4167_v61  ;;  %v4173_v47 = vadd.f32 1.0, %v9630_v38  ;;  %v9632_v50 = vpop.eup %9631  ;;  %v12161_v38 = vld [vmem:[#allocation60_spill] sm:$0xff] }
 0x59c   :  { %9635 = vtanh.f32 %v4162_v12  ;;  %v4180_v39 = vadd.f32 1.0, %v9632_v50  ;;  %v12160_v12 = vld [vmem:[#allocation62_spill] sm:$0xff] }
 0x59d   :  { %9637 = vrcp.f32 %v4173_v47 }
 0x5a4   :  { %v4424_v37 = vpop.f32.mrf.mxu0  ;;  %v4465_v7 = vpop.f32.mrf.mxu1 }
 0x5a5   :  { %v4472_v54 = vadd.f32 %v4424_v37, %v12158_v36  ;;  %v4474_v47 = vadd.f32 %v4465_v7, %v12161_v38  ;;  %v11083_v7 = vld [vmem:[#allocation11 + $0xcc] ss:$16 sps:$4 sm:$0xff]  }
 0x5a6   :  { %v4426_v3 = vpop.f32.mrf.mxu0  ;;  %v4467_v57 = vpop.f32.mrf.mxu1  ;;  %v11109_v38 = vld [vmem:[#allocation11 + $0x8c] ss:$16 sps:$4 sm:$0xff]  }
 0x5a7   :  { %v8455_v59 = vmul.f32 -1.442695, %v4472_v54  ;;  %v4473_v51 = vadd.f32 %v4426_v3, %v12159_v40  ;;  %v4475_v61 = vadd.f32 %v4467_v57, %v12160_v12  ;;  %v11081_v57 = vld [vmem:[#allocation11 + $0xc4] ss:$16 sps:$4 sm:$0xff]  }
 0x5a8   :  { %v9634_v35 = vpop.eup %9633  ;;  %v4428_v13 = vpop.f32.mrf.mxu0 }
 0x5a9   :  { %v4469_v4 = vpop.f32.mrf.mxu1  ;;  %v9636_v34 = vpop.eup %9635  ;;  %9639 = vpow2.f32 %v8455_v59  ;;  %v8456_v15 = vmul.f32 -1.442695, %v4473_v51  ;;  %v8457_v37 = vmul.f32 -1.442695, %v4475_v61  ;;  %v11077_v51 = vld [vmem:[#allocation11 + $0xe0] ss:$16 sps:$4 sm:$0xff]  }
 0x5aa   :  { %v9638_v44 = vpop.eup %9637  ;;  %v4429_v46 = vpop.f32.mrf.mxu0  ;;  %v4185_v14 = vmul.f32 %v9636_v34, %v9634_v35  ;;  %v11079_v35 = vld [vmem:[#allocation11 + $0xe8] ss:$16 sps:$4 sm:$0xff]   ;;  %v11087_v4 = vld [vmem:[#allocation11 + $0xc0] ss:$16 sps:$4 sm:$0xff]   ;;  %v11107_v61 = vld [vmem:[#allocation11 + $0x84] ss:$16 sps:$4 sm:$0xff]  }
 0x5ab   :  { %v4470_v55 = vpop.f32.mrf.mxu1  ;;  %v4184_v52 = vmul.f32 %v9638_v44, %v10813_v25  ;;  %9641 = vpow2.f32 %v8456_v15  ;;  %v11089_v34 = vld [vmem:[#allocation11 + $0xc8] ss:$16 sps:$4 sm:$0xff]   ;;  %v11093_v15 = vld [vmem:[#allocation11 + $0xa4] ss:$16 sps:$4 sm:$0xff]   ;;  %v11095_v44 = vld [vmem:[#allocation11 + $0xac] ss:$16 sps:$4 sm:$0xff]  }
 0x5ac   :  { %9643 = vrcp.f32 %v4180_v39 }
 0x5ad   :  { %v11072_v58 = vadd.f32 %v4185_v14, %v4184_v52  ;;  %v11101_v14 = vld [vmem:[#allocation11 + $0xa0] ss:$16 sps:$4 sm:$0xff]   ;;  %v11103_v52 = vld [vmem:[#allocation11 + $0xa8] ss:$16 sps:$4 sm:$0xff]  }
 0x5af   :  { %9645 = vtanh.f32 %v11072_v58 }
 0x5b0   :  { %9647 = vtanh.f32 %v4474_v47 }
 0x5b1   :  { %9649 = vpow2.f32 %v8457_v37 }
 0x5b6   :  { %v9640_v36 = vpop.eup %9639 }
 0x5b7   :  { %v4479_v54 = vadd.f32 1.0, %v9640_v36 }
 0x5b8   :  { %v9642_v3 = vpop.eup %9641 }
 0x5b9   :  { %9651 = vrcp.f32 %v4479_v54  ;;  %v4485_v50 = vadd.f32 1.0, %v9642_v3  ;;  %v9644_v59 = vpop.eup %9643  ;;  %v11114_v54 = vld [vmem:[#allocation11 + $0x80] ss:$16 sps:$4 sm:$0xff]   ;;  %v11116_v3 = vld [vmem:[#allocation11 + $0x88] ss:$16 sps:$4 sm:$0xff]  }
 0x5bb   :  { %9653 = vrcp.f32 %v4485_v50 }
 0x5bc   :  { %v9646_v25 = vpop.eup %9645 }
 0x5bd   :  { %v4188_v40 = vmul.f32 %v9646_v25, %v9644_v59  ;;  %v9648_v39 = vpop.eup %9647  ;;  %v11122_v59 = vld [vmem:[#allocation11 + $0x64] ss:$16 sps:$4 sm:$0xff]   ;;  %v11124_v25 = vld [vmem:[#allocation11 + $0x6c] ss:$16 sps:$4 sm:$0xff]  }
 0x5be   :  { %v9650_v46 = vpop.eup %9649 }
 0x5bf   :  { %v4537_v13 = vpack.c.bf16 %v4188_v40, %v4188_v40  ;;  %v4492_v37 = vadd.f32 1.0, %v9650_v46  ;;  %v11131_v40 = vld [vmem:[#allocation11 + $0x68] ss:$16 sps:$4 sm:$0xff]   ;;  %v11141_v46 = vld [vmem:[#allocation11 + $0x40] ss:$16 sps:$4 sm:$0xff]  }
 0x5c0   :  { %12163 = vst [vmem:[#allocation57_spill] sm:$0xff] %v11131_v40  ;;  %12166 = vst [vmem:[#allocation51_spill] sm:$0xff] %v11141_v46 }
 0x5c1   :  { %4763 = vmatmul.mubr.bf16.vlgmr.msra.gmra.mxu0 %v4537_v13  ;;  %4804 = vmatmul.mubr.bf16.vlgmr.msra.gmra.mxu1 %v4537_v13  ;;  %9655 = vrcp.f32 %v4492_v37  ;;  %v11135_v13 = vld [vmem:[#allocation11 + $0x44] ss:$16 sps:$4 sm:$0xff]   ;;  %v11153_v37 = vld [vmem:[#allocation11 + $0x20] ss:$16 sps:$4 sm:$0xff]  }
 0x5c2   :  { %4973 = vmatpush1.bf16.msra.mxu0 %v11077_v51  ;;  %5014 = vmatpush1.bf16.msra.mxu1 %v11079_v35  ;;  %12164 = vst [vmem:[#allocation58_spill] sm:$0xff] %v11135_v13 }
 0x5c3   :  { %4974 = vmatprep.subr.bf16.mxu0 %v11081_v57  ;;  %5015 = vmatprep.subr.bf16.mxu1 %v11083_v7 }
 0x5c4   :  { %5004 = vmatprep.mubr.bf16.mxu0 %v12000_v60  ;;  %5045 = vmatprep.mubr.bf16.mxu1 %v12000_v60 }
 0x5c6   :  { %v9652_v55 = vpop.eup %9651  ;;  %4975 = vmatpush1.bf16.msra.mxu0 %v11087_v4  ;;  %5016 = vmatpush1.bf16.msra.mxu1 %v11089_v34 }
 0x5c7   :  { %v4497_v12 = vmul.f32 %v9652_v55, %v9648_v39  ;;  %4976 = vmatprep.subr.bf16.mxu0 %v11093_v15  ;;  %5017 = vmatprep.subr.bf16.mxu1 %v11095_v44  ;;  %v11137_v39 = vld [vmem:[#allocation11 + $0x4c] ss:$16 sps:$4 sm:$0xff]   ;;  %v11143_v55 = vld [vmem:[#allocation11 + $0x48] ss:$16 sps:$4 sm:$0xff]  }
 0x5c8   :  { %v9654_v47 = vpop.eup %9653  ;;  %12165 = vst [vmem:[#allocation56_spill] sm:$0xff] %v11137_v39  ;;  %12167 = vst [vmem:[#allocation53_spill] sm:$0xff] %v11143_v55 }
 0x5c9   :  { %v4496_v36 = vmul.f32 %v9654_v47, %v10831_v45  ;;  %v11129_v45 = vld [vmem:[#allocation11 + $0x60] ss:$16 sps:$4 sm:$0xff]   ;;  %v11149_v47 = vld [vmem:[#allocation11 + $0x2c] ss:$16 sps:$4 sm:$0xff]  }
 0x5ca   :  { %4977 = vmatpush1.bf16.msra.mxu0 %v11101_v14  ;;  %5018 = vmatpush1.bf16.msra.mxu1 %v11103_v52  ;;  %12162 = vst [vmem:[#allocation55_spill] sm:$0xff] %v11129_v45  ;;  %12169 = vst [vmem:[#allocation52_spill] sm:$0xff] %v11149_v47 }
 0x5cb   :  { %v11118_v50 = vadd.f32 %v4497_v12, %v4496_v36  ;;  %4978 = vmatprep.subr.bf16.mxu0 %v11107_v61  ;;  %5019 = vmatprep.subr.bf16.mxu1 %v11109_v38  ;;  %v11147_v12 = vld [vmem:[#allocation11 + $0x24] ss:$16 sps:$4 sm:$0xff]   ;;  %v11155_v36 = vld [vmem:[#allocation11 + $0x28] ss:$16 sps:$4 sm:$0xff]  }
 0x5cc   :  { %12168 = vst [vmem:[#allocation54_spill] sm:$0xff] %v11147_v12 }
 0x5cd   :  { %9657 = vtanh.f32 %v11118_v50 }
 0x5ce   :  { %4979 = vmatpush1.bf16.msra.mxu0 %v11114_v54  ;;  %5020 = vmatpush1.bf16.msra.mxu1 %v11116_v3 }
 0x5cf   :  { %4980 = vmatprep.subr.bf16.mxu0 %v11122_v59  ;;  %5021 = vmatprep.subr.bf16.mxu1 %v11124_v25 }
 0x5d2   :  { %4981 = vmatpush1.bf16.msra.mxu0 %v11129_v45  ;;  %5022 = vmatpush1.bf16.msra.mxu1 %v11131_v40  ;;  %v11159_v40 = vld [vmem:[#allocation11 + $0x4] ss:$16 sps:$4 sm:$0xff]  }
 0x5d3   :  { %4982 = vmatprep.subr.bf16.mxu0 %v11135_v13  ;;  %5023 = vmatprep.subr.bf16.mxu1 %v11137_v39  ;;  %v11161_v13 = vld [vmem:[#allocation11 + $0xc] ss:$16 sps:$4 sm:$0xff]   ;;  %v9656_v39 = vpop.eup %9655 }
 0x5d6   :  { %4983 = vmatpush1.bf16.msra.mxu0 %v11141_v46  ;;  %5024 = vmatpush1.bf16.msra.mxu1 %v11143_v55  ;;  %v11165_v46 = vld [vmem:[#allocation11] ss:$16 sps:$4 sm:$0xff]   ;;  %v11167_v55 = vld [vmem:[#allocation11 + $0x8] ss:$16 sps:$4 sm:$0xff]  }
 0x5d7   :  { %4984 = vmatprep.subr.bf16.mxu0 %v11147_v12  ;;  %5025 = vmatprep.subr.bf16.mxu1 %v11149_v47 }
 0x5da   :  { %v9658_v45 = vpop.eup %9657  ;;  %4985 = vmatpush1.bf16.msra.mxu0 %v11153_v37  ;;  %5026 = vmatpush1.bf16.msra.mxu1 %v11155_v36 }
 0x5db   :  { %4986 = vmatprep.subr.bf16.mxu0 %v11159_v40  ;;  %5027 = vmatprep.subr.bf16.mxu1 %v11161_v13  ;;  %v4500_v12 = vmul.f32 %v9658_v45, %v9656_v39 }
 0x5dd   :  { %v4503_v47 = vpack.c.bf16 %v4500_v12, %v4500_v12 }
 0x5de   :  { %4987 = vmatpush1.bf16.msra.mxu0 %v11165_v46  ;;  %5028 = vmatpush1.bf16.msra.mxu1 %v11167_v55 }
 0x5df   :  { %5306 = vmatprep.subr.bf16.mxu0 %v10852_v41  ;;  %5347 = vmatprep.subr.bf16.mxu1 %v10854_v56  ;;  %v12170_v41 = vld [vmem:[#allocation50_spill] sm:$0xff]  ;;  %v12171_v56 = vld [vmem:[#allocation49_spill] sm:$0xff] }
 0x5e1   :  { %5005 = vmatmul.mubr.bf16.vlgmr.msra.gmra.mxu0 %v4503_v47  ;;  %5046 = vmatmul.mubr.bf16.vlgmr.msra.gmra.mxu1 %v4503_v47 }
 0x5e2   :  { %5307 = vmatpush1.bf16.msra.mxu0 %v10860_v62  ;;  %5348 = vmatpush1.bf16.msra.mxu1 %v10862_v43  ;;  %v12172_v62 = vld [vmem:[#allocation17_spill] sm:$0xff]  ;;  %v12173_v43 = vld [vmem:[#allocation18_spill] sm:$0xff] }
 0x5e3   :  { %5308 = vmatprep.subr.bf16.mxu0 %v10866_v48  ;;  %5349 = vmatprep.subr.bf16.mxu1 %v10868_v10  ;;  %v12174_v48 = vld [vmem:[#allocation19_spill] sm:$0xff]  ;;  %v12175_v10 = vld [vmem:[#allocation20_spill] sm:$0xff] }
 0x5e4   :  { %5338 = vmatprep.mubr.bf16.mxu0 %v12000_v60  ;;  %5379 = vmatprep.mubr.bf16.mxu1 %v12000_v60 }
 0x5e6   :  { %5309 = vmatpush1.bf16.msra.mxu0 %v10874_v6  ;;  %5350 = vmatpush1.bf16.msra.mxu1 %v10876_v8  ;;  %v12176_v6 = vld [vmem:[#allocation21_spill] sm:$0xff]  ;;  %v12177_v8 = vld [vmem:[#allocation22_spill] sm:$0xff] }
 0x5e7   :  { %5310 = vmatprep.subr.bf16.mxu0 %v10880_v42  ;;  %5351 = vmatprep.subr.bf16.mxu1 %v10882_v49  ;;  %v12178_v42 = vld [vmem:[#allocation23_spill] sm:$0xff]  ;;  %v12179_v49 = vld [vmem:[#allocation24_spill] sm:$0xff] }
 0x5ea   :  { %5311 = vmatpush1.bf16.msra.mxu0 %v10888_v53  ;;  %5352 = vmatpush1.bf16.msra.mxu1 %v10890_v0  ;;  %v12180_v53 = vld [vmem:[#allocation25_spill] sm:$0xff]  ;;  %v12181_v0 = vld [vmem:[#allocation26_spill] sm:$0xff] }
 0x5eb   :  { %5312 = vmatprep.subr.bf16.mxu0 %v10894_v2  ;;  %5353 = vmatprep.subr.bf16.mxu1 %v10896_v1  ;;  %v12182_v2 = vld [vmem:[#allocation27_spill] sm:$0xff]  ;;  %v12183_v1 = vld [vmem:[#allocation28_spill] sm:$0xff] }
 0x5ee   :  { %5313 = vmatpush1.bf16.msra.mxu0 %v10900_v63  ;;  %5354 = vmatpush1.bf16.msra.mxu1 %v10902_v11  ;;  %v12184_v63 = vld [vmem:[#allocation29_spill] sm:$0xff]  ;;  %v12185_v11 = vld [vmem:[#allocation30_spill] sm:$0xff] }
 0x5ef   :  { %5314 = vmatprep.subr.bf16.mxu0 %v10906_v16  ;;  %5355 = vmatprep.subr.bf16.mxu1 %v10908_v17  ;;  %v12186_v16 = vld [vmem:[#allocation32_spill] sm:$0xff]  ;;  %v12187_v17 = vld [vmem:[#allocation34_spill] sm:$0xff] }
 0x5f2   :  { %5315 = vmatpush1.bf16.msra.mxu0 %v10912_v18  ;;  %5356 = vmatpush1.bf16.msra.mxu1 %v10914_v19  ;;  %v12188_v18 = vld [vmem:[#allocation31_spill] sm:$0xff]  ;;  %v12189_v19 = vld [vmem:[#allocation33_spill] sm:$0xff] }
 0x5f3   :  { %5316 = vmatprep.subr.bf16.mxu0 %v10918_v20  ;;  %5357 = vmatprep.subr.bf16.mxu1 %v10920_v21  ;;  %v12190_v20 = vld [vmem:[#allocation35_spill] sm:$0xff]  ;;  %v12191_v21 = vld [vmem:[#allocation36_spill] sm:$0xff] }
 0x5f6   :  { %5317 = vmatpush1.bf16.msra.mxu0 %v10924_v22  ;;  %5358 = vmatpush1.bf16.msra.mxu1 %v10926_v23  ;;  %v12192_v22 = vld [vmem:[#allocation37_spill] sm:$0xff]  ;;  %v12193_v23 = vld [vmem:[#allocation38_spill] sm:$0xff] }
 0x5f7   :  { %5318 = vmatprep.subr.bf16.mxu0 %v10930_v24  ;;  %5359 = vmatprep.subr.bf16.mxu1 %v10932_v26  ;;  %v12194_v24 = vld [vmem:[#allocation39_spill] sm:$0xff]  ;;  %v12195_v26 = vld [vmem:[#allocation41_spill] sm:$0xff] }
 0x5fa   :  { %5319 = vmatpush1.bf16.msra.mxu0 %v10936_v27  ;;  %5360 = vmatpush1.bf16.msra.mxu1 %v10938_v28  ;;  %v12196_v27 = vld [vmem:[#allocation40_spill] sm:$0xff]  ;;  %v12197_v28 = vld [vmem:[#allocation42_spill] sm:$0xff] }
 0x5fb   :  { %5320 = vmatprep.subr.bf16.mxu0 %v10942_v29  ;;  %5361 = vmatprep.subr.bf16.mxu1 %v10944_v30  ;;  %v12198_v29 = vld [vmem:[#allocation43_spill] sm:$0xff]  ;;  %v12199_v30 = vld [vmem:[#allocation44_spill] sm:$0xff] }
 0x5fe   :  { %5321 = vmatpush1.bf16.msra.mxu0 %v10948_v31  ;;  %5362 = vmatpush1.bf16.msra.mxu1 %v10950_v32  ;;  %v12200_v31 = vld [vmem:[#allocation45_spill] sm:$0xff]  ;;  %v12201_v32 = vld [vmem:[#allocation46_spill] sm:$0xff] }
 0x5ff   :  { %5646 = vmatprep.subr.bf16.mxu0 %v10960_v33  ;;  %5687 = vmatprep.subr.bf16.mxu1 %v12170_v41  ;;  %v12202_v33 = vld [vmem:[#allocation75_spill] sm:$0xff] }
 0x601   :  { %5339 = vmatmul.mubr.bf16.vlgmr.msra.gmra.mxu0 %v4503_v47  ;;  %5380 = vmatmul.mubr.bf16.vlgmr.msra.gmra.mxu1 %v4503_v47 }
 0x602   :  { %5647 = vmatpush1.bf16.msra.mxu0 %v12171_v56  ;;  %5688 = vmatpush1.bf16.msra.mxu1 %v12172_v62 }
 0x603   :  { %5648 = vmatprep.subr.bf16.mxu0 %v12173_v43  ;;  %5689 = vmatprep.subr.bf16.mxu1 %v12174_v48  ;;  %v5054_v48 = vld [vmem:[%s11775_s6] sm:$0xf] }
 0x604   :  { %5678 = vmatprep.mubr.bf16.mxu0 %v12000_v60  ;;  %5719 = vmatprep.mubr.bf16.mxu1 %v12000_v60 }
 0x606   :  { %5649 = vmatpush1.bf16.msra.mxu0 %v12175_v10  ;;  %5690 = vmatpush1.bf16.msra.mxu1 %v12176_v6  ;;  %v12203_v10 = vld [vmem:[#allocation47_spill] sm:$0xff] }
 0x607   :  { %5650 = vmatprep.subr.bf16.mxu0 %v12177_v8  ;;  %5691 = vmatprep.subr.bf16.mxu1 %v12178_v42  ;;  %v5059_v6 = vrot.slane %v5054_v48, %v12203_v10 }
 0x60a   :  { %5651 = vmatpush1.bf16.msra.mxu0 %v12179_v49  ;;  %5692 = vmatpush1.bf16.msra.mxu1 %v12180_v53  ;;  %v12204_v53 = vld [vmem:[#allocation48_spill] sm:$0xff] }
 0x60b   :  { %5652 = vmatprep.subr.bf16.mxu0 %v12181_v0  ;;  %5693 = vmatprep.subr.bf16.mxu1 %v12182_v2  ;;  %v5063_v0 = vrot.slane %v5054_v48, %v12204_v53 }
 0x60e   :  { %5653 = vmatpush1.bf16.msra.mxu0 %v12183_v1  ;;  %5694 = vmatpush1.bf16.msra.mxu1 %v12184_v63 }
 0x60f   :  { %5654 = vmatprep.subr.bf16.mxu0 %v12185_v11  ;;  %5695 = vmatprep.subr.bf16.mxu1 %v12186_v16 }
 0x612   :  { %5655 = vmatpush1.bf16.msra.mxu0 %v12187_v17  ;;  %5696 = vmatpush1.bf16.msra.mxu1 %v12188_v18 }
 0x613   :  { %5656 = vmatprep.subr.bf16.mxu0 %v12189_v19  ;;  %5697 = vmatprep.subr.bf16.mxu1 %v12190_v20 }
 0x616   :  { %5657 = vmatpush1.bf16.msra.mxu0 %v12191_v21  ;;  %5698 = vmatpush1.bf16.msra.mxu1 %v12192_v22 }
 0x617   :  { %5658 = vmatprep.subr.bf16.mxu0 %v12193_v23  ;;  %5699 = vmatprep.subr.bf16.mxu1 %v12194_v24  ;;  %v5071_v24 = vrot.slane %v5054_v48, %v10211_v9 }
 0x61a   :  { %5659 = vmatpush1.bf16.msra.mxu0 %v12195_v26  ;;  %5700 = vmatpush1.bf16.msra.mxu1 %v12196_v27 }
 0x61b   :  { %5660 = vmatprep.subr.bf16.mxu0 %v12197_v28  ;;  %5701 = vmatprep.subr.bf16.mxu1 %v12198_v29  ;;  %v5067_v28 = vrot.slane %v5054_v48, %v10207_v5 }
 0x61e   :  { %5661 = vmatpush1.bf16.msra.mxu0 %v12199_v30  ;;  %5702 = vmatpush1.bf16.msra.mxu1 %v12200_v31 }
 0x61f   :  { %5888 = vmatprep.subr.bf16.mxu0 %v12201_v32  ;;  %5929 = vmatprep.subr.bf16.mxu1 %v12202_v33 }
 0x681   :  { %v4764_v45 = vpop.f32.mrf.mxu0  ;;  %v4805_v39 = vpop.f32.mrf.mxu1 }
 0x683   :  { %v4766_v12 = vpop.f32.mrf.mxu0  ;;  %v4807_v47 = vpop.f32.mrf.mxu1 }
 0x685   :  { %v4768_v41 = vpop.f32.mrf.mxu0  ;;  %v4809_v56 = vpop.f32.mrf.mxu1 }
 0x686   :  { %v12205_v56 = vld [vmem:[#allocation63_spill] sm:$0xff] }
 0x687   :  { %v4769_v62 = vpop.f32.mrf.mxu0  ;;  %v4810_v43 = vpop.f32.mrf.mxu1 }
 0x6a1   :  { %v5006_v8 = vpop.f32.mrf.mxu0  ;;  %v5047_v42 = vpop.f32.mrf.mxu1 }
 0x6a2   :  { %v5007_v49 = vadd.f32 %v5006_v8, %v4764_v45  ;;  %v5048_v27 = vadd.f32 %v5047_v42, %v4805_v39  ;;  %v12206_v8 = vld [vmem:[#allocation65_spill] sm:$0xff] }
 0x6a3   :  { %v5008_v2 = vpop.f32.mrf.mxu0  ;;  %v5049_v1 = vpop.f32.mrf.mxu1 }
 0x6a4   :  { %v5076_v63 = vadd.f32 %v5059_v6, %v5007_v49  ;;  %v5009_v11 = vadd.f32 %v5008_v2, %v4766_v12  ;;  %v5050_v23 = vadd.f32 %v5049_v1, %v4807_v47  ;;  %v5078_v31 = vadd.f32 %v5067_v28, %v5048_v27 }
 0x6a5   :  { %v5010_v16 = vpop.f32.mrf.mxu0  ;;  %v5051_v17 = vpop.f32.mrf.mxu1 }
 0x6a6   :  { %v8522_v18 = vmul.f32 -1.442695, %v5076_v63  ;;  %v5077_v19 = vadd.f32 %v5063_v0, %v5009_v11  ;;  %v5079_v26 = vadd.f32 %v5071_v24, %v5050_v23  ;;  %v12208_v23 = vld [vmem:[#allocation64_spill] sm:$0xff] }
 0x6a7   :  { %v5011_v20 = vpop.f32.mrf.mxu0  ;;  %v5052_v21 = vpop.f32.mrf.mxu1 }
 0x6a8   :  { %9659 = vpow2.f32 %v8522_v18  ;;  %v8523_v22 = vmul.f32 -1.442695, %v5077_v19  ;;  %v8524_v29 = vmul.f32 -1.442695, %v5079_v26  ;;  %v12207_v21 = vld [vmem:[#allocation66_spill] sm:$0xff] }
 0x6aa   :  { %9661 = vpow2.f32 %v8523_v22 }
 0x6ab   :  { %9663 = vpow2.f32 %v8524_v29 }
 0x6b5   :  { %v9660_v30 = vpop.eup %9659 }
 0x6b6   :  { %v5083_v32 = vadd.f32 1.0, %v9660_v30 }
 0x6b7   :  { %v9662_v33 = vpop.eup %9661 }
 0x6b8   :  { %9665 = vrcp.f32 %v5083_v32  ;;  %v5089_v45 = vadd.f32 1.0, %v9662_v33  ;;  %v9664_v6 = vpop.eup %9663 }
 0x6b9   :  { %9667 = vtanh.f32 %v5078_v31  ;;  %v5096_v11 = vadd.f32 1.0, %v9664_v6  ;;  %v11328_v6 = vld [vmem:[#allocation9 + $0xa0] ss:$16 sps:$4 sm:$0xff]  }
 0x6ba   :  { %9669 = vrcp.f32 %v5089_v45 }
 0x6c1   :  { %v5340_v12 = vpop.f32.mrf.mxu0  ;;  %v5381_v41 = vpop.f32.mrf.mxu1 }
 0x6c2   :  { %v5388_v47 = vadd.f32 %v5340_v12, %v12205_v56  ;;  %v5390_v24 = vadd.f32 %v5381_v41, %v12208_v23  ;;  %v11378_v23 = vld [vmem:[#allocation9 + $0x28] ss:$16 sps:$4 sm:$0xff]  }
 0x6c3   :  { %v5342_v62 = vpop.f32.mrf.mxu0  ;;  %v5383_v43 = vpop.f32.mrf.mxu1 }
 0x6c4   :  { %v8557_v39 = vmul.f32 -1.442695, %v5388_v47  ;;  %v5389_v48 = vadd.f32 %v5342_v62, %v12206_v8  ;;  %v5391_v22 = vadd.f32 %v5383_v43, %v12207_v21  ;;  %v11300_v62 = vld [vmem:[#allocation9 + $0xe0] ss:$16 sps:$4 sm:$0xff]   ;;  %v11322_v43 = vld [vmem:[#allocation9 + $0xac] ss:$16 sps:$4 sm:$0xff]  }
 0x6c5   :  { %v9666_v42 = vpop.eup %9665  ;;  %v5344_v49 = vpop.f32.mrf.mxu0  ;;  %v11334_v8 = vld [vmem:[#allocation9 + $0x84] ss:$16 sps:$4 sm:$0xff]   ;;  %v11372_v21 = vld [vmem:[#allocation9 + $0x2c] ss:$16 sps:$4 sm:$0xff]  }
 0x6c6   :  { %v5385_v0 = vpop.f32.mrf.mxu1  ;;  %v9668_v2 = vpop.eup %9667  ;;  %9671 = vpow2.f32 %v8557_v39  ;;  %v8558_v1 = vmul.f32 -1.442695, %v5389_v48  ;;  %v8559_v26 = vmul.f32 -1.442695, %v5391_v22  ;;  %v11330_v39 = vld [vmem:[#allocation9 + $0xa8] ss:$16 sps:$4 sm:$0xff]  }
 0x6c7   :  { %v9670_v63 = vpop.eup %9669  ;;  %v5345_v16 = vpop.f32.mrf.mxu0  ;;  %v5101_v18 = vmul.f32 %v9668_v2, %v9666_v42  ;;  %v11336_v48 = vld [vmem:[#allocation9 + $0x8c] ss:$16 sps:$4 sm:$0xff]   ;;  %v11340_v42 = vld [vmem:[#allocation9 + $0x80] ss:$16 sps:$4 sm:$0xff]   ;;  %v11342_v49 = vld [vmem:[#allocation9 + $0x88] ss:$16 sps:$4 sm:$0xff]  }
 0x6c8   :  { %v5386_v17 = vpop.f32.mrf.mxu1  ;;  %v5100_v19 = vmul.f32 %v9670_v63, %v11072_v58  ;;  %9673 = vpow2.f32 %v8558_v1  ;;  %v11346_v0 = vld [vmem:[#allocation9 + $0x64] ss:$16 sps:$4 sm:$0xff]   ;;  %v11348_v2 = vld [vmem:[#allocation9 + $0x6c] ss:$16 sps:$4 sm:$0xff]   ;;  %v11352_v1 = vld [vmem:[#allocation9 + $0x60] ss:$16 sps:$4 sm:$0xff]  }
 0x6c9   :  { %9675 = vrcp.f32 %v5096_v11  ;;  %v11354_v63 = vld [vmem:[#allocation9 + $0x68] ss:$16 sps:$4 sm:$0xff]   ;;  %v11358_v11 = vld [vmem:[#allocation9 + $0x44] ss:$16 sps:$4 sm:$0xff]   ;;  %v11360_v16 = vld [vmem:[#allocation9 + $0x4c] ss:$16 sps:$4 sm:$0xff]  }
 0x6ca   :  { %v11253_v20 = vadd.f32 %v5101_v18, %v5100_v19  ;;  %v11364_v17 = vld [vmem:[#allocation9 + $0x40] ss:$16 sps:$4 sm:$0xff]   ;;  %v11366_v18 = vld [vmem:[#allocation9 + $0x48] ss:$16 sps:$4 sm:$0xff]   ;;  %v11370_v19 = vld [vmem:[#allocation9 + $0x24] ss:$16 sps:$4 sm:$0xff]  }
 0x6cb   :  { %v11376_v22 = vld [vmem:[#allocation9 + $0x20] ss:$16 sps:$4 sm:$0xff]  }
 0x6cc   :  { %9677 = vtanh.f32 %v11253_v20 }
 0x6cd   :  { %9679 = vtanh.f32 %v5390_v24  ;;  %v11382_v24 = vld [vmem:[#allocation9 + $0x4] ss:$16 sps:$4 sm:$0xff]  }
 0x6ce   :  { %9681 = vpow2.f32 %v8559_v26  ;;  %v11384_v26 = vld [vmem:[#allocation9 + $0xc] ss:$16 sps:$4 sm:$0xff]  }
 0x6d3   :  { %v9672_v27 = vpop.eup %9671 }
 0x6d4   :  { %v5395_v28 = vadd.f32 1.0, %v9672_v27  ;;  %v11388_v27 = vld [vmem:[#allocation9] ss:$16 sps:$4 sm:$0xff]  }
 0x6d5   :  { %v9674_v29 = vpop.eup %9673 }
 0x6d6   :  { %9683 = vrcp.f32 %v5395_v28  ;;  %v5401_v30 = vadd.f32 1.0, %v9674_v29  ;;  %v9676_v31 = vpop.eup %9675  ;;  %v11390_v28 = vld [vmem:[#allocation9 + $0x8] ss:$16 sps:$4 sm:$0xff]   ;;  %v11400_v29 = vld [vmem:[#allocation12 + $0xe4] ss:$16 sps:$4 sm:$0xff]  }
 0x6d8   :  { %9685 = vrcp.f32 %v5401_v30  ;;  %v11402_v30 = vld [vmem:[#allocation12 + $0xec] ss:$16 sps:$4 sm:$0xff]  }
 0x6d9   :  { %v9678_v58 = vpop.eup %9677  ;;  %12217 = vst [vmem:[#allocation76_spill] sm:$0xff] %v11402_v30 }
 0x6da   :  { %v5104_v32 = vmul.f32 %v9678_v58, %v9676_v31  ;;  %v9680_v45 = vpop.eup %9679  ;;  %v11404_v31 = vld [vmem:[#allocation12 + $0xe0] ss:$16 sps:$4 sm:$0xff]   ;;  %v11406_v58 = vld [vmem:[#allocation12 + $0xe8] ss:$16 sps:$4 sm:$0xff]  }
 0x6db   :  { %v9682_v12 = vpop.eup %9681  ;;  %12218 = vst [vmem:[#allocation77_spill] sm:$0xff] %v11404_v31  ;;  %12219 = vst [vmem:[#allocation78_spill] sm:$0xff] %v11406_v58 }
 0x6dc   :  { %v5453_v33 = vpack.c.bf16 %v5104_v32, %v5104_v32  ;;  %v11412_v32 = vld [vmem:[#allocation12 + $0xc4] ss:$16 sps:$4 sm:$0xff]  }
 0x6dd   :  { %12220 = vst [vmem:[#allocation79_spill] sm:$0xff] %v11412_v32 }
 0x6de   :  { %5679 = vmatmul.mubr.bf16.vlgmr.msra.gmra.mxu0 %v5453_v33  ;;  %5720 = vmatmul.mubr.bf16.vlgmr.msra.gmra.mxu1 %v5453_v33  ;;  %v11414_v33 = vld [vmem:[#allocation12 + $0xcc] ss:$16 sps:$4 sm:$0xff]  }
 0x6df   :  { %5889 = vmatpush1.bf16.msra.mxu0 %v11077_v51  ;;  %5930 = vmatpush1.bf16.msra.mxu1 %v11079_v35  ;;  %v5408_v35 = vadd.f32 1.0, %v9682_v12  ;;  %12221 = vst [vmem:[#allocation59_spill] sm:$0xff] %v11414_v33  ;;  %v11418_v12 = vld [vmem:[#allocation12 + $0xc8] ss:$16 sps:$4 sm:$0xff]  }
 0x6e0   :  { %5890 = vmatprep.subr.bf16.mxu0 %v11081_v57  ;;  %5931 = vmatprep.subr.bf16.mxu1 %v11083_v7  ;;  %12223 = vst [vmem:[#allocation62_spill] sm:$0xff] %v11418_v12 }
 0x6e1   :  { %5920 = vmatprep.mubr.bf16.mxu0 %v12000_v60  ;;  %5961 = vmatprep.mubr.bf16.mxu1 %v12000_v60  ;;  %9687 = vrcp.f32 %v5408_v35  ;;  %v11430_v35 = vld [vmem:[#allocation12 + $0xa8] ss:$16 sps:$4 sm:$0xff]  }
 0x6e2   :  { %12227 = vst [vmem:[#allocation17_spill] sm:$0xff] %v11430_v35 }
 0x6e3   :  { %v9684_v41 = vpop.eup %9683  ;;  %5891 = vmatpush1.bf16.msra.mxu0 %v11087_v4  ;;  %5932 = vmatpush1.bf16.msra.mxu1 %v11089_v34  ;;  %v12209_v4 = vld [vmem:[#allocation55_spill] sm:$0xff]  ;;  %v12210_v34 = vld [vmem:[#allocation57_spill] sm:$0xff] }
 0x6e4   :  { %v5413_v56 = vmul.f32 %v9684_v41, %v9680_v45  ;;  %5892 = vmatprep.subr.bf16.mxu0 %v11093_v15  ;;  %5933 = vmatprep.subr.bf16.mxu1 %v11095_v44  ;;  %v12211_v15 = vld [vmem:[#allocation58_spill] sm:$0xff]  ;;  %v12212_v44 = vld [vmem:[#allocation56_spill] sm:$0xff]  ;;  %v11416_v45 = vld [vmem:[#allocation12 + $0xc0] ss:$16 sps:$4 sm:$0xff]  }
 0x6e5   :  { %v9686_v51 = vpop.eup %9685  ;;  %12222 = vst [vmem:[#allocation61_spill] sm:$0xff] %v11416_v45  ;;  %v11424_v41 = vld [vmem:[#allocation12 + $0xa4] ss:$16 sps:$4 sm:$0xff]  }
 0x6e6   :  { %v5412_v57 = vmul.f32 %v9686_v51, %v11118_v50  ;;  %12224 = vst [vmem:[#allocation60_spill] sm:$0xff] %v11424_v41  ;;  %v11428_v51 = vld [vmem:[#allocation12 + $0xa0] ss:$16 sps:$4 sm:$0xff]  }
 0x6e7   :  { %5893 = vmatpush1.bf16.msra.mxu0 %v11101_v14  ;;  %5934 = vmatpush1.bf16.msra.mxu1 %v11103_v52  ;;  %v12213_v14 = vld [vmem:[#allocation51_spill] sm:$0xff]  ;;  %v12214_v52 = vld [vmem:[#allocation53_spill] sm:$0xff]  ;;  %12226 = vst [vmem:[#allocation49_spill] sm:$0xff] %v11428_v51 }
 0x6e8   :  { %v11271_v7 = vadd.f32 %v5413_v56, %v5412_v57  ;;  %5894 = vmatprep.subr.bf16.mxu0 %v11107_v61  ;;  %5935 = vmatprep.subr.bf16.mxu1 %v11109_v38  ;;  %v12215_v61 = vld [vmem:[#allocation54_spill] sm:$0xff]  ;;  %v12216_v38 = vld [vmem:[#allocation52_spill] sm:$0xff]  ;;  %v11436_v57 = vld [vmem:[#allocation12 + $0x84] ss:$16 sps:$4 sm:$0xff]  }
 0x6e9   :  { %v11426_v56 = vld [vmem:[#allocation12 + $0xac] ss:$16 sps:$4 sm:$0xff]   ;;  %12228 = vst [vmem:[#allocation18_spill] sm:$0xff] %v11436_v57 }
 0x6ea   :  { %9689 = vtanh.f32 %v11271_v7  ;;  %12225 = vst [vmem:[#allocation50_spill] sm:$0xff] %v11426_v56 }
 0x6eb   :  { %5895 = vmatpush1.bf16.msra.mxu0 %v11114_v54  ;;  %5936 = vmatpush1.bf16.msra.mxu1 %v11116_v3 }
 0x6ec   :  { %5896 = vmatprep.subr.bf16.mxu0 %v11122_v59  ;;  %5937 = vmatprep.subr.bf16.mxu1 %v11124_v25  ;;  %v11292_v59 = vld [vmem:[#allocation9 + $0xe4] ss:$16 sps:$4 sm:$0xff]   ;;  %v11294_v25 = vld [vmem:[#allocation9 + $0xec] ss:$16 sps:$4 sm:$0xff]  }
 0x6ee   :  { %v9688_v54 = vpop.eup %9687 }
 0x6ef   :  { %5897 = vmatpush1.bf16.msra.mxu0 %v12209_v4  ;;  %5938 = vmatpush1.bf16.msra.mxu1 %v12210_v34  ;;  %v11438_v4 = vld [vmem:[#allocation12 + $0x8c] ss:$16 sps:$4 sm:$0xff]   ;;  %v11440_v34 = vld [vmem:[#allocation12 + $0x80] ss:$16 sps:$4 sm:$0xff]  }
 0x6f0   :  { %5898 = vmatprep.subr.bf16.mxu0 %v12211_v15  ;;  %5939 = vmatprep.subr.bf16.mxu1 %v12212_v44  ;;  %12229 = vst [vmem:[#allocation19_spill] sm:$0xff] %v11438_v4  ;;  %12230 = vst [vmem:[#allocation20_spill] sm:$0xff] %v11440_v34  ;;  %v11442_v15 = vld [vmem:[#allocation12 + $0x88] ss:$16 sps:$4 sm:$0xff]   ;;  %v11448_v44 = vld [vmem:[#allocation12 + $0x64] ss:$16 sps:$4 sm:$0xff]  }
 0x6f1   :  { %12231 = vst [vmem:[#allocation21_spill] sm:$0xff] %v11442_v15  ;;  %12232 = vst [vmem:[#allocation22_spill] sm:$0xff] %v11448_v44 }
 0x6f3   :  { %5899 = vmatpush1.bf16.msra.mxu0 %v12213_v14  ;;  %5940 = vmatpush1.bf16.msra.mxu1 %v12214_v52  ;;  %v11450_v14 = vld [vmem:[#allocation12 + $0x6c] ss:$16 sps:$4 sm:$0xff]   ;;  %v11452_v52 = vld [vmem:[#allocation12 + $0x60] ss:$16 sps:$4 sm:$0xff]  }
 0x6f4   :  { %5900 = vmatprep.subr.bf16.mxu0 %v12215_v61  ;;  %5941 = vmatprep.subr.bf16.mxu1 %v12216_v38  ;;  %12233 = vst [vmem:[#allocation23_spill] sm:$0xff] %v11450_v14  ;;  %12234 = vst [vmem:[#allocation24_spill] sm:$0xff] %v11452_v52  ;;  %v11454_v61 = vld [vmem:[#allocation12 + $0x68] ss:$16 sps:$4 sm:$0xff]   ;;  %v11460_v38 = vld [vmem:[#allocation12 + $0x44] ss:$16 sps:$4 sm:$0xff]  }
 0x6f5   :  { %12235 = vst [vmem:[#allocation25_spill] sm:$0xff] %v11454_v61  ;;  %12236 = vst [vmem:[#allocation26_spill] sm:$0xff] %v11460_v38 }
 0x6f7   :  { %v9690_v3 = vpop.eup %9689  ;;  %5901 = vmatpush1.bf16.msra.mxu0 %v11153_v37  ;;  %5942 = vmatpush1.bf16.msra.mxu1 %v11155_v36  ;;  %v11302_v37 = vld [vmem:[#allocation9 + $0xe8] ss:$16 sps:$4 sm:$0xff]   ;;  %v11320_v36 = vld [vmem:[#allocation9 + $0xa4] ss:$16 sps:$4 sm:$0xff]  }
 0x6f8   :  { %5902 = vmatprep.subr.bf16.mxu0 %v11159_v40  ;;  %5943 = vmatprep.subr.bf16.mxu1 %v11161_v13  ;;  %v5416_v50 = vmul.f32 %v9690_v3, %v9688_v54  ;;  %v11306_v40 = vld [vmem:[#allocation9 + $0xc4] ss:$16 sps:$4 sm:$0xff]   ;;  %v11308_v13 = vld [vmem:[#allocation9 + $0xcc] ss:$16 sps:$4 sm:$0xff]   ;;  %v11464_v3 = vld [vmem:[#allocation12 + $0x40] ss:$16 sps:$4 sm:$0xff]  }
 0x6f9   :  { %v11462_v54 = vld [vmem:[#allocation12 + $0x4c] ss:$16 sps:$4 sm:$0xff]   ;;  %12238 = vst [vmem:[#allocation28_spill] sm:$0xff] %v11464_v3 }
 0x6fa   :  { %v11296_v47 = vpack.c.bf16 %v5416_v50, %v5416_v50  ;;  %12237 = vst [vmem:[#allocation27_spill] sm:$0xff] %v11462_v54  ;;  %v11466_v50 = vld [vmem:[#allocation12 + $0x48] ss:$16 sps:$4 sm:$0xff]  }
 0x6fb   :  { %5903 = vmatpush1.bf16.msra.mxu0 %v11165_v46  ;;  %5944 = vmatpush1.bf16.msra.mxu1 %v11167_v55  ;;  %v11314_v46 = vld [vmem:[#allocation9 + $0xc0] ss:$16 sps:$4 sm:$0xff]   ;;  %v11316_v55 = vld [vmem:[#allocation9 + $0xc8] ss:$16 sps:$4 sm:$0xff]   ;;  %12239 = vst [vmem:[#allocation29_spill] sm:$0xff] %v11466_v50 }
 0x6fc   :  { %6222 = vmatprep.subr.bf16.mxu0 %v11292_v59  ;;  %6263 = vmatprep.subr.bf16.mxu1 %v11294_v25 }
 0x6fe   :  { %5921 = vmatmul.mubr.bf16.vlgmr.msra.gmra.mxu0 %v11296_v47  ;;  %5962 = vmatmul.mubr.bf16.vlgmr.msra.gmra.mxu1 %v11296_v47 }
 0x6ff   :  { %6223 = vmatpush1.bf16.msra.mxu0 %v11300_v62  ;;  %6264 = vmatpush1.bf16.msra.mxu1 %v11302_v37 }
 0x700   :  { %6224 = vmatprep.subr.bf16.mxu0 %v11306_v40  ;;  %6265 = vmatprep.subr.bf16.mxu1 %v11308_v13 }
 0x701   :  { %6254 = vmatprep.mubr.bf16.mxu0 %v12000_v60  ;;  %6295 = vmatprep.mubr.bf16.mxu1 %v12000_v60 }
 0x703   :  { %6225 = vmatpush1.bf16.msra.mxu0 %v11314_v46  ;;  %6266 = vmatpush1.bf16.msra.mxu1 %v11316_v55 }
 0x704   :  { %6226 = vmatprep.subr.bf16.mxu0 %v11320_v36  ;;  %6267 = vmatprep.subr.bf16.mxu1 %v11322_v43 }
 0x707   :  { %6227 = vmatpush1.bf16.msra.mxu0 %v11328_v6  ;;  %6268 = vmatpush1.bf16.msra.mxu1 %v11330_v39 }
 0x708   :  { %6228 = vmatprep.subr.bf16.mxu0 %v11334_v8  ;;  %6269 = vmatprep.subr.bf16.mxu1 %v11336_v48 }
 0x70b   :  { %6229 = vmatpush1.bf16.msra.mxu0 %v11340_v42  ;;  %6270 = vmatpush1.bf16.msra.mxu1 %v11342_v49 }
 0x70c   :  { %6230 = vmatprep.subr.bf16.mxu0 %v11346_v0  ;;  %6271 = vmatprep.subr.bf16.mxu1 %v11348_v2 }
 0x70f   :  { %6231 = vmatpush1.bf16.msra.mxu0 %v11352_v1  ;;  %6272 = vmatpush1.bf16.msra.mxu1 %v11354_v63 }
 0x710   :  { %6232 = vmatprep.subr.bf16.mxu0 %v11358_v11  ;;  %6273 = vmatprep.subr.bf16.mxu1 %v11360_v16 }
 0x713   :  { %6233 = vmatpush1.bf16.msra.mxu0 %v11364_v17  ;;  %6274 = vmatpush1.bf16.msra.mxu1 %v11366_v18 }
 0x714   :  { %6234 = vmatprep.subr.bf16.mxu0 %v11370_v19  ;;  %6275 = vmatprep.subr.bf16.mxu1 %v11372_v21 }
 0x717   :  { %6235 = vmatpush1.bf16.msra.mxu0 %v11376_v22  ;;  %6276 = vmatpush1.bf16.msra.mxu1 %v11378_v23 }
 0x718   :  { %6236 = vmatprep.subr.bf16.mxu0 %v11382_v24  ;;  %6277 = vmatprep.subr.bf16.mxu1 %v11384_v26 }
 0x71b   :  { %6237 = vmatpush1.bf16.msra.mxu0 %v11388_v27  ;;  %6278 = vmatpush1.bf16.msra.mxu1 %v11390_v28 }
 0x71c   :  { %6562 = vmatprep.subr.bf16.mxu0 %v11400_v29  ;;  %6603 = vmatprep.subr.bf16.mxu1 %v11402_v30 }
 0x71e   :  { %6255 = vmatmul.mubr.bf16.vlgmr.msra.gmra.mxu0 %v11296_v47  ;;  %6296 = vmatmul.mubr.bf16.vlgmr.msra.gmra.mxu1 %v11296_v47  ;;  %v11472_v47 = vld [vmem:[#allocation12 + $0x24] ss:$16 sps:$4 sm:$0xff]  }
 0x71f   :  { %6594 = vmatprep.mubr.bf16.mxu0 %v12000_v60  ;;  %6635 = vmatprep.mubr.bf16.mxu1 %v12000_v60  ;;  %12240 = vst [vmem:[#allocation30_spill] sm:$0xff] %v11472_v47 }
 0x720   :  { %6563 = vmatpush1.bf16.msra.mxu0 %v11404_v31  ;;  %6604 = vmatpush1.bf16.msra.mxu1 %v11406_v58 }
 0x721   :  { %6564 = vmatprep.subr.bf16.mxu0 %v11412_v32  ;;  %6605 = vmatprep.subr.bf16.mxu1 %v11414_v33 }
 0x724   :  { %6565 = vmatpush1.bf16.msra.mxu0 %v11416_v45  ;;  %6606 = vmatpush1.bf16.msra.mxu1 %v11418_v12 }
 0x725   :  { %6566 = vmatprep.subr.bf16.mxu0 %v11424_v41  ;;  %6607 = vmatprep.subr.bf16.mxu1 %v11426_v56 }
 0x728   :  { %6567 = vmatpush1.bf16.msra.mxu0 %v11428_v51  ;;  %6608 = vmatpush1.bf16.msra.mxu1 %v11430_v35 }
 0x729   :  { %6568 = vmatprep.subr.bf16.mxu0 %v11436_v57  ;;  %6609 = vmatprep.subr.bf16.mxu1 %v11438_v4 }
 0x72c   :  { %6569 = vmatpush1.bf16.msra.mxu0 %v11440_v34  ;;  %6610 = vmatpush1.bf16.msra.mxu1 %v11442_v15 }
 0x72d   :  { %6570 = vmatprep.subr.bf16.mxu0 %v11448_v44  ;;  %6611 = vmatprep.subr.bf16.mxu1 %v11450_v14  ;;  %v11478_v14 = vld [vmem:[#allocation12 + $0x28] ss:$16 sps:$4 sm:$0xff]  }
 0x72e   :  { %12243 = vst [vmem:[#allocation31_spill] sm:$0xff] %v11478_v14 }
 0x730   :  { %6571 = vmatpush1.bf16.msra.mxu0 %v11452_v52  ;;  %6612 = vmatpush1.bf16.msra.mxu1 %v11454_v61  ;;  %v11474_v52 = vld [vmem:[#allocation12 + $0x2c] ss:$16 sps:$4 sm:$0xff]   ;;  %v11476_v61 = vld [vmem:[#allocation12 + $0x20] ss:$16 sps:$4 sm:$0xff]  }
 0x731   :  { %6572 = vmatprep.subr.bf16.mxu0 %v11460_v38  ;;  %6613 = vmatprep.subr.bf16.mxu1 %v11462_v54  ;;  %12241 = vst [vmem:[#allocation32_spill] sm:$0xff] %v11474_v52  ;;  %12242 = vst [vmem:[#allocation34_spill] sm:$0xff] %v11476_v61  ;;  %v11484_v54 = vld [vmem:[#allocation12 + $0x4] ss:$16 sps:$4 sm:$0xff]   ;;  %v11490_v38 = vld [vmem:[#allocation12 + $0x8] ss:$16 sps:$4 sm:$0xff]  }
 0x732   :  { %12244 = vst [vmem:[#allocation33_spill] sm:$0xff] %v11484_v54  ;;  %12247 = vst [vmem:[#allocation37_spill] sm:$0xff] %v11490_v38 }
 0x734   :  { %6573 = vmatpush1.bf16.msra.mxu0 %v11464_v3  ;;  %6614 = vmatpush1.bf16.msra.mxu1 %v11466_v50  ;;  %v11486_v3 = vld [vmem:[#allocation12 + $0xc] ss:$16 sps:$4 sm:$0xff]   ;;  %v11488_v50 = vld [vmem:[#allocation12] ss:$16 sps:$4 sm:$0xff]  }
 0x735   :  { %6574 = vmatprep.subr.bf16.mxu0 %v11472_v47  ;;  %6615 = vmatprep.subr.bf16.mxu1 %v11474_v52  ;;  %12245 = vst [vmem:[#allocation35_spill] sm:$0xff] %v11486_v3  ;;  %12246 = vst [vmem:[#allocation36_spill] sm:$0xff] %v11488_v50  ;;  %v11496_v52 = vld [vmem:[#allocation11 + $0xe4] ss:$16 sps:$4 sm:$0xff]  }
 0x736   :  { %12248 = vst [vmem:[#allocation38_spill] sm:$0xff] %v11496_v52 }
 0x738   :  { %6575 = vmatpush1.bf16.msra.mxu0 %v11476_v61  ;;  %6616 = vmatpush1.bf16.msra.mxu1 %v11478_v14  ;;  %v11498_v61 = vld [vmem:[#allocation11 + $0xec] ss:$16 sps:$4 sm:$0xff]  }
 0x739   :  { %6576 = vmatprep.subr.bf16.mxu0 %v11484_v54  ;;  %6617 = vmatprep.subr.bf16.mxu1 %v11486_v3  ;;  %12249 = vst [vmem:[#allocation39_spill] sm:$0xff] %v11498_v61 }
 0x73c   :  { %6577 = vmatpush1.bf16.msra.mxu0 %v11488_v50  ;;  %6618 = vmatpush1.bf16.msra.mxu1 %v11490_v38  ;;  %v5970_v38 = vld [vmem:[%s11775_s6] sm:$0xf] }
 0x73d   :  { %6804 = vmatprep.subr.bf16.mxu0 %v11496_v52  ;;  %6845 = vmatprep.subr.bf16.mxu1 %v11498_v61  ;;  %v5975_v50 = vrot.slane %v5970_v38, %v12203_v10  ;;  %v5979_v52 = vrot.slane %v5970_v38, %v12204_v53  ;;  %v5987_v10 = vrot.slane %v5970_v38, %v10211_v9 }
 0x79e   :  { %v5680_v14 = vpop.f32.mrf.mxu0  ;;  %v5721_v47 = vpop.f32.mrf.mxu1 }
 0x7a0   :  { %v5682_v44 = vpop.f32.mrf.mxu0  ;;  %v5723_v15 = vpop.f32.mrf.mxu1 }
 0x7a2   :  { %v5684_v34 = vpop.f32.mrf.mxu0  ;;  %v5725_v54 = vpop.f32.mrf.mxu1 }
 0x7a4   :  { %v5685_v4 = vpop.f32.mrf.mxu0  ;;  %v5726_v3 = vpop.f32.mrf.mxu1 }
 0x7be   :  { %v5922_v57 = vpop.f32.mrf.mxu0  ;;  %v5963_v35 = vpop.f32.mrf.mxu1 }
 0x7bf   :  { %v5923_v51 = vadd.f32 %v5922_v57, %v5680_v14  ;;  %v5964_v57 = vadd.f32 %v5963_v35, %v5721_v47  ;;  %v5983_v14 = vrot.slane %v5970_v38, %v10207_v5  ;;  %v12251_v35 = vld [vmem:[#allocation69_spill] sm:$0xff] }
 0x7c0   :  { %v5924_v61 = vpop.f32.mrf.mxu0  ;;  %v5965_v56 = vpop.f32.mrf.mxu1 }
 0x7c1   :  { %v5992_v41 = vadd.f32 %v5975_v50, %v5923_v51  ;;  %v5925_v12 = vadd.f32 %v5924_v61, %v5682_v44  ;;  %v5966_v58 = vadd.f32 %v5965_v56, %v5723_v15  ;;  %v5994_v51 = vadd.f32 %v5983_v14, %v5964_v57 }
 0x7c2   :  { %v5926_v45 = vpop.f32.mrf.mxu0  ;;  %v5967_v34 = vpop.f32.mrf.mxu1 }
 0x7c3   :  { %v8624_v54 = vmul.f32 -1.442695, %v5992_v41  ;;  %v5993_v4 = vadd.f32 %v5979_v52, %v5925_v12  ;;  %v5995_v31 = vadd.f32 %v5987_v10, %v5966_v58 }
 0x7c4   :  { %v5927_v3 = vpop.f32.mrf.mxu0  ;;  %v5968_v33 = vpop.f32.mrf.mxu1 }
 0x7c5   :  { %9691 = vpow2.f32 %v8624_v54  ;;  %v8625_v32 = vmul.f32 -1.442695, %v5993_v4  ;;  %v8626_v53 = vmul.f32 -1.442695, %v5995_v31 }
 0x7c7   :  { %9693 = vpow2.f32 %v8625_v32  ;;  %v12250_v32 = vld [vmem:[#allocation67_spill] sm:$0xff] }
 0x7c8   :  { %9695 = vpow2.f32 %v8626_v53 }
 0x7d2   :  { %v9692_v30 = vpop.eup %9691 }
 0x7d3   :  { %v5999_v44 = vadd.f32 1.0, %v9692_v30 }
 0x7d4   :  { %v9694_v45 = vpop.eup %9693 }
 0x7d5   :  { %9697 = vrcp.f32 %v5999_v44  ;;  %v6005_v12 = vadd.f32 1.0, %v9694_v45  ;;  %v9696_v10 = vpop.eup %9695  ;;  %v12253_v45 = vld [vmem:[#allocation68_spill] sm:$0xff] }
 0x7d6   :  { %9699 = vtanh.f32 %v5994_v51  ;;  %v6012_v34 = vadd.f32 1.0, %v9696_v10  ;;  %v12252_v51 = vld [vmem:[#allocation70_spill] sm:$0xff] }
 0x7d7   :  { %9701 = vrcp.f32 %v6005_v12 }
 0x7de   :  { %v6256_v33 = vpop.f32.mrf.mxu0  ;;  %v6297_v41 = vpop.f32.mrf.mxu1 }
 0x7df   :  { %v6304_v56 = vadd.f32 %v6256_v33, %v12250_v32  ;;  %v6306_v12 = vadd.f32 %v6297_v41, %v12253_v45  ;;  %v11523_v41 = vld [vmem:[#allocation11 + $0xcc] ss:$16 sps:$4 sm:$0xff]  }
 0x7e0   :  { %v6258_v15 = vpop.f32.mrf.mxu0  ;;  %v6299_v52 = vpop.f32.mrf.mxu1  ;;  %v11549_v45 = vld [vmem:[#allocation11 + $0x8c] ss:$16 sps:$4 sm:$0xff]  }
 0x7e1   :  { %v8659_v58 = vmul.f32 -1.442695, %v6304_v56  ;;  %v6305_v61 = vadd.f32 %v6258_v15, %v12251_v35  ;;  %v6307_v44 = vadd.f32 %v6299_v52, %v12252_v51  ;;  %v11521_v52 = vld [vmem:[#allocation11 + $0xc4] ss:$16 sps:$4 sm:$0xff]  }
 0x7e2   :  { %v9698_v31 = vpop.eup %9697  ;;  %v6260_v38 = vpop.f32.mrf.mxu0 }
 0x7e3   :  { %v6301_v50 = vpop.f32.mrf.mxu1  ;;  %v9700_v30 = vpop.eup %9699  ;;  %9703 = vpow2.f32 %v8659_v58  ;;  %v8660_v53 = vmul.f32 -1.442695, %v6305_v61  ;;  %v8661_v33 = vmul.f32 -1.442695, %v6307_v44  ;;  %v11517_v61 = vld [vmem:[#allocation11 + $0xe0] ss:$16 sps:$4 sm:$0xff]  }
 0x7e4   :  { %v9702_v47 = vpop.eup %9701  ;;  %v6261_v54 = vpop.f32.mrf.mxu0  ;;  %v6017_v3 = vmul.f32 %v9700_v30, %v9698_v31  ;;  %v11519_v31 = vld [vmem:[#allocation11 + $0xe8] ss:$16 sps:$4 sm:$0xff]   ;;  %v11527_v50 = vld [vmem:[#allocation11 + $0xc0] ss:$16 sps:$4 sm:$0xff]   ;;  %v11547_v44 = vld [vmem:[#allocation11 + $0x84] ss:$16 sps:$4 sm:$0xff]  }
 0x7e5   :  { %v6302_v4 = vpop.f32.mrf.mxu1  ;;  %v6016_v57 = vmul.f32 %v9702_v47, %v11253_v20  ;;  %9705 = vpow2.f32 %v8660_v53  ;;  %v11529_v30 = vld [vmem:[#allocation11 + $0xc8] ss:$16 sps:$4 sm:$0xff]   ;;  %v11533_v53 = vld [vmem:[#allocation11 + $0xa4] ss:$16 sps:$4 sm:$0xff]   ;;  %v11535_v47 = vld [vmem:[#allocation11 + $0xac] ss:$16 sps:$4 sm:$0xff]  }
 0x7e6   :  { %9707 = vrcp.f32 %v6012_v34 }
 0x7e7   :  { %v11512_v14 = vadd.f32 %v6017_v3, %v6016_v57  ;;  %v11541_v3 = vld [vmem:[#allocation11 + $0xa0] ss:$16 sps:$4 sm:$0xff]   ;;  %v11543_v57 = vld [vmem:[#allocation11 + $0xa8] ss:$16 sps:$4 sm:$0xff]  }
 0x7e9   :  { %9709 = vtanh.f32 %v11512_v14 }
 0x7ea   :  { %9711 = vtanh.f32 %v6306_v12 }
 0x7eb   :  { %9713 = vpow2.f32 %v8661_v33 }
 0x7f0   :  { %v9704_v32 = vpop.eup %9703 }
 0x7f1   :  { %v6311_v56 = vadd.f32 1.0, %v9704_v32 }
 0x7f2   :  { %v9706_v15 = vpop.eup %9705 }
 0x7f3   :  { %9715 = vrcp.f32 %v6311_v56  ;;  %v6317_v10 = vadd.f32 1.0, %v9706_v15  ;;  %v9708_v58 = vpop.eup %9707  ;;  %v11554_v56 = vld [vmem:[#allocation11 + $0x80] ss:$16 sps:$4 sm:$0xff]   ;;  %v11556_v15 = vld [vmem:[#allocation11 + $0x88] ss:$16 sps:$4 sm:$0xff]  }
 0x7f5   :  { %9717 = vrcp.f32 %v6317_v10 }
 0x7f6   :  { %v9710_v20 = vpop.eup %9709 }
 0x7f7   :  { %v6020_v35 = vmul.f32 %v9710_v20, %v9708_v58  ;;  %v9712_v34 = vpop.eup %9711  ;;  %v11562_v58 = vld [vmem:[#allocation11 + $0x64] ss:$16 sps:$4 sm:$0xff]   ;;  %v11564_v20 = vld [vmem:[#allocation11 + $0x6c] ss:$16 sps:$4 sm:$0xff]  }
 0x7f8   :  { %v9714_v54 = vpop.eup %9713 }
 0x7f9   :  { %v6369_v38 = vpack.c.bf16 %v6020_v35, %v6020_v35  ;;  %v6324_v33 = vadd.f32 1.0, %v9714_v54  ;;  %v11571_v35 = vld [vmem:[#allocation11 + $0x68] ss:$16 sps:$4 sm:$0xff]   ;;  %v11581_v54 = vld [vmem:[#allocation11 + $0x40] ss:$16 sps:$4 sm:$0xff]  }
 0x7fa   :  { %12255 = vst [vmem:[#allocation40_spill] sm:$0xff] %v11571_v35  ;;  %12258 = vst [vmem:[#allocation44_spill] sm:$0xff] %v11581_v54 }
 0x7fb   :  { %6595 = vmatmul.mubr.bf16.vlgmr.msra.gmra.mxu0 %v6369_v38  ;;  %6636 = vmatmul.mubr.bf16.vlgmr.msra.gmra.mxu1 %v6369_v38  ;;  %9719 = vrcp.f32 %v6324_v33  ;;  %v11575_v38 = vld [vmem:[#allocation11 + $0x44] ss:$16 sps:$4 sm:$0xff]   ;;  %v11593_v33 = vld [vmem:[#allocation11 + $0x20] ss:$16 sps:$4 sm:$0xff]  }
 0x7fc   :  { %6805 = vmatpush1.bf16.msra.mxu0 %v11517_v61  ;;  %6846 = vmatpush1.bf16.msra.mxu1 %v11519_v31  ;;  %12256 = vst [vmem:[#allocation42_spill] sm:$0xff] %v11575_v38 }
 0x7fd   :  { %6806 = vmatprep.subr.bf16.mxu0 %v11521_v52  ;;  %6847 = vmatprep.subr.bf16.mxu1 %v11523_v41 }
 0x7fe   :  { %6836 = vmatprep.mubr.bf16.mxu0 %v12000_v60  ;;  %6877 = vmatprep.mubr.bf16.mxu1 %v12000_v60 }
 0x800   :  { %v9716_v4 = vpop.eup %9715  ;;  %6807 = vmatpush1.bf16.msra.mxu0 %v11527_v50  ;;  %6848 = vmatpush1.bf16.msra.mxu1 %v11529_v30 }
 0x801   :  { %v6329_v51 = vmul.f32 %v9716_v4, %v9712_v34  ;;  %6808 = vmatprep.subr.bf16.mxu0 %v11533_v53  ;;  %6849 = vmatprep.subr.bf16.mxu1 %v11535_v47  ;;  %v11577_v34 = vld [vmem:[#allocation11 + $0x4c] ss:$16 sps:$4 sm:$0xff]   ;;  %v11583_v4 = vld [vmem:[#allocation11 + $0x48] ss:$16 sps:$4 sm:$0xff]  }
 0x802   :  { %v9718_v12 = vpop.eup %9717  ;;  %12257 = vst [vmem:[#allocation43_spill] sm:$0xff] %v11577_v34  ;;  %12259 = vst [vmem:[#allocation45_spill] sm:$0xff] %v11583_v4 }
 0x803   :  { %v6328_v32 = vmul.f32 %v9718_v12, %v11271_v7  ;;  %v11569_v7 = vld [vmem:[#allocation11 + $0x60] ss:$16 sps:$4 sm:$0xff]   ;;  %v11589_v12 = vld [vmem:[#allocation11 + $0x2c] ss:$16 sps:$4 sm:$0xff]  }
 0x804   :  { %6809 = vmatpush1.bf16.msra.mxu0 %v11541_v3  ;;  %6850 = vmatpush1.bf16.msra.mxu1 %v11543_v57  ;;  %12254 = vst [vmem:[#allocation41_spill] sm:$0xff] %v11569_v7  ;;  %12261 = vst [vmem:[#allocation75_spill] sm:$0xff] %v11589_v12 }
 0x805   :  { %v11558_v10 = vadd.f32 %v6329_v51, %v6328_v32  ;;  %6810 = vmatprep.subr.bf16.mxu0 %v11547_v44  ;;  %6851 = vmatprep.subr.bf16.mxu1 %v11549_v45  ;;  %v11587_v51 = vld [vmem:[#allocation11 + $0x24] ss:$16 sps:$4 sm:$0xff]   ;;  %v11595_v32 = vld [vmem:[#allocation11 + $0x28] ss:$16 sps:$4 sm:$0xff]  }
 0x806   :  { %12260 = vst [vmem:[#allocation46_spill] sm:$0xff] %v11587_v51 }
 0x807   :  { %9721 = vtanh.f32 %v11558_v10 }
 0x808   :  { %6811 = vmatpush1.bf16.msra.mxu0 %v11554_v56  ;;  %6852 = vmatpush1.bf16.msra.mxu1 %v11556_v15 }
 0x809   :  { %6812 = vmatprep.subr.bf16.mxu0 %v11562_v58  ;;  %6853 = vmatprep.subr.bf16.mxu1 %v11564_v20 }
 0x80c   :  { %6813 = vmatpush1.bf16.msra.mxu0 %v11569_v7  ;;  %6854 = vmatpush1.bf16.msra.mxu1 %v11571_v35  ;;  %v11599_v35 = vld [vmem:[#allocation11 + $0x4] ss:$16 sps:$4 sm:$0xff]  }
 0x80d   :  { %6814 = vmatprep.subr.bf16.mxu0 %v11575_v38  ;;  %6855 = vmatprep.subr.bf16.mxu1 %v11577_v34  ;;  %v11601_v38 = vld [vmem:[#allocation11 + $0xc] ss:$16 sps:$4 sm:$0xff]   ;;  %v9720_v34 = vpop.eup %9719 }
 0x810   :  { %6815 = vmatpush1.bf16.msra.mxu0 %v11581_v54  ;;  %6856 = vmatpush1.bf16.msra.mxu1 %v11583_v4  ;;  %v11605_v54 = vld [vmem:[#allocation11] ss:$16 sps:$4 sm:$0xff]   ;;  %v11607_v4 = vld [vmem:[#allocation11 + $0x8] ss:$16 sps:$4 sm:$0xff]  }
 0x811   :  { %6816 = vmatprep.subr.bf16.mxu0 %v11587_v51  ;;  %6857 = vmatprep.subr.bf16.mxu1 %v11589_v12 }
 0x814   :  { %v9722_v7 = vpop.eup %9721  ;;  %6817 = vmatpush1.bf16.msra.mxu0 %v11593_v33  ;;  %6858 = vmatpush1.bf16.msra.mxu1 %v11595_v32 }
 0x815   :  { %6818 = vmatprep.subr.bf16.mxu0 %v11599_v35  ;;  %6859 = vmatprep.subr.bf16.mxu1 %v11601_v38  ;;  %v6332_v51 = vmul.f32 %v9722_v7, %v9720_v34 }
 0x817   :  { %v6335_v12 = vpack.c.bf16 %v6332_v51, %v6332_v51 }
 0x818   :  { %6819 = vmatpush1.bf16.msra.mxu0 %v11605_v54  ;;  %6860 = vmatpush1.bf16.msra.mxu1 %v11607_v4 }
 0x819   :  { %7138 = vmatprep.subr.bf16.mxu0 %v11292_v59  ;;  %7179 = vmatprep.subr.bf16.mxu1 %v11294_v25  ;;  %v12262_v59 = vld [vmem:[#allocation76_spill] sm:$0xff]  ;;  %v12263_v25 = vld [vmem:[#allocation77_spill] sm:$0xff] }
 0x81b   :  { %6837 = vmatmul.mubr.bf16.vlgmr.msra.gmra.mxu0 %v6335_v12  ;;  %6878 = vmatmul.mubr.bf16.vlgmr.msra.gmra.mxu1 %v6335_v12 }
 0x81c   :  { %7139 = vmatpush1.bf16.msra.mxu0 %v11300_v62  ;;  %7180 = vmatpush1.bf16.msra.mxu1 %v11302_v37  ;;  %v12264_v62 = vld [vmem:[#allocation78_spill] sm:$0xff]  ;;  %v12265_v37 = vld [vmem:[#allocation79_spill] sm:$0xff] }
 0x81d   :  { %7140 = vmatprep.subr.bf16.mxu0 %v11306_v40  ;;  %7181 = vmatprep.subr.bf16.mxu1 %v11308_v13  ;;  %v12266_v40 = vld [vmem:[#allocation59_spill] sm:$0xff]  ;;  %v12267_v13 = vld [vmem:[#allocation61_spill] sm:$0xff] }
 0x81e   :  { %7170 = vmatprep.mubr.bf16.mxu0 %v12000_v60  ;;  %7211 = vmatprep.mubr.bf16.mxu1 %v12000_v60 }
 0x820   :  { %7141 = vmatpush1.bf16.msra.mxu0 %v11314_v46  ;;  %7182 = vmatpush1.bf16.msra.mxu1 %v11316_v55  ;;  %v12268_v46 = vld [vmem:[#allocation62_spill] sm:$0xff]  ;;  %v12269_v55 = vld [vmem:[#allocation60_spill] sm:$0xff] }
 0x821   :  { %7142 = vmatprep.subr.bf16.mxu0 %v11320_v36  ;;  %7183 = vmatprep.subr.bf16.mxu1 %v11322_v43  ;;  %v12270_v36 = vld [vmem:[#allocation50_spill] sm:$0xff]  ;;  %v12271_v43 = vld [vmem:[#allocation49_spill] sm:$0xff] }
 0x824   :  { %7143 = vmatpush1.bf16.msra.mxu0 %v11328_v6  ;;  %7184 = vmatpush1.bf16.msra.mxu1 %v11330_v39  ;;  %v12272_v6 = vld [vmem:[#allocation17_spill] sm:$0xff]  ;;  %v12273_v39 = vld [vmem:[#allocation18_spill] sm:$0xff] }
 0x825   :  { %7144 = vmatprep.subr.bf16.mxu0 %v11334_v8  ;;  %7185 = vmatprep.subr.bf16.mxu1 %v11336_v48  ;;  %v12274_v8 = vld [vmem:[#allocation19_spill] sm:$0xff]  ;;  %v12275_v48 = vld [vmem:[#allocation20_spill] sm:$0xff] }
 0x828   :  { %7145 = vmatpush1.bf16.msra.mxu0 %v11340_v42  ;;  %7186 = vmatpush1.bf16.msra.mxu1 %v11342_v49  ;;  %v12276_v42 = vld [vmem:[#allocation21_spill] sm:$0xff]  ;;  %v12277_v49 = vld [vmem:[#allocation22_spill] sm:$0xff] }
 0x829   :  { %7146 = vmatprep.subr.bf16.mxu0 %v11346_v0  ;;  %7187 = vmatprep.subr.bf16.mxu1 %v11348_v2  ;;  %v12278_v0 = vld [vmem:[#allocation23_spill] sm:$0xff]  ;;  %v12279_v2 = vld [vmem:[#allocation24_spill] sm:$0xff] }
 0x82c   :  { %7147 = vmatpush1.bf16.msra.mxu0 %v11352_v1  ;;  %7188 = vmatpush1.bf16.msra.mxu1 %v11354_v63  ;;  %v12280_v1 = vld [vmem:[#allocation25_spill] sm:$0xff]  ;;  %v12281_v63 = vld [vmem:[#allocation26_spill] sm:$0xff] }
 0x82d   :  { %7148 = vmatprep.subr.bf16.mxu0 %v11358_v11  ;;  %7189 = vmatprep.subr.bf16.mxu1 %v11360_v16  ;;  %v12282_v11 = vld [vmem:[#allocation27_spill] sm:$0xff]  ;;  %v12283_v16 = vld [vmem:[#allocation28_spill] sm:$0xff] }
 0x830   :  { %7149 = vmatpush1.bf16.msra.mxu0 %v11364_v17  ;;  %7190 = vmatpush1.bf16.msra.mxu1 %v11366_v18  ;;  %v12284_v17 = vld [vmem:[#allocation29_spill] sm:$0xff]  ;;  %v12285_v18 = vld [vmem:[#allocation30_spill] sm:$0xff] }
 0x831   :  { %7150 = vmatprep.subr.bf16.mxu0 %v11370_v19  ;;  %7191 = vmatprep.subr.bf16.mxu1 %v11372_v21  ;;  %v12286_v19 = vld [vmem:[#allocation32_spill] sm:$0xff]  ;;  %v12287_v21 = vld [vmem:[#allocation34_spill] sm:$0xff] }
 0x834   :  { %7151 = vmatpush1.bf16.msra.mxu0 %v11376_v22  ;;  %7192 = vmatpush1.bf16.msra.mxu1 %v11378_v23  ;;  %v12288_v22 = vld [vmem:[#allocation31_spill] sm:$0xff]  ;;  %v12289_v23 = vld [vmem:[#allocation33_spill] sm:$0xff] }
 0x835   :  { %7152 = vmatprep.subr.bf16.mxu0 %v11382_v24  ;;  %7193 = vmatprep.subr.bf16.mxu1 %v11384_v26  ;;  %v12290_v24 = vld [vmem:[#allocation35_spill] sm:$0xff]  ;;  %v12291_v26 = vld [vmem:[#allocation36_spill] sm:$0xff] }
 0x838   :  { %7153 = vmatpush1.bf16.msra.mxu0 %v11388_v27  ;;  %7194 = vmatpush1.bf16.msra.mxu1 %v11390_v28  ;;  %v12292_v27 = vld [vmem:[#allocation37_spill] sm:$0xff]  ;;  %v12293_v28 = vld [vmem:[#allocation38_spill] sm:$0xff] }
 0x839   :  { %7478 = vmatprep.subr.bf16.mxu0 %v11400_v29  ;;  %7519 = vmatprep.subr.bf16.mxu1 %v12262_v59  ;;  %v12294_v29 = vld [vmem:[#allocation39_spill] sm:$0xff] }
 0x83b   :  { %7171 = vmatmul.mubr.bf16.vlgmr.msra.gmra.mxu0 %v6335_v12  ;;  %7212 = vmatmul.mubr.bf16.vlgmr.msra.gmra.mxu1 %v6335_v12 }
 0x83c   :  { %7479 = vmatpush1.bf16.msra.mxu0 %v12263_v25  ;;  %7520 = vmatpush1.bf16.msra.mxu1 %v12264_v62 }
 0x83d   :  { %7480 = vmatprep.subr.bf16.mxu0 %v12265_v37  ;;  %7521 = vmatprep.subr.bf16.mxu1 %v12266_v40  ;;  %v6886_v40 = vld [vmem:[%s11775_s6] sm:$0xf] }
 0x83e   :  { %7510 = vmatprep.mubr.bf16.mxu0 %v12000_v60  ;;  %7551 = vmatprep.mubr.bf16.mxu1 %v12000_v60 }
 0x840   :  { %7481 = vmatpush1.bf16.msra.mxu0 %v12267_v13  ;;  %7522 = vmatpush1.bf16.msra.mxu1 %v12268_v46  ;;  %v12295_v13 = vld [vmem:[#allocation47_spill] sm:$0xff] }
 0x841   :  { %7482 = vmatprep.subr.bf16.mxu0 %v12269_v55  ;;  %7523 = vmatprep.subr.bf16.mxu1 %v12270_v36  ;;  %v6891_v46 = vrot.slane %v6886_v40, %v12295_v13 }
 0x844   :  { %7483 = vmatpush1.bf16.msra.mxu0 %v12271_v43  ;;  %7524 = vmatpush1.bf16.msra.mxu1 %v12272_v6  ;;  %v12296_v6 = vld [vmem:[#allocation48_spill] sm:$0xff] }
 0x845   :  { %7484 = vmatprep.subr.bf16.mxu0 %v12273_v39  ;;  %7525 = vmatprep.subr.bf16.mxu1 %v12274_v8  ;;  %v6895_v39 = vrot.slane %v6886_v40, %v12296_v6 }
 0x848   :  { %7485 = vmatpush1.bf16.msra.mxu0 %v12275_v48  ;;  %7526 = vmatpush1.bf16.msra.mxu1 %v12276_v42 }
 0x849   :  { %7486 = vmatprep.subr.bf16.mxu0 %v12277_v49  ;;  %7527 = vmatprep.subr.bf16.mxu1 %v12278_v0 }
 0x84c   :  { %7487 = vmatpush1.bf16.msra.mxu0 %v12279_v2  ;;  %7528 = vmatpush1.bf16.msra.mxu1 %v12280_v1 }
 0x84d   :  { %7488 = vmatprep.subr.bf16.mxu0 %v12281_v63  ;;  %7529 = vmatprep.subr.bf16.mxu1 %v12282_v11 }
 0x850   :  { %7489 = vmatpush1.bf16.msra.mxu0 %v12283_v16  ;;  %7530 = vmatpush1.bf16.msra.mxu1 %v12284_v17 }
 0x851   :  { %7490 = vmatprep.subr.bf16.mxu0 %v12285_v18  ;;  %7531 = vmatprep.subr.bf16.mxu1 %v12286_v19  ;;  %v6903_v19 = vrot.slane %v6886_v40, %v10211_v9 }
 0x854   :  { %7491 = vmatpush1.bf16.msra.mxu0 %v12287_v21  ;;  %7532 = vmatpush1.bf16.msra.mxu1 %v12288_v22 }
 0x855   :  { %7492 = vmatprep.subr.bf16.mxu0 %v12289_v23  ;;  %7533 = vmatprep.subr.bf16.mxu1 %v12290_v24  ;;  %v6899_v23 = vrot.slane %v6886_v40, %v10207_v5 }
 0x858   :  { %7493 = vmatpush1.bf16.msra.mxu0 %v12291_v26  ;;  %7534 = vmatpush1.bf16.msra.mxu1 %v12292_v27 }
 0x859   :  { %7720 = vmatprep.subr.bf16.mxu0 %v12293_v28  ;;  %7761 = vmatprep.subr.bf16.mxu1 %v12294_v29 }
 0x8bb   :  { %v6596_v7 = vpop.f32.mrf.mxu0  ;;  %v6637_v34 = vpop.f32.mrf.mxu1 }
 0x8bd   :  { %v6598_v51 = vpop.f32.mrf.mxu0  ;;  %v6639_v12 = vpop.f32.mrf.mxu1 }
 0x8bf   :  { %v6600_v59 = vpop.f32.mrf.mxu0  ;;  %v6641_v25 = vpop.f32.mrf.mxu1 }
 0x8c0   :  { %v12297_v25 = vld [vmem:[#allocation71_spill] sm:$0xff] }
 0x8c1   :  { %v6601_v62 = vpop.f32.mrf.mxu0  ;;  %v6642_v37 = vpop.f32.mrf.mxu1 }
 0x8db   :  { %v6838_v55 = vpop.f32.mrf.mxu0  ;;  %v6879_v36 = vpop.f32.mrf.mxu1 }
 0x8dc   :  { %v6839_v43 = vadd.f32 %v6838_v55, %v6596_v7  ;;  %v6880_v22 = vadd.f32 %v6879_v36, %v6637_v34  ;;  %v12298_v55 = vld [vmem:[#allocation73_spill] sm:$0xff] }
 0x8dd   :  { %v6840_v8 = vpop.f32.mrf.mxu0  ;;  %v6881_v48 = vpop.f32.mrf.mxu1 }
 0x8de   :  { %v6908_v42 = vadd.f32 %v6891_v46, %v6839_v43  ;;  %v6841_v49 = vadd.f32 %v6840_v8, %v6598_v51  ;;  %v6882_v18 = vadd.f32 %v6881_v48, %v6639_v12  ;;  %v6910_v27 = vadd.f32 %v6899_v23, %v6880_v22 }
 0x8df   :  { %v6842_v0 = vpop.f32.mrf.mxu0  ;;  %v6883_v2 = vpop.f32.mrf.mxu1 }
 0x8e0   :  { %v8726_v1 = vmul.f32 -1.442695, %v6908_v42  ;;  %v6909_v63 = vadd.f32 %v6895_v39, %v6841_v49  ;;  %v6911_v21 = vadd.f32 %v6903_v19, %v6882_v18  ;;  %v12300_v18 = vld [vmem:[#allocation72_spill] sm:$0xff] }
 0x8e1   :  { %v6843_v11 = vpop.f32.mrf.mxu0  ;;  %v6884_v16 = vpop.f32.mrf.mxu1 }
 0x8e2   :  { %9723 = vpow2.f32 %v8726_v1  ;;  %v8727_v17 = vmul.f32 -1.442695, %v6909_v63  ;;  %v8728_v24 = vmul.f32 -1.442695, %v6911_v21  ;;  %v12299_v16 = vld [vmem:[#allocation74_spill] sm:$0xff] }
 0x8e4   :  { %9725 = vpow2.f32 %v8727_v17 }
 0x8e5   :  { %9727 = vpow2.f32 %v8728_v24 }
 0x8ef   :  { %v9724_v26 = vpop.eup %9723 }
 0x8f0   :  { %v6915_v28 = vadd.f32 1.0, %v9724_v26 }
 0x8f1   :  { %v9726_v29 = vpop.eup %9725 }
 0x8f2   :  { %9729 = vrcp.f32 %v6915_v28  ;;  %v6921_v7 = vadd.f32 1.0, %v9726_v29  ;;  %v9728_v46 = vpop.eup %9727 }
 0x8f3   :  { %9731 = vtanh.f32 %v6910_v27  ;;  %v6928_v49 = vadd.f32 1.0, %v9728_v46 }
 0x8f4   :  { %9733 = vrcp.f32 %v6921_v7 }
 0x8fb   :  { %v7172_v51 = vpop.f32.mrf.mxu0  ;;  %v7213_v59 = vpop.f32.mrf.mxu1 }
 0x8fc   :  { %v7220_v12 = vadd.f32 %v7172_v51, %v12297_v25  ;;  %v7222_v19 = vadd.f32 %v7213_v59, %v12300_v18 }
 0x8fd   :  { %v7174_v62 = vpop.f32.mrf.mxu0  ;;  %v7215_v37 = vpop.f32.mrf.mxu1 }
 0x8fe   :  { %v8761_v34 = vmul.f32 -1.442695, %v7220_v12  ;;  %v7221_v40 = vadd.f32 %v7174_v62, %v12298_v55  ;;  %v7223_v17 = vadd.f32 %v7215_v37, %v12299_v16  ;;  %v9514_v12 = vld [vmem:[%s11776_s7] sm:$0xff]  }
 0x8ff   :  { %v9730_v36 = vpop.eup %9729  ;;  %v7176_v43 = vpop.f32.mrf.mxu0 }
 0x900   :  { %v7217_v39 = vpop.f32.mrf.mxu1  ;;  %v9732_v8 = vpop.eup %9731  ;;  %9735 = vpow2.f32 %v8761_v34  ;;  %v8762_v48 = vmul.f32 -1.442695, %v7221_v40  ;;  %v8763_v21 = vmul.f32 -1.442695, %v7223_v17 }
 0x901   :  { %v9734_v42 = vpop.eup %9733  ;;  %v7177_v0 = vpop.f32.mrf.mxu0  ;;  %v6933_v1 = vmul.f32 %v9732_v8, %v9730_v36  ;;  %v7802_v39 = vld [vmem:[%s11775_s6] sm:$0xf] }
 0x902   :  { %v7218_v2 = vpop.f32.mrf.mxu1  ;;  %v6932_v63 = vmul.f32 %v9734_v42, %v11512_v14  ;;  %9737 = vpow2.f32 %v8762_v48  ;;  %v7807_v8 = vrot.slane %v7802_v39, %v12295_v13  ;;  %v7811_v0 = vrot.slane %v7802_v39, %v12296_v6 }
 0x903   :  { %9739 = vrcp.f32 %v6928_v49  ;;  %v7819_v13 = vrot.slane %v7802_v39, %v10211_v9  ;;  %v7815_v6 = vrot.slane %v7802_v39, %v10207_v5 }
 0x904   :  { %v11693_v11 = vadd.f32 %v6933_v1, %v6932_v63 }
 0x906   :  { %9741 = vtanh.f32 %v11693_v11 }
 0x907   :  { %9743 = vtanh.f32 %v7222_v19 }
 0x908   :  { %9745 = vpow2.f32 %v8763_v21 }
 0x90d   :  { %v9736_v22 = vpop.eup %9735 }
 0x90e   :  { %v7227_v23 = vadd.f32 1.0, %v9736_v22 }
 0x90f   :  { %v9738_v24 = vpop.eup %9737 }
 0x910   :  { %9747 = vrcp.f32 %v7227_v23  ;;  %v7233_v26 = vadd.f32 1.0, %v9738_v24  ;;  %v9740_v27 = vpop.eup %9739 }
 0x912   :  { %9749 = vrcp.f32 %v7233_v26 }
 0x913   :  { %v9742_v14 = vpop.eup %9741 }
 0x914   :  { %v6936_v28 = vmul.f32 %v9742_v14, %v9740_v27  ;;  %v9744_v7 = vpop.eup %9743 }
 0x915   :  { %v9746_v51 = vpop.eup %9745 }
 0x916   :  { %v7285_v29 = vpack.c.bf16 %v6936_v28, %v6936_v28 }
 0x918   :  { %7511 = vmatmul.mubr.bf16.vlgmr.msra.gmra.mxu0 %v7285_v29  ;;  %7552 = vmatmul.mubr.bf16.vlgmr.msra.gmra.mxu1 %v7285_v29 }
 0x919   :  { %7721 = vmatpush1.bf16.msra.mxu0 %v11517_v61  ;;  %7762 = vmatpush1.bf16.msra.mxu1 %v11519_v31  ;;  %v7240_v31 = vadd.f32 1.0, %v9746_v51 }
 0x91a   :  { %7722 = vmatprep.subr.bf16.mxu0 %v11521_v52  ;;  %7763 = vmatprep.subr.bf16.mxu1 %v11523_v41  ;;  %v12301_v41 = vld [vmem:[#allocation41_spill] sm:$0xff] }
 0x91b   :  { %7752 = vmatprep.mubr.bf16.mxu0 %v12000_v60  ;;  %7793 = vmatprep.mubr.bf16.mxu1 %v12000_v60  ;;  %9751 = vrcp.f32 %v7240_v31 }
 0x91d   :  { %v9748_v59 = vpop.eup %9747  ;;  %7723 = vmatpush1.bf16.msra.mxu0 %v11527_v50  ;;  %7764 = vmatpush1.bf16.msra.mxu1 %v11529_v30  ;;  %v12302_v50 = vld [vmem:[#allocation40_spill] sm:$0xff]  ;;  %v12303_v30 = vld [vmem:[#allocation42_spill] sm:$0xff] }
 0x91e   :  { %v7245_v25 = vmul.f32 %v9748_v59, %v9744_v7  ;;  %7724 = vmatprep.subr.bf16.mxu0 %v11533_v53  ;;  %7765 = vmatprep.subr.bf16.mxu1 %v11535_v47  ;;  %v12304_v53 = vld [vmem:[#allocation43_spill] sm:$0xff]  ;;  %v12305_v47 = vld [vmem:[#allocation44_spill] sm:$0xff] }
 0x91f   :  { %v9750_v61 = vpop.eup %9749 }
 0x920   :  { %v7244_v52 = vmul.f32 %v9750_v61, %v11558_v10 }
 0x921   :  { %7725 = vmatpush1.bf16.msra.mxu0 %v11541_v3  ;;  %7766 = vmatpush1.bf16.msra.mxu1 %v11543_v57  ;;  %v12306_v3 = vld [vmem:[#allocation45_spill] sm:$0xff]  ;;  %v12307_v57 = vld [vmem:[#allocation46_spill] sm:$0xff] }
 0x922   :  { %v7246_v60 = vadd.f32 %v7245_v25, %v7244_v52  ;;  %7726 = vmatprep.subr.bf16.mxu0 %v11547_v44  ;;  %7767 = vmatprep.subr.bf16.mxu1 %v11549_v45  ;;  %v12308_v44 = vld [vmem:[#allocation75_spill] sm:$0xff] }
 0x924   :  { %9753 = vtanh.f32 %v7246_v60 }
 0x925   :  { %7727 = vmatpush1.bf16.msra.mxu0 %v11554_v56  ;;  %7768 = vmatpush1.bf16.msra.mxu1 %v11556_v15 }
 0x926   :  { %7728 = vmatprep.subr.bf16.mxu0 %v11562_v58  ;;  %7769 = vmatprep.subr.bf16.mxu1 %v11564_v20  ;;  %v9507_v58 = vld [vmem:[%s11776_s7 + $0x38] sm:$0xff]   ;;  %v9897_v20 = vmov 0.0  }
 0x928   :  { %v9752_v45 = vpop.eup %9751 }
 0x929   :  { %7729 = vmatpush1.bf16.msra.mxu0 %v12301_v41  ;;  %7770 = vmatpush1.bf16.msra.mxu1 %v12302_v50 }
 0x92a   :  { %7730 = vmatprep.subr.bf16.mxu0 %v12303_v30  ;;  %7771 = vmatprep.subr.bf16.mxu1 %v12304_v53 }
 0x92d   :  { %7731 = vmatpush1.bf16.msra.mxu0 %v12305_v47  ;;  %7772 = vmatpush1.bf16.msra.mxu1 %v12306_v3 }
 0x92e   :  { %7732 = vmatprep.subr.bf16.mxu0 %v12307_v57  ;;  %7773 = vmatprep.subr.bf16.mxu1 %v12308_v44  ;;  %v8831_v57 = vld [vmem:[%s11777_s8] ss:$0 sm:$0xff] }
 0x931   :  { %v9754_v56 = vpop.eup %9753  ;;  %7733 = vmatpush1.bf16.msra.mxu0 %v11593_v33  ;;  %7774 = vmatpush1.bf16.msra.mxu1 %v11595_v32  ;;  %v9512_v33 = vld [vmem:[%s11776_s7 + $0x10] sm:$0xff]   ;;  %v9513_v32 = vld [vmem:[%s11776_s7 + $0x8] sm:$0xff]  }
 0x932   :  { %7734 = vmatprep.subr.bf16.mxu0 %v11599_v35  ;;  %7775 = vmatprep.subr.bf16.mxu1 %v11601_v38  ;;  %v7248_v15 = vmul.f32 %v9754_v56, %v9752_v45  ;;  %v9508_v35 = vld [vmem:[%s11776_s7 + $0x30] sm:$0xff]   ;;  %v9509_v38 = vld [vmem:[%s11776_s7 + $0x28] sm:$0xff]  }
 0x934   :  { %v7251_v10 = vpack.c.bf16 %v7248_v15, %v7248_v15 }
 0x935   :  { %7735 = vmatpush1.bf16.msra.mxu0 %v11605_v54  ;;  %7776 = vmatpush1.bf16.msra.mxu1 %v11607_v4  ;;  %v9510_v54 = vld [vmem:[%s11776_s7 + $0x20] sm:$0xff]   ;;  %v9511_v4 = vld [vmem:[%s11776_s7 + $0x18] sm:$0xff]  }
 0x936   :  { %8853 = vmatprep.subr.bf16.mxu0 %v9897_v20 }
 0x938   :  { %7753 = vmatmul.mubr.bf16.vlgmr.msra.gmra.mxu0 %v7251_v10  ;;  %7794 = vmatmul.mubr.bf16.vlgmr.msra.gmra.mxu1 %v7251_v10 }
 0x939   :  { %8854 = vmatpush3.bf16.msra.mxu0 %v9507_v58  ;;  %8869 = vmatprep.mubr.msk.bf16.mxu0 %vm9898_vm0, %v9897_v20 }
 0x93a   :  { %8855 = vmatprep.subr.bf16.mxu0 %v9897_v20 }
 0x93d   :  { %8856 = vmatpush3.bf16.msra.mxu0 %v9508_v35 }
 0x93e   :  { %8857 = vmatprep.subr.bf16.mxu0 %v9897_v20 }
 0x941   :  { %8858 = vmatpush3.bf16.msra.mxu0 %v9509_v38 }
 0x942   :  { %8859 = vmatprep.subr.bf16.mxu0 %v9897_v20 }
 0x945   :  { %8860 = vmatpush3.bf16.msra.mxu0 %v9510_v54 }
 0x946   :  { %8861 = vmatprep.subr.bf16.mxu0 %v9897_v20 }
 0x949   :  { %8862 = vmatpush3.bf16.msra.mxu0 %v9511_v4 }
 0x94a   :  { %8863 = vmatprep.subr.bf16.mxu0 %v9897_v20 }
 0x94d   :  { %8864 = vmatpush3.bf16.msra.mxu0 %v9512_v33 }
 0x94e   :  { %8865 = vmatprep.subr.bf16.mxu0 %v9897_v20 }
 0x951   :  { %8866 = vmatpush3.bf16.msra.mxu0 %v9513_v32 }
 0x952   :  { %8867 = vmatprep.subr.bf16.mxu0 %v9897_v20 }
 0x955   :  { %8868 = vmatpush3.bf16.msra.mxu0 %v9514_v12 }
 0x9d8   :  { %v7512_v62 = vpop.f32.mrf.mxu0  ;;  %v7553_v37 = vpop.f32.mrf.mxu1 }
 0x9da   :  { %v7514_v46 = vpop.f32.mrf.mxu0  ;;  %v7555_v34 = vpop.f32.mrf.mxu1 }
 0x9dc   :  { %v7516_v55 = vpop.f32.mrf.mxu0  ;;  %v7557_v40 = vpop.f32.mrf.mxu1 }
 0x9de   :  { %v7517_v36 = vpop.f32.mrf.mxu0  ;;  %v7558_v43 = vpop.f32.mrf.mxu1 }
 0x9f8   :  { %v7754_v48 = vpop.f32.mrf.mxu0  ;;  %v7795_v42 = vpop.f32.mrf.mxu1 }
 0x9f9   :  { %v7755_v49 = vadd.f32 %v7754_v48, %v7512_v62  ;;  %v7796_v14 = vadd.f32 %v7795_v42, %v7553_v37 }
 0x9fa   :  { %v7756_v2 = vpop.f32.mrf.mxu0  ;;  %v7797_v1 = vpop.f32.mrf.mxu1 }
 0x9fb   :  { %v7824_v63 = vadd.f32 %v7807_v8, %v7755_v49  ;;  %v7757_v16 = vadd.f32 %v7756_v2, %v7514_v46  ;;  %v7798_v26 = vadd.f32 %v7797_v1, %v7555_v34  ;;  %v7826_v7 = vadd.f32 %v7815_v6, %v7796_v14 }
 0x9fc   :  { %v7758_v17 = vpop.f32.mrf.mxu0  ;;  %v7799_v18 = vpop.f32.mrf.mxu1 }
 0x9fd   :  { %v8828_v19 = vmul.f32 -1.442695, %v7824_v63  ;;  %v7825_v21 = vadd.f32 %v7811_v0, %v7757_v16  ;;  %v7827_v27 = vadd.f32 %v7819_v13, %v7798_v26 }
 0x9fe   :  { %v7759_v22 = vpop.f32.mrf.mxu0  ;;  %v7800_v23 = vpop.f32.mrf.mxu1 }
 0x9ff   :  { %9755 = vpow2.f32 %v8828_v19  ;;  %v8829_v24 = vmul.f32 -1.442695, %v7825_v21  ;;  %v8830_v28 = vmul.f32 -1.442695, %v7827_v27 }
 0xa01   :  { %9757 = vpow2.f32 %v8829_v24 }
 0xa02   :  { %9759 = vpow2.f32 %v8830_v28 }
 0xa0c   :  { %v9756_v29 = vpop.eup %9755 }
 0xa0d   :  { %v7831_v51 = vadd.f32 1.0, %v9756_v29 }
 0xa0e   :  { %v9758_v59 = vpop.eup %9757 }
 0xa0f   :  { %9761 = vrcp.f32 %v7831_v51  ;;  %v7837_v25 = vadd.f32 1.0, %v9758_v59  ;;  %v9760_v61 = vpop.eup %9759 }
 0xa10   :  { %9763 = vtanh.f32 %v7826_v7  ;;  %v7844_v41 = vadd.f32 1.0, %v9760_v61 }
 0xa11   :  { %9765 = vrcp.f32 %v7837_v25 }
 0xa12   :  { %9767 = vrcp.f32 %v7844_v41 }
 0xa1c   :  { %v9762_v31 = vpop.eup %9761 }
 0xa1d   :  { %v9764_v52 = vpop.eup %9763 }
 0xa1e   :  { %v9766_v60 = vpop.eup %9765  ;;  %v7849_v9 = vmul.f32 %v9764_v52, %v9762_v31 }
 0xa1f   :  { %v7848_v50 = vmul.f32 %v9766_v60, %v11693_v11  ;;  %v9768_v5 = vpop.eup %9767 }
 0xa21   :  { %v7850_v30 = vadd.f32 %v7849_v9, %v7848_v50 }
 0xa23   :  { %9769 = vtanh.f32 %v7850_v30 }
 0xa30   :  { %v9770_v53 = vpop.eup %9769 }
 0xa31   :  { %v7852_v47 = vmul.f32 %v9770_v53, %v9768_v5 }
 0xa33   :  { %v7859_v3 = vpack.c.bf16 %v7852_v47, %v7852_v47 }
 0xa35   :  { %8870 = vmatmul.mubr.bf16.vlgmr.msra.gmra.mxu0 %v7859_v3 }
 0xaf5   :  { %v7965_v44 = vpop.f32.mrf.mxu0 }
 0xaf6   :  { %v7966_v45 = vadd.f32 %v8831_v57, %v7965_v44 }
 0xaf7   :  { %v8871_v56 = vpop.f32.mrf.mxu0 }
 0xaf8   :  { %7971 = vst [vmem:[%s11778_s9] sm:$0xff] %v7966_v45 }
 0xaf9   :  { %v7968_v11 = vpop.f32.mrf.mxu0 }
 0xafb   :  { %v8872_v15 = vpop.f32.mrf.mxu0 }
 0xafc   :  { %7976 = vsyncpa [#allocation8], 1 }
 0xafd   :  { %7977 = vsyncpa [#allocation10], 1 }
 0xafe   :  { %7978 = vsyncpa [#allocation13], 1 }

</bundles_post_ra>
